<compile_context>
chip_gen: v5e
topology: v5e:2x2
jax: 0.10.0
libtpu: 0.0.40
codegen_flags: <defaults>
</compile_context>

<pallas_src>
import functools
import math

import jax
import jax.numpy as jnp
from jax import lax
from jax.experimental import pallas as pl
from jax.experimental.pallas import tpu as pltpu

# ----------------------------- small synthetic config -----------------------
VOCAB = 128
HIDDEN = 128          # xlm-roberta hidden_size (scaled down from 768)
N_HEADS = 4
HEAD_DIM = HIDDEN // N_HEADS
INTERMEDIATE = 256
N_LAYERS = 2
POS_PAD = 128         # position table rows padded to a lane-dense 128
FEATURES = 8          # feature_count of the classifier head
CLS_PAD = 128         # classifier output padded to a lane-dense width
PAD_ID = 1            # roberta padding_idx
LN_EPS = 1e-5


# ----------------------------- in-kernel math helpers ------------------------
def _layernorm(y, g, b):
    mean = jnp.mean(y, axis=-1, keepdims=True)
    var = jnp.mean(jnp.square(y - mean), axis=-1, keepdims=True)
    yn = (y - mean) * lax.rsqrt(var + LN_EPS)
    return yn * g.astype(jnp.float32) + b.astype(jnp.float32)


def _gelu(x):
    # TODO(synk): HF XLM-R uses erf-based GELU; tanh approximation used here (EUP path).
    c = jnp.float32(math.sqrt(2.0 / math.pi))
    return 0.5 * x * (1.0 + jnp.tanh(c * (x + 0.044715 * x * x * x)))


# ----------------------------- the fused forward kernel ----------------------
def _forward_kernel(ids_ref, pos_ref, mask_ref,
                    wemb_ref, pemb_ref, temb_ref, eg_ref, eb_ref,
                    wqkv_ref, bqkv_ref, wo_ref, bo_ref, g1_ref, b1_ref,
                    wi_ref, bi_ref, wf_ref, bf_ref, g2_ref, b2_ref,
                    prew_ref, preb_ref, clsw_ref, clsb_ref,
                    logits_ref, x_scr,
                    *, batch, seq, n_heads, head_dim, scale):
    l = pl.program_id(0)
    hidden = n_heads * head_dim
    m = batch * seq

    # ---- step 0: embeddings (one-hot gathers on the MXU) + LayerNorm -> seed x_scr ----
    @pl.when(l == 0)
    def _():
        ids = ids_ref[...]                                             # (M, 1) int32
        pos = pos_ref[...]                                             # (M, 1) int32
        w_oh = jnp.where(ids == lax.broadcasted_iota(jnp.int32, (m, VOCAB), 1),
                         1.0, 0.0).astype(jnp.bfloat16)                # (M, VOCAB)
        p_oh = jnp.where(pos == lax.broadcasted_iota(jnp.int32, (m, POS_PAD), 1),
                         1.0, 0.0).astype(jnp.bfloat16)                # (M, POS_PAD)
        emb = jnp.dot(w_oh, wemb_ref[...], preferred_element_type=jnp.float32)
        emb = emb + jnp.dot(p_oh, pemb_ref[...], preferred_element_type=jnp.float32)
        emb = emb + temb_ref[...].astype(jnp.float32)                  # token_type_id == 0
        x_scr[...] = _layernorm(emb, eg_ref[...], eb_ref[...]).astype(jnp.bfloat16)
        # TODO(synk): embedding / hidden / attention dropout omitted (inference -> identity)

    # ---- one encoder layer per grid step; x stays resident in VMEM scratch ----
    x = x_scr[...]                                                     # (M, H) bf16

    # fused QKV projection (lane-dense (M,3H) stays in VMEM, never touches HBM)
    qkv = jnp.dot(x, wqkv_ref[0], preferred_element_type=jnp.float32)
    qkv = qkv + bqkv_ref[0].astype(jnp.float32)                        # (M, 3H)
    q = qkv[:, 0:hidden].astype(jnp.bfloat16)
    k = qkv[:, hidden:2 * hidden].astype(jnp.bfloat16)
    v = qkv[:, 2 * hidden:3 * hidden].astype(jnp.bfloat16)

    # additive padding-mask bias computed in-kernel from the int mask
    bias = (1.0 - mask_ref[...].astype(jnp.float32)) * jnp.float32(-1e9)   # (B, S)

    ctx_parts = []
    for b in range(batch):                                             # tiny static loops
        r0 = b * seq
        bias_b = bias[b:b + 1, :]                                      # (1, S)
        head_parts = []
        for h in range(n_heads):
            c0 = h * head_dim
            qh = q[r0:r0 + seq, c0:c0 + head_dim]                      # (S, D) static slice
            kh = k[r0:r0 + seq, c0:c0 + head_dim]
            vh = v[r0:r0 + seq, c0:c0 + head_dim]
            s = lax.dot_general(qh, kh, (((1,), (1,)), ((), ())),
                                preferred_element_type=jnp.float32) * scale
            s = s + bias_b                                             # broadcast over rows
            mmax = jnp.max(s, axis=-1, keepdims=True)
            p = jnp.exp(s - mmax)
            p = p * pl.reciprocal(jnp.sum(p, axis=-1, keepdims=True), approx=True)  # EUP
            head_parts.append(jnp.dot(p.astype(jnp.bfloat16), vh,
                                      preferred_element_type=jnp.float32))          # (S, D)
        ctx_parts.append(jnp.concatenate(head_parts, axis=-1))         # (S, H) lane-dense
    ctx = jnp.concatenate(ctx_parts, axis=0).astype(jnp.bfloat16)      # (M, H)

    # single K=128 output projection + residual + LayerNorm1
    attn = jnp.dot(ctx, wo_ref[0], preferred_element_type=jnp.float32)
    attn = attn + bo_ref[0].astype(jnp.float32)
    y1 = _layernorm(attn + x.astype(jnp.float32), g1_ref[0], b1_ref[0])
    y1_bf = y1.astype(jnp.bfloat16)

    # FFN: matmul -> GELU -> matmul -> residual -> LayerNorm2
    h1 = jnp.dot(y1_bf, wi_ref[0], preferred_element_type=jnp.float32)
    h1 = _gelu(h1 + bi_ref[0].astype(jnp.float32))
    h2 = jnp.dot(h1.astype(jnp.bfloat16), wf_ref[0], preferred_element_type=jnp.float32)
    h2 = h2 + bf_ref[0].astype(jnp.float32)
    y2 = _layernorm(h2 + y1, g2_ref[0], b2_ref[0])
    y2_bf = y2.astype(jnp.bfloat16)
    x_scr[...] = y2_bf                                                 # carry to next layer

    # ---- last step: classifier head fused on the CLS rows ----
    @pl.when(l == pl.num_programs(0) - 1)
    def _():
        cls_rows = jnp.concatenate(
            [y2_bf[b * seq:b * seq + 1, :] for b in range(batch)], axis=0)   # (B, H)
        hcls = jnp.dot(cls_rows, prew_ref[...], preferred_element_type=jnp.float32)
        hcls = jnp.maximum(hcls + preb_ref[...].astype(jnp.float32), 0.0)    # pre_cls + ReLU
        logits = jnp.dot(hcls.astype(jnp.bfloat16), clsw_ref[...],
                         preferred_element_type=jnp.float32)
        logits_ref[...] = (logits + clsb_ref[...].astype(jnp.float32)).astype(jnp.bfloat16)


# ----------------------------- wrapper ---------------------------------------
def model_forward(params, input_ids, attention_mask):
    B, S = input_ids.shape
    M = B * S
    H, I = HIDDEN, INTERMEDIATE

    # roberta-style position ids: cumsum of non-pad mask, offset by padding_idx
    nonpad = (input_ids != PAD_ID).astype(jnp.int32)
    pos_ids = jnp.cumsum(nonpad, axis=1) * nonpad + PAD_ID
    ids_col = input_ids.astype(jnp.int32).reshape(M, 1)
    pos_col = pos_ids.astype(jnp.int32).reshape(M, 1)
    mask_i32 = attention_mask.astype(jnp.int32)

    kern = functools.partial(_forward_kernel, batch=B, seq=S, n_heads=N_HEADS,
                             head_dim=HEAD_DIM, scale=1.0 / math.sqrt(HEAD_DIM))

    rep = lambda l: (0, 0)            # replicated 2-D blocks (constant index -> stays in VMEM)
    per_layer = lambda l: (l, 0, 0)   # per-layer stacked weights

    in_specs = [
        pl.BlockSpec((M, 1), rep),                 # token ids
        pl.BlockSpec((M, 1), rep),                 # position ids
        pl.BlockSpec((B, S), rep),                 # attention mask (int)
        pl.BlockSpec((VOCAB, H), rep),             # word embedding table
        pl.BlockSpec((POS_PAD, H), rep),           # position embedding table
        pl.BlockSpec((1, H), rep),                 # token-type embedding (row 0)
        pl.BlockSpec((1, H), rep),                 # embedding LN gamma
        pl.BlockSpec((1, H), rep),                 # embedding LN beta
        pl.BlockSpec((1, H, 3 * H), per_layer),    # fused QKV weight (K,N)
        pl.BlockSpec((1, 1, 3 * H), per_layer),    # fused QKV bias
        pl.BlockSpec((1, H, H), per_layer),        # attention output proj weight
        pl.BlockSpec((1, 1, H), per_layer),        # attention output proj bias
        pl.BlockSpec((1, 1, H), per_layer),        # LN1 gamma
        pl.BlockSpec((1, 1, H), per_layer),        # LN1 beta
        pl.BlockSpec((1, H, I), per_layer),        # FFN intermediate weight
        pl.BlockSpec((1, 1, I), per_layer),        # FFN intermediate bias
        pl.BlockSpec((1, I, H), per_layer),        # FFN output weight
        pl.BlockSpec((1, 1, H), per_layer),        # FFN output bias
        pl.BlockSpec((1, 1, H), per_layer),        # LN2 gamma
        pl.BlockSpec((1, 1, H), per_layer),        # LN2 beta
        pl.BlockSpec((H, H), rep),                 # pre_classifier weight
        pl.BlockSpec((1, H), rep),                 # pre_classifier bias
        pl.BlockSpec((H, CLS_PAD), rep),           # classifier weight (lane-padded)
        pl.BlockSpec((1, CLS_PAD), rep),           # classifier bias (lane-padded)
    ]

    logits_pad = pl.pallas_call(
        kern,
        out_shape=jax.ShapeDtypeStruct((B, CLS_PAD), jnp.bfloat16),
        grid=(N_LAYERS,),
        in_specs=in_specs,
        out_specs=pl.BlockSpec((B, CLS_PAD), rep),
        scratch_shapes=[pltpu.VMEM((M, HIDDEN), jnp.bfloat16)],   # resident hidden state
        # Layer axis is a sequential dependency chain -> "arbitrary".
        # (On v7x one could additionally split along B for the 2 TCs, but at these
        #  shapes the per-step compute is below the cross-TC sharding overhead.)
        compiler_params=pltpu.CompilerParams(dimension_semantics=("arbitrary",)),
    )(ids_col, pos_col, mask_i32,
      params["word_emb"], params["pos_emb"], params["type_emb"],
      params["emb_ln_g"], params["emb_ln_b"],
      params["w_qkv"], params["b_qkv"], params["wo"], params["bo"],
      params["ln1_g"], params["ln1_b"],
      params["wi"], params["bi"], params["wf"], params["bf"],
      params["ln2_g"], params["ln2_b"],
      params["pre_w"], params["pre_b"], params["cls_w_pad"], params["cls_b_pad"])

    return logits_pad[:, :FEATURES]                               # (B, FEATURES) bf16


# ----------------------------- parameter init --------------------------------
def init_params(key):
    def nrm(k, shape, std=0.02):
        return (jax.random.normal(k, shape, jnp.float32) * std).astype(jnp.bfloat16)

    keys = iter(jax.random.split(key, 32))
    H, I, L = HIDDEN, INTERMEDIATE, N_LAYERS
    p = {
        "word_emb": nrm(next(keys), (VOCAB, H)),
        "pos_emb": nrm(next(keys), (POS_PAD, H)),
        "type_emb": nrm(next(keys), (1, H)),
        "emb_ln_g": jnp.ones((1, H), jnp.bfloat16),
        "emb_ln_b": jnp.zeros((1, H), jnp.bfloat16),
        # per-layer weights stacked on a leading layer axis; matmul weights are
        # pre-transposed to (K, N) so every jnp.dot is a canonical MXU op.
        "w_qkv": nrm(next(keys), (L, H, 3 * H)),
        "b_qkv": jnp.zeros((L, 1, 3 * H), jnp.bfloat16),
        "wo": nrm(next(keys), (L, H, H)),
        "bo": jnp.zeros((L, 1, H), jnp.bfloat16),
        "ln1_g": jnp.ones((L, 1, H), jnp.bfloat16),
        "ln1_b": jnp.zeros((L, 1, H), jnp.bfloat16),
        "wi": nrm(next(keys), (L, H, I)),
        "bi": jnp.zeros((L, 1, I), jnp.bfloat16),
        "wf": nrm(next(keys), (L, I, H)),
        "bf": jnp.zeros((L, 1, H), jnp.bfloat16),
        "ln2_g": jnp.ones((L, 1, H), jnp.bfloat16),
        "ln2_b": jnp.zeros((L, 1, H), jnp.bfloat16),
        "pre_w": nrm(next(keys), (H, H)),
        "pre_b": jnp.zeros((1, H), jnp.bfloat16),
    }
    xavier_std = math.sqrt(2.0 / (H + FEATURES))
    cls_w = nrm(next(keys), (H, FEATURES), std=xavier_std)        # xavier_normal_ equivalent
    p["cls_w_pad"] = jnp.zeros((H, CLS_PAD), jnp.bfloat16).at[:, :FEATURES].set(cls_w)
    p["cls_b_pad"] = jnp.zeros((1, CLS_PAD), jnp.bfloat16)
    return p


# ----------------------------- main -------------------------------------------
if __name__ == "__main__":
    key = jax.random.PRNGKey(0)
    kp, kid = jax.random.split(key)
    params = init_params(kp)

    B, S = 2, 16
    input_ids = jax.random.randint(kid, (B, S), 2, VOCAB, dtype=jnp.int32)
    # simulate padding on the last 4 tokens of the second sequence
    pad_region = (jnp.arange(S)[None, :] >= S - 4) & (jnp.arange(B)[:, None] == 1)
    input_ids = jnp.where(pad_region, PAD_ID, input_ids)
    attention_mask = jnp.where(pad_region, 0, 1).astype(jnp.int32)

    fwd = jax.jit(model_forward)
    logits = fwd(params, input_ids, attention_mask)
    jax.block_until_ready(logits)

    assert logits.shape == (B, FEATURES)
    assert logits.dtype == jnp.bfloat16
    assert bool(jnp.all(jnp.isfinite(logits.astype(jnp.float32))))
    print("KERNEL_OK")
</pallas_src>

<mosaic_0001>
module attributes {stable_mosaic.version = 11 : i64} {
  func.func @_forward_kernel(%arg0: i32, %arg1: memref<32x1xi32, #tpu.memory_space<vmem>>, %arg2: memref<32x1xi32, #tpu.memory_space<vmem>>, %arg3: memref<2x16xi32, #tpu.memory_space<vmem>>, %arg4: memref<128x128xbf16, #tpu.memory_space<vmem>>, %arg5: memref<128x128xbf16, #tpu.memory_space<vmem>>, %arg6: memref<1x128xbf16, #tpu.memory_space<vmem>>, %arg7: memref<1x128xbf16, #tpu.memory_space<vmem>>, %arg8: memref<1x128xbf16, #tpu.memory_space<vmem>>, %arg9: memref<1x128x384xbf16, #tpu.memory_space<vmem>>, %arg10: memref<1x1x384xbf16, #tpu.memory_space<vmem>>, %arg11: memref<1x128x128xbf16, #tpu.memory_space<vmem>>, %arg12: memref<1x1x128xbf16, #tpu.memory_space<vmem>>, %arg13: memref<1x1x128xbf16, #tpu.memory_space<vmem>>, %arg14: memref<1x1x128xbf16, #tpu.memory_space<vmem>>, %arg15: memref<1x128x256xbf16, #tpu.memory_space<vmem>>, %arg16: memref<1x1x256xbf16, #tpu.memory_space<vmem>>, %arg17: memref<1x256x128xbf16, #tpu.memory_space<vmem>>, %arg18: memref<1x1x128xbf16, #tpu.memory_space<vmem>>, %arg19: memref<1x1x128xbf16, #tpu.memory_space<vmem>>, %arg20: memref<1x1x128xbf16, #tpu.memory_space<vmem>>, %arg21: memref<128x128xbf16, #tpu.memory_space<vmem>>, %arg22: memref<1x128xbf16, #tpu.memory_space<vmem>>, %arg23: memref<128x128xbf16, #tpu.memory_space<vmem>>, %arg24: memref<1x128xbf16, #tpu.memory_space<vmem>>, %arg25: memref<2x128xbf16, #tpu.memory_space<vmem>>, %arg26: memref<32x128xbf16, #tpu.memory_space<vmem>>) attributes {dimension_semantics = [#tpu.dimension_semantics<arbitrary>], iteration_bounds = array<i64: 2>, scalar_prefetch = 0 : i64, scratch_operands = 1 : i64, tpu.core_type = #tpu.core_type<tc>, window_params = [{pipeline_mode = #tpu.pipeline_mode<synchronous>, transform_indices = @transform_0, window_bounds = array<i64: 32, 1>}, {pipeline_mode = #tpu.pipeline_mode<synchronous>, transform_indices = @transform_1, window_bounds = array<i64: 32, 1>}, {pipeline_mode = #tpu.pipeline_mode<synchronous>, transform_indices = @transform_2, window_bounds = array<i64: 2, 16>}, {pipeline_mode = #tpu.pipeline_mode<synchronous>, transform_indices = @transform_3, window_bounds = array<i64: 128, 128>}, {pipeline_mode = #tpu.pipeline_mode<synchronous>, transform_indices = @transform_4, window_bounds = array<i64: 128, 128>}, {pipeline_mode = #tpu.pipeline_mode<synchronous>, transform_indices = @transform_5, window_bounds = array<i64: 1, 128>}, {pipeline_mode = #tpu.pipeline_mode<synchronous>, transform_indices = @transform_6, window_bounds = array<i64: 1, 128>}, {pipeline_mode = #tpu.pipeline_mode<synchronous>, transform_indices = @transform_7, window_bounds = array<i64: 1, 128>}, {transform_indices = @transform_8, window_bounds = array<i64: 1, 128, 384>}, {transform_indices = @transform_9, window_bounds = array<i64: 1, 1, 384>}, {transform_indices = @transform_10, window_bounds = array<i64: 1, 128, 128>}, {transform_indices = @transform_11, window_bounds = array<i64: 1, 1, 128>}, {transform_indices = @transform_12, window_bounds = array<i64: 1, 1, 128>}, {transform_indices = @transform_13, window_bounds = array<i64: 1, 1, 128>}, {transform_indices = @transform_14, window_bounds = array<i64: 1, 128, 256>}, {transform_indices = @transform_15, window_bounds = array<i64: 1, 1, 256>}, {transform_indices = @transform_16, window_bounds = array<i64: 1, 256, 128>}, {transform_indices = @transform_17, window_bounds = array<i64: 1, 1, 128>}, {transform_indices = @transform_18, window_bounds = array<i64: 1, 1, 128>}, {transform_indices = @transform_19, window_bounds = array<i64: 1, 1, 128>}, {pipeline_mode = #tpu.pipeline_mode<synchronous>, transform_indices = @transform_20, window_bounds = array<i64: 128, 128>}, {pipeline_mode = #tpu.pipeline_mode<synchronous>, transform_indices = @transform_21, window_bounds = array<i64: 1, 128>}, {pipeline_mode = #tpu.pipeline_mode<synchronous>, transform_indices = @transform_22, window_bounds = array<i64: 128, 128>}, {pipeline_mode = #tpu.pipeline_mode<synchronous>, transform_indices = @transform_23, window_bounds = array<i64: 1, 128>}, {pipeline_mode = #tpu.pipeline_mode<synchronous>, transform_indices = @transform_24, window_bounds = array<i64: 2, 128>}]} {
    %c0_i32 = arith.constant 0 : i32
    %0 = arith.cmpi eq, %arg0, %c0_i32 : i32
    %1 = arith.extui %0 : i1 to i32
    %c0_i32_0 = arith.constant 0 : i32
    %2 = arith.cmpi ne, %1, %c0_i32_0 : i32
    scf.if %2 {
      %c0_102 = arith.constant 0 : index
      %c0_103 = arith.constant 0 : index
      %293 = vector.load %arg1[%c0_102, %c0_103] : memref<32x1xi32, #tpu.memory_space<vmem>>, vector<32x1xi32>
      %c0_104 = arith.constant 0 : index
      %c0_105 = arith.constant 0 : index
      %294 = vector.load %arg2[%c0_104, %c0_105] : memref<32x1xi32, #tpu.memory_space<vmem>>, vector<32x1xi32>
      %295 = tpu.iota {dimensions = array<i32: 1>} : vector<32x128xi32>
      %296 = vector.broadcast %293 : vector<32x1xi32> to vector<32x128xi32>
      %297 = arith.cmpi eq, %296, %295 : vector<32x128xi32>
      %cst_106 = arith.constant 1.000000e+00 : f32
      %cst_107 = arith.constant 0.000000e+00 : f32
      %298 = vector.broadcast %cst_106 : f32 to vector<32x128xf32>
      %299 = vector.broadcast %cst_107 : f32 to vector<32x128xf32>
      %300 = arith.select %297, %298, %299 : vector<32x128xi1>, vector<32x128xf32>
      %301 = arith.truncf %300 : vector<32x128xf32> to vector<32x128xbf16>
      %302 = tpu.iota {dimensions = array<i32: 1>} : vector<32x128xi32>
      %303 = vector.broadcast %294 : vector<32x1xi32> to vector<32x128xi32>
      %304 = arith.cmpi eq, %303, %302 : vector<32x128xi32>
      %cst_108 = arith.constant 1.000000e+00 : f32
      %cst_109 = arith.constant 0.000000e+00 : f32
      %305 = vector.broadcast %cst_108 : f32 to vector<32x128xf32>
      %306 = vector.broadcast %cst_109 : f32 to vector<32x128xf32>
      %307 = arith.select %304, %305, %306 : vector<32x128xi1>, vector<32x128xf32>
      %308 = arith.truncf %307 : vector<32x128xf32> to vector<32x128xbf16>
      %c0_110 = arith.constant 0 : index
      %c0_111 = arith.constant 0 : index
      %309 = vector.load %arg4[%c0_110, %c0_111] : memref<128x128xbf16, #tpu.memory_space<vmem>>, vector<128x128xbf16>
      %cst_112 = arith.constant dense<0.000000e+00> : vector<32x128xf32>
      %310 = tpu.matmul %301, %309, %cst_112 {dimension_numbers = #tpu.dot_dimension_numbers<[1], [0], [0], [1], [0, 0, 1, 1], [], []>} : vector<32x128xbf16>, vector<128x128xbf16>, vector<32x128xf32> -> vector<32x128xf32>
      %c0_113 = arith.constant 0 : index
      %c0_114 = arith.constant 0 : index
      %311 = vector.load %arg5[%c0_113, %c0_114] : memref<128x128xbf16, #tpu.memory_space<vmem>>, vector<128x128xbf16>
      %cst_115 = arith.constant dense<0.000000e+00> : vector<32x128xf32>
      %312 = tpu.matmul %308, %311, %cst_115 {dimension_numbers = #tpu.dot_dimension_numbers<[1], [0], [0], [1], [0, 0, 1, 1], [], []>} : vector<32x128xbf16>, vector<128x128xbf16>, vector<32x128xf32> -> vector<32x128xf32>
      %313 = arith.addf %310, %312 : vector<32x128xf32>
      %c0_116 = arith.constant 0 : index
      %c0_117 = arith.constant 0 : index
      %314 = vector.load %arg6[%c0_116, %c0_117] : memref<1x128xbf16, #tpu.memory_space<vmem>>, vector<1x128xbf16>
      %315 = arith.extf %314 : vector<1x128xbf16> to vector<1x128xf32>
      %316 = vector.broadcast %315 : vector<1x128xf32> to vector<32x128xf32>
      %317 = arith.addf %313, %316 : vector<32x128xf32>
      %c0_118 = arith.constant 0 : index
      %c0_119 = arith.constant 0 : index
      %318 = vector.load %arg7[%c0_118, %c0_119] : memref<1x128xbf16, #tpu.memory_space<vmem>>, vector<1x128xbf16>
      %c0_120 = arith.constant 0 : index
      %c0_121 = arith.constant 0 : index
      %319 = vector.load %arg8[%c0_120, %c0_121] : memref<1x128xbf16, #tpu.memory_space<vmem>>, vector<1x128xbf16>
      %cst_122 = arith.constant dense<0.000000e+00> : vector<32xf32>
      %320 = vector.multi_reduction <add>, %317, %cst_122 [1] : vector<32x128xf32> to vector<32xf32>
      %321 = vector.shape_cast %320 : vector<32xf32> to vector<32x1xf32>
      %cst_123 = arith.constant 1.280000e+02 : f32
      %322 = vector.broadcast %cst_123 : f32 to vector<32x1xf32>
      %323 = arith.divf %321, %322 : vector<32x1xf32>
      %324 = vector.broadcast %323 : vector<32x1xf32> to vector<32x128xf32>
      %325 = arith.subf %317, %324 : vector<32x128xf32>
      %326 = arith.mulf %325, %325 : vector<32x128xf32>
      %cst_124 = arith.constant dense<0.000000e+00> : vector<32xf32>
      %327 = vector.multi_reduction <add>, %326, %cst_124 [1] : vector<32x128xf32> to vector<32xf32>
      %328 = vector.shape_cast %327 : vector<32xf32> to vector<32x1xf32>
      %cst_125 = arith.constant 1.280000e+02 : f32
      %329 = vector.broadcast %cst_125 : f32 to vector<32x1xf32>
      %330 = arith.divf %328, %329 : vector<32x1xf32>
      %331 = vector.broadcast %323 : vector<32x1xf32> to vector<32x128xf32>
      %332 = arith.subf %317, %331 : vector<32x128xf32>
      %cst_126 = arith.constant 9.99999974E-6 : f32
      %333 = vector.broadcast %cst_126 : f32 to vector<32x1xf32>
      %334 = arith.addf %330, %333 : vector<32x1xf32>
      %335 = math.rsqrt %334 : vector<32x1xf32>
      %336 = vector.broadcast %335 : vector<32x1xf32> to vector<32x128xf32>
      %337 = arith.mulf %332, %336 : vector<32x128xf32>
      %338 = arith.extf %318 : vector<1x128xbf16> to vector<1x128xf32>
      %339 = vector.broadcast %338 : vector<1x128xf32> to vector<32x128xf32>
      %340 = arith.mulf %337, %339 : vector<32x128xf32>
      %341 = arith.extf %319 : vector<1x128xbf16> to vector<1x128xf32>
      %342 = vector.broadcast %341 : vector<1x128xf32> to vector<32x128xf32>
      %343 = arith.addf %340, %342 : vector<32x128xf32>
      %344 = arith.truncf %343 : vector<32x128xf32> to vector<32x128xbf16>
      %c0_127 = arith.constant 0 : index
      %c0_128 = arith.constant 0 : index
      %345 = vector.load %arg26[%c0_127, %c0_128] : memref<32x128xbf16, #tpu.memory_space<vmem>>, vector<32x128xbf16>
      tpu.vector_store %arg26[%c0_127, %c0_128], %344 {strides = array<i32>} : memref<32x128xbf16, #tpu.memory_space<vmem>>, vector<32x128xbf16>,
    } else {
    }
    %c0 = arith.constant 0 : index
    %c0_1 = arith.constant 0 : index
    %3 = vector.load %arg26[%c0, %c0_1] : memref<32x128xbf16, #tpu.memory_space<vmem>>, vector<32x128xbf16>
    %c0_2 = arith.constant 0 : index
    %c0_3 = arith.constant 0 : index
    %c0_4 = arith.constant 0 : index
    %4 = vector.load %arg9[%c0_2, %c0_3, %c0_4] : memref<1x128x384xbf16, #tpu.memory_space<vmem>>, vector<1x128x384xbf16>
    %5 = vector.shape_cast %4 : vector<1x128x384xbf16> to vector<128x384xbf16>
    %cst = arith.constant dense<0.000000e+00> : vector<32x384xf32>
    %6 = tpu.matmul %3, %5, %cst {dimension_numbers = #tpu.dot_dimension_numbers<[1], [0], [0], [1], [0, 0, 1, 1], [], []>} : vector<32x128xbf16>, vector<128x384xbf16>, vector<32x384xf32> -> vector<32x384xf32>
    %c0_5 = arith.constant 0 : index
    %c0_6 = arith.constant 0 : index
    %c0_7 = arith.constant 0 : index
    %7 = vector.load %arg10[%c0_5, %c0_6, %c0_7] : memref<1x1x384xbf16, #tpu.memory_space<vmem>>, vector<1x1x384xbf16>
    %8 = vector.shape_cast %7 : vector<1x1x384xbf16> to vector<1x384xbf16>
    %9 = arith.extf %8 : vector<1x384xbf16> to vector<1x384xf32>
    %10 = vector.broadcast %9 : vector<1x384xf32> to vector<32x384xf32>
    %11 = arith.addf %6, %10 : vector<32x384xf32>
    %12 = vector.extract_strided_slice %11 {offsets = [0, 0], sizes = [32, 128], strides = [1, 1]} : vector<32x384xf32> to vector<32x128xf32>
    %13 = arith.truncf %12 : vector<32x128xf32> to vector<32x128xbf16>
    %14 = vector.extract_strided_slice %11 {offsets = [0, 128], sizes = [32, 128], strides = [1, 1]} : vector<32x384xf32> to vector<32x128xf32>
    %15 = arith.truncf %14 : vector<32x128xf32> to vector<32x128xbf16>
    %16 = vector.extract_strided_slice %11 {offsets = [0, 256], sizes = [32, 128], strides = [1, 1]} : vector<32x384xf32> to vector<32x128xf32>
    %17 = arith.truncf %16 : vector<32x128xf32> to vector<32x128xbf16>
    %c0_8 = arith.constant 0 : index
    %c0_9 = arith.constant 0 : index
    %18 = vector.load %arg3[%c0_8, %c0_9] : memref<2x16xi32, #tpu.memory_space<vmem>>, vector<2x16xi32>
    %19 = arith.sitofp %18 : vector<2x16xi32> to vector<2x16xf32>
    %cst_10 = arith.constant 1.000000e+00 : f32
    %20 = vector.broadcast %cst_10 : f32 to vector<2x16xf32>
    %21 = arith.subf %20, %19 : vector<2x16xf32>
    %cst_11 = arith.constant -1.000000e+09 : f32
    %22 = vector.broadcast %cst_11 : f32 to vector<2x16xf32>
    %23 = arith.mulf %21, %22 : vector<2x16xf32>
    %24 = vector.extract_strided_slice %23 {offsets = [0, 0], sizes = [1, 16], strides = [1, 1]} : vector<2x16xf32> to vector<1x16xf32>
    %25 = vector.extract_strided_slice %13 {offsets = [0, 0], sizes = [16, 32], strides = [1, 1]} : vector<32x128xbf16> to vector<16x32xbf16>
    %26 = vector.extract_strided_slice %15 {offsets = [0, 0], sizes = [16, 32], strides = [1, 1]} : vector<32x128xbf16> to vector<16x32xbf16>
    %27 = vector.extract_strided_slice %17 {offsets = [0, 0], sizes = [16, 32], strides = [1, 1]} : vector<32x128xbf16> to vector<16x32xbf16>
    %cst_12 = arith.constant dense<0.000000e+00> : vector<16x16xf32>
    %28 = tpu.matmul %25, %26, %cst_12 {dimension_numbers = #tpu.dot_dimension_numbers<[1], [1], [0], [0], [0, 0, 1, 0], [], []>} : vector<16x32xbf16>, vector<16x32xbf16>, vector<16x16xf32> -> vector<16x16xf32>
    %cst_13 = arith.constant 0.176776692 : f32
    %29 = vector.broadcast %cst_13 : f32 to vector<16x16xf32>
    %30 = arith.mulf %28, %29 : vector<16x16xf32>
    %31 = vector.broadcast %24 : vector<1x16xf32> to vector<16x16xf32>
    %32 = arith.addf %30, %31 : vector<16x16xf32>
    %cst_14 = arith.constant dense<0xFF800000> : vector<16xf32>
    %33 = vector.multi_reduction <maximumf>, %32, %cst_14 [1] : vector<16x16xf32> to vector<16xf32>
    %34 = vector.shape_cast %33 : vector<16xf32> to vector<16x1xf32>
    %35 = vector.broadcast %34 : vector<16x1xf32> to vector<16x16xf32>
    %36 = arith.subf %32, %35 : vector<16x16xf32>
    %37 = math.exp %36 : vector<16x16xf32>
    %cst_15 = arith.constant dense<0.000000e+00> : vector<16xf32>
    %38 = vector.multi_reduction <add>, %37, %cst_15 [1] : vector<16x16xf32> to vector<16xf32>
    %39 = vector.shape_cast %38 : vector<16xf32> to vector<16x1xf32>
    %40 = tpu.reciprocal %39 {approx = true} : vector<16x1xf32> -> vector<16x1xf32>
    %41 = vector.broadcast %40 : vector<16x1xf32> to vector<16x16xf32>
    %42 = arith.mulf %37, %41 : vector<16x16xf32>
    %43 = arith.truncf %42 : vector<16x16xf32> to vector<16x16xbf16>
    %cst_16 = arith.constant dense<0.000000e+00> : vector<16x32xf32>
    %44 = tpu.matmul %43, %27, %cst_16 {dimension_numbers = #tpu.dot_dimension_numbers<[1], [0], [0], [1], [0, 0, 1, 1], [], []>} : vector<16x16xbf16>, vector<16x32xbf16>, vector<16x32xf32> -> vector<16x32xf32>
    %45 = vector.extract_strided_slice %13 {offsets = [0, 32], sizes = [16, 32], strides = [1, 1]} : vector<32x128xbf16> to vector<16x32xbf16>
    %46 = vector.extract_strided_slice %15 {offsets = [0, 32], sizes = [16, 32], strides = [1, 1]} : vector<32x128xbf16> to vector<16x32xbf16>
    %47 = vector.extract_strided_slice %17 {offsets = [0, 32], sizes = [16, 32], strides = [1, 1]} : vector<32x128xbf16> to vector<16x32xbf16>
    %cst_17 = arith.constant dense<0.000000e+00> : vector<16x16xf32>
    %48 = tpu.matmul %45, %46, %cst_17 {dimension_numbers = #tpu.dot_dimension_numbers<[1], [1], [0], [0], [0, 0, 1, 0], [], []>} : vector<16x32xbf16>, vector<16x32xbf16>, vector<16x16xf32> -> vector<16x16xf32>
    %cst_18 = arith.constant 0.176776692 : f32
    %49 = vector.broadcast %cst_18 : f32 to vector<16x16xf32>
    %50 = arith.mulf %48, %49 : vector<16x16xf32>
    %51 = vector.broadcast %24 : vector<1x16xf32> to vector<16x16xf32>
    %52 = arith.addf %50, %51 : vector<16x16xf32>
    %cst_19 = arith.constant dense<0xFF800000> : vector<16xf32>
    %53 = vector.multi_reduction <maximumf>, %52, %cst_19 [1] : vector<16x16xf32> to vector<16xf32>
    %54 = vector.shape_cast %53 : vector<16xf32> to vector<16x1xf32>
    %55 = vector.broadcast %54 : vector<16x1xf32> to vector<16x16xf32>
    %56 = arith.subf %52, %55 : vector<16x16xf32>
    %57 = math.exp %56 : vector<16x16xf32>
    %cst_20 = arith.constant dense<0.000000e+00> : vector<16xf32>
    %58 = vector.multi_reduction <add>, %57, %cst_20 [1] : vector<16x16xf32> to vector<16xf32>
    %59 = vector.shape_cast %58 : vector<16xf32> to vector<16x1xf32>
    %60 = tpu.reciprocal %59 {approx = true} : vector<16x1xf32> -> vector<16x1xf32>
    %61 = vector.broadcast %60 : vector<16x1xf32> to vector<16x16xf32>
    %62 = arith.mulf %57, %61 : vector<16x16xf32>
    %63 = arith.truncf %62 : vector<16x16xf32> to vector<16x16xbf16>
    %cst_21 = arith.constant dense<0.000000e+00> : vector<16x32xf32>
    %64 = tpu.matmul %63, %47, %cst_21 {dimension_numbers = #tpu.dot_dimension_numbers<[1], [0], [0], [1], [0, 0, 1, 1], [], []>} : vector<16x16xbf16>, vector<16x32xbf16>, vector<16x32xf32> -> vector<16x32xf32>
    %65 = vector.extract_strided_slice %13 {offsets = [0, 64], sizes = [16, 32], strides = [1, 1]} : vector<32x128xbf16> to vector<16x32xbf16>
    %66 = vector.extract_strided_slice %15 {offsets = [0, 64], sizes = [16, 32], strides = [1, 1]} : vector<32x128xbf16> to vector<16x32xbf16>
    %67 = vector.extract_strided_slice %17 {offsets = [0, 64], sizes = [16, 32], strides = [1, 1]} : vector<32x128xbf16> to vector<16x32xbf16>
    %cst_22 = arith.constant dense<0.000000e+00> : vector<16x16xf32>
    %68 = tpu.matmul %65, %66, %cst_22 {dimension_numbers = #tpu.dot_dimension_numbers<[1], [1], [0], [0], [0, 0, 1, 0], [], []>} : vector<16x32xbf16>, vector<16x32xbf16>, vector<16x16xf32> -> vector<16x16xf32>
    %cst_23 = arith.constant 0.176776692 : f32
    %69 = vector.broadcast %cst_23 : f32 to vector<16x16xf32>
    %70 = arith.mulf %68, %69 : vector<16x16xf32>
    %71 = vector.broadcast %24 : vector<1x16xf32> to vector<16x16xf32>
    %72 = arith.addf %70, %71 : vector<16x16xf32>
    %cst_24 = arith.constant dense<0xFF800000> : vector<16xf32>
    %73 = vector.multi_reduction <maximumf>, %72, %cst_24 [1] : vector<16x16xf32> to vector<16xf32>
    %74 = vector.shape_cast %73 : vector<16xf32> to vector<16x1xf32>
    %75 = vector.broadcast %74 : vector<16x1xf32> to vector<16x16xf32>
    %76 = arith.subf %72, %75 : vector<16x16xf32>
    %77 = math.exp %76 : vector<16x16xf32>
    %cst_25 = arith.constant dense<0.000000e+00> : vector<16xf32>
    %78 = vector.multi_reduction <add>, %77, %cst_25 [1] : vector<16x16xf32> to vector<16xf32>
    %79 = vector.shape_cast %78 : vector<16xf32> to vector<16x1xf32>
    %80 = tpu.reciprocal %79 {approx = true} : vector<16x1xf32> -> vector<16x1xf32>
    %81 = vector.broadcast %80 : vector<16x1xf32> to vector<16x16xf32>
    %82 = arith.mulf %77, %81 : vector<16x16xf32>
    %83 = arith.truncf %82 : vector<16x16xf32> to vector<16x16xbf16>
    %cst_26 = arith.constant dense<0.000000e+00> : vector<16x32xf32>
    %84 = tpu.matmul %83, %67, %cst_26 {dimension_numbers = #tpu.dot_dimension_numbers<[1], [0], [0], [1], [0, 0, 1, 1], [], []>} : vector<16x16xbf16>, vector<16x32xbf16>, vector<16x32xf32> -> vector<16x32xf32>
    %85 = vector.extract_strided_slice %13 {offsets = [0, 96], sizes = [16, 32], strides = [1, 1]} : vector<32x128xbf16> to vector<16x32xbf16>
    %86 = vector.extract_strided_slice %15 {offsets = [0, 96], sizes = [16, 32], strides = [1, 1]} : vector<32x128xbf16> to vector<16x32xbf16>
    %87 = vector.extract_strided_slice %17 {offsets = [0, 96], sizes = [16, 32], strides = [1, 1]} : vector<32x128xbf16> to vector<16x32xbf16>
    %cst_27 = arith.constant dense<0.000000e+00> : vector<16x16xf32>
    %88 = tpu.matmul %85, %86, %cst_27 {dimension_numbers = #tpu.dot_dimension_numbers<[1], [1], [0], [0], [0, 0, 1, 0], [], []>} : vector<16x32xbf16>, vector<16x32xbf16>, vector<16x16xf32> -> vector<16x16xf32>
    %cst_28 = arith.constant 0.176776692 : f32
    %89 = vector.broadcast %cst_28 : f32 to vector<16x16xf32>
    %90 = arith.mulf %88, %89 : vector<16x16xf32>
    %91 = vector.broadcast %24 : vector<1x16xf32> to vector<16x16xf32>
    %92 = arith.addf %90, %91 : vector<16x16xf32>
    %cst_29 = arith.constant dense<0xFF800000> : vector<16xf32>
    %93 = vector.multi_reduction <maximumf>, %92, %cst_29 [1] : vector<16x16xf32> to vector<16xf32>
    %94 = vector.shape_cast %93 : vector<16xf32> to vector<16x1xf32>
    %95 = vector.broadcast %94 : vector<16x1xf32> to vector<16x16xf32>
    %96 = arith.subf %92, %95 : vector<16x16xf32>
    %97 = math.exp %96 : vector<16x16xf32>
    %cst_30 = arith.constant dense<0.000000e+00> : vector<16xf32>
    %98 = vector.multi_reduction <add>, %97, %cst_30 [1] : vector<16x16xf32> to vector<16xf32>
    %99 = vector.shape_cast %98 : vector<16xf32> to vector<16x1xf32>
    %100 = tpu.reciprocal %99 {approx = true} : vector<16x1xf32> -> vector<16x1xf32>
    %101 = vector.broadcast %100 : vector<16x1xf32> to vector<16x16xf32>
    %102 = arith.mulf %97, %101 : vector<16x16xf32>
    %103 = arith.truncf %102 : vector<16x16xf32> to vector<16x16xbf16>
    %cst_31 = arith.constant dense<0.000000e+00> : vector<16x32xf32>
    %104 = tpu.matmul %103, %87, %cst_31 {dimension_numbers = #tpu.dot_dimension_numbers<[1], [0], [0], [1], [0, 0, 1, 1], [], []>} : vector<16x16xbf16>, vector<16x32xbf16>, vector<16x32xf32> -> vector<16x32xf32>
    %105 = tpu.concatenate %44, %64, %84, %104 in 1 : vector<16x32xf32>, vector<16x32xf32>, vector<16x32xf32>, vector<16x32xf32> -> vector<16x128xf32>
    %106 = vector.extract_strided_slice %23 {offsets = [1, 0], sizes = [1, 16], strides = [1, 1]} : vector<2x16xf32> to vector<1x16xf32>
    %107 = vector.extract_strided_slice %13 {offsets = [16, 0], sizes = [16, 32], strides = [1, 1]} : vector<32x128xbf16> to vector<16x32xbf16>
    %108 = vector.extract_strided_slice %15 {offsets = [16, 0], sizes = [16, 32], strides = [1, 1]} : vector<32x128xbf16> to vector<16x32xbf16>
    %109 = vector.extract_strided_slice %17 {offsets = [16, 0], sizes = [16, 32], strides = [1, 1]} : vector<32x128xbf16> to vector<16x32xbf16>
    %cst_32 = arith.constant dense<0.000000e+00> : vector<16x16xf32>
    %110 = tpu.matmul %107, %108, %cst_32 {dimension_numbers = #tpu.dot_dimension_numbers<[1], [1], [0], [0], [0, 0, 1, 0], [], []>} : vector<16x32xbf16>, vector<16x32xbf16>, vector<16x16xf32> -> vector<16x16xf32>
    %cst_33 = arith.constant 0.176776692 : f32
    %111 = vector.broadcast %cst_33 : f32 to vector<16x16xf32>
    %112 = arith.mulf %110, %111 : vector<16x16xf32>
    %113 = vector.broadcast %106 : vector<1x16xf32> to vector<16x16xf32>
    %114 = arith.addf %112, %113 : vector<16x16xf32>
    %cst_34 = arith.constant dense<0xFF800000> : vector<16xf32>
    %115 = vector.multi_reduction <maximumf>, %114, %cst_34 [1] : vector<16x16xf32> to vector<16xf32>
    %116 = vector.shape_cast %115 : vector<16xf32> to vector<16x1xf32>
    %117 = vector.broadcast %116 : vector<16x1xf32> to vector<16x16xf32>
    %118 = arith.subf %114, %117 : vector<16x16xf32>
    %119 = math.exp %118 : vector<16x16xf32>
    %cst_35 = arith.constant dense<0.000000e+00> : vector<16xf32>
    %120 = vector.multi_reduction <add>, %119, %cst_35 [1] : vector<16x16xf32> to vector<16xf32>
    %121 = vector.shape_cast %120 : vector<16xf32> to vector<16x1xf32>
    %122 = tpu.reciprocal %121 {approx = true} : vector<16x1xf32> -> vector<16x1xf32>
    %123 = vector.broadcast %122 : vector<16x1xf32> to vector<16x16xf32>
    %124 = arith.mulf %119, %123 : vector<16x16xf32>
    %125 = arith.truncf %124 : vector<16x16xf32> to vector<16x16xbf16>
    %cst_36 = arith.constant dense<0.000000e+00> : vector<16x32xf32>
    %126 = tpu.matmul %125, %109, %cst_36 {dimension_numbers = #tpu.dot_dimension_numbers<[1], [0], [0], [1], [0, 0, 1, 1], [], []>} : vector<16x16xbf16>, vector<16x32xbf16>, vector<16x32xf32> -> vector<16x32xf32>
    %127 = vector.extract_strided_slice %13 {offsets = [16, 32], sizes = [16, 32], strides = [1, 1]} : vector<32x128xbf16> to vector<16x32xbf16>
    %128 = vector.extract_strided_slice %15 {offsets = [16, 32], sizes = [16, 32], strides = [1, 1]} : vector<32x128xbf16> to vector<16x32xbf16>
    %129 = vector.extract_strided_slice %17 {offsets = [16, 32], sizes = [16, 32], strides = [1, 1]} : vector<32x128xbf16> to vector<16x32xbf16>
    %cst_37 = arith.constant dense<0.000000e+00> : vector<16x16xf32>
    %130 = tpu.matmul %127, %128, %cst_37 {dimension_numbers = #tpu.dot_dimension_numbers<[1], [1], [0], [0], [0, 0, 1, 0], [], []>} : vector<16x32xbf16>, vector<16x32xbf16>, vector<16x16xf32> -> vector<16x16xf32>
    %cst_38 = arith.constant 0.176776692 : f32
    %131 = vector.broadcast %cst_38 : f32 to vector<16x16xf32>
    %132 = arith.mulf %130, %131 : vector<16x16xf32>
    %133 = vector.broadcast %106 : vector<1x16xf32> to vector<16x16xf32>
    %134 = arith.addf %132, %133 : vector<16x16xf32>
    %cst_39 = arith.constant dense<0xFF800000> : vector<16xf32>
    %135 = vector.multi_reduction <maximumf>, %134, %cst_39 [1] : vector<16x16xf32> to vector<16xf32>
    %136 = vector.shape_cast %135 : vector<16xf32> to vector<16x1xf32>
    %137 = vector.broadcast %136 : vector<16x1xf32> to vector<16x16xf32>
    %138 = arith.subf %134, %137 : vector<16x16xf32>
    %139 = math.exp %138 : vector<16x16xf32>
    %cst_40 = arith.constant dense<0.000000e+00> : vector<16xf32>
    %140 = vector.multi_reduction <add>, %139, %cst_40 [1] : vector<16x16xf32> to vector<16xf32>
    %141 = vector.shape_cast %140 : vector<16xf32> to vector<16x1xf32>
    %142 = tpu.reciprocal %141 {approx = true} : vector<16x1xf32> -> vector<16x1xf32>
    %143 = vector.broadcast %142 : vector<16x1xf32> to vector<16x16xf32>
    %144 = arith.mulf %139, %143 : vector<16x16xf32>
    %145 = arith.truncf %144 : vector<16x16xf32> to vector<16x16xbf16>
    %cst_41 = arith.constant dense<0.000000e+00> : vector<16x32xf32>
    %146 = tpu.matmul %145, %129, %cst_41 {dimension_numbers = #tpu.dot_dimension_numbers<[1], [0], [0], [1], [0, 0, 1, 1], [], []>} : vector<16x16xbf16>, vector<16x32xbf16>, vector<16x32xf32> -> vector<16x32xf32>
    %147 = vector.extract_strided_slice %13 {offsets = [16, 64], sizes = [16, 32], strides = [1, 1]} : vector<32x128xbf16> to vector<16x32xbf16>
    %148 = vector.extract_strided_slice %15 {offsets = [16, 64], sizes = [16, 32], strides = [1, 1]} : vector<32x128xbf16> to vector<16x32xbf16>
    %149 = vector.extract_strided_slice %17 {offsets = [16, 64], sizes = [16, 32], strides = [1, 1]} : vector<32x128xbf16> to vector<16x32xbf16>
    %cst_42 = arith.constant dense<0.000000e+00> : vector<16x16xf32>
    %150 = tpu.matmul %147, %148, %cst_42 {dimension_numbers = #tpu.dot_dimension_numbers<[1], [1], [0], [0], [0, 0, 1, 0], [], []>} : vector<16x32xbf16>, vector<16x32xbf16>, vector<16x16xf32> -> vector<16x16xf32>
    %cst_43 = arith.constant 0.176776692 : f32
    %151 = vector.broadcast %cst_43 : f32 to vector<16x16xf32>
    %152 = arith.mulf %150, %151 : vector<16x16xf32>
    %153 = vector.broadcast %106 : vector<1x16xf32> to vector<16x16xf32>
    %154 = arith.addf %152, %153 : vector<16x16xf32>
    %cst_44 = arith.constant dense<0xFF800000> : vector<16xf32>
    %155 = vector.multi_reduction <maximumf>, %154, %cst_44 [1] : vector<16x16xf32> to vector<16xf32>
    %156 = vector.shape_cast %155 : vector<16xf32> to vector<16x1xf32>
    %157 = vector.broadcast %156 : vector<16x1xf32> to vector<16x16xf32>
    %158 = arith.subf %154, %157 : vector<16x16xf32>
    %159 = math.exp %158 : vector<16x16xf32>
    %cst_45 = arith.constant dense<0.000000e+00> : vector<16xf32>
    %160 = vector.multi_reduction <add>, %159, %cst_45 [1] : vector<16x16xf32> to vector<16xf32>
    %161 = vector.shape_cast %160 : vector<16xf32> to vector<16x1xf32>
    %162 = tpu.reciprocal %161 {approx = true} : vector<16x1xf32> -> vector<16x1xf32>
    %163 = vector.broadcast %162 : vector<16x1xf32> to vector<16x16xf32>
    %164 = arith.mulf %159, %163 : vector<16x16xf32>
    %165 = arith.truncf %164 : vector<16x16xf32> to vector<16x16xbf16>
    %cst_46 = arith.constant dense<0.000000e+00> : vector<16x32xf32>
    %166 = tpu.matmul %165, %149, %cst_46 {dimension_numbers = #tpu.dot_dimension_numbers<[1], [0], [0], [1], [0, 0, 1, 1], [], []>} : vector<16x16xbf16>, vector<16x32xbf16>, vector<16x32xf32> -> vector<16x32xf32>
    %167 = vector.extract_strided_slice %13 {offsets = [16, 96], sizes = [16, 32], strides = [1, 1]} : vector<32x128xbf16> to vector<16x32xbf16>
    %168 = vector.extract_strided_slice %15 {offsets = [16, 96], sizes = [16, 32], strides = [1, 1]} : vector<32x128xbf16> to vector<16x32xbf16>
    %169 = vector.extract_strided_slice %17 {offsets = [16, 96], sizes = [16, 32], strides = [1, 1]} : vector<32x128xbf16> to vector<16x32xbf16>
    %cst_47 = arith.constant dense<0.000000e+00> : vector<16x16xf32>
    %170 = tpu.matmul %167, %168, %cst_47 {dimension_numbers = #tpu.dot_dimension_numbers<[1], [1], [0], [0], [0, 0, 1, 0], [], []>} : vector<16x32xbf16>, vector<16x32xbf16>, vector<16x16xf32> -> vector<16x16xf32>
    %cst_48 = arith.constant 0.176776692 : f32
    %171 = vector.broadcast %cst_48 : f32 to vector<16x16xf32>
    %172 = arith.mulf %170, %171 : vector<16x16xf32>
    %173 = vector.broadcast %106 : vector<1x16xf32> to vector<16x16xf32>
    %174 = arith.addf %172, %173 : vector<16x16xf32>
    %cst_49 = arith.constant dense<0xFF800000> : vector<16xf32>
    %175 = vector.multi_reduction <maximumf>, %174, %cst_49 [1] : vector<16x16xf32> to vector<16xf32>
    %176 = vector.shape_cast %175 : vector<16xf32> to vector<16x1xf32>
    %177 = vector.broadcast %176 : vector<16x1xf32> to vector<16x16xf32>
    %178 = arith.subf %174, %177 : vector<16x16xf32>
    %179 = math.exp %178 : vector<16x16xf32>
    %cst_50 = arith.constant dense<0.000000e+00> : vector<16xf32>
    %180 = vector.multi_reduction <add>, %179, %cst_50 [1] : vector<16x16xf32> to vector<16xf32>
    %181 = vector.shape_cast %180 : vector<16xf32> to vector<16x1xf32>
    %182 = tpu.reciprocal %181 {approx = true} : vector<16x1xf32> -> vector<16x1xf32>
    %183 = vector.broadcast %182 : vector<16x1xf32> to vector<16x16xf32>
    %184 = arith.mulf %179, %183 : vector<16x16xf32>
    %185 = arith.truncf %184 : vector<16x16xf32> to vector<16x16xbf16>
    %cst_51 = arith.constant dense<0.000000e+00> : vector<16x32xf32>
    %186 = tpu.matmul %185, %169, %cst_51 {dimension_numbers = #tpu.dot_dimension_numbers<[1], [0], [0], [1], [0, 0, 1, 1], [], []>} : vector<16x16xbf16>, vector<16x32xbf16>, vector<16x32xf32> -> vector<16x32xf32>
    %187 = tpu.concatenate %126, %146, %166, %186 in 1 : vector<16x32xf32>, vector<16x32xf32>, vector<16x32xf32>, vector<16x32xf32> -> vector<16x128xf32>
    %188 = tpu.concatenate %105, %187 in 0 : vector<16x128xf32>, vector<16x128xf32> -> vector<32x128xf32>
    %189 = arith.truncf %188 : vector<32x128xf32> to vector<32x128xbf16>
    %c0_52 = arith.constant 0 : index
    %c0_53 = arith.constant 0 : index
    %c0_54 = arith.constant 0 : index
    %190 = vector.load %arg11[%c0_52, %c0_53, %c0_54] : memref<1x128x128xbf16, #tpu.memory_space<vmem>>, vector<1x128x128xbf16>
    %191 = vector.shape_cast %190 : vector<1x128x128xbf16> to vector<128x128xbf16>
    %cst_55 = arith.constant dense<0.000000e+00> : vector<32x128xf32>
    %192 = tpu.matmul %189, %191, %cst_55 {dimension_numbers = #tpu.dot_dimension_numbers<[1], [0], [0], [1], [0, 0, 1, 1], [], []>} : vector<32x128xbf16>, vector<128x128xbf16>, vector<32x128xf32> -> vector<32x128xf32>
    %c0_56 = arith.constant 0 : index
    %c0_57 = arith.constant 0 : index
    %c0_58 = arith.constant 0 : index
    %193 = vector.load %arg12[%c0_56, %c0_57, %c0_58] : memref<1x1x128xbf16, #tpu.memory_space<vmem>>, vector<1x1x128xbf16>
    %194 = vector.shape_cast %193 : vector<1x1x128xbf16> to vector<1x128xbf16>
    %195 = arith.extf %194 : vector<1x128xbf16> to vector<1x128xf32>
    %196 = vector.broadcast %195 : vector<1x128xf32> to vector<32x128xf32>
    %197 = arith.addf %192, %196 : vector<32x128xf32>
    %198 = arith.extf %3 : vector<32x128xbf16> to vector<32x128xf32>
    %199 = arith.addf %197, %198 : vector<32x128xf32>
    %c0_59 = arith.constant 0 : index
    %c0_60 = arith.constant 0 : index
    %c0_61 = arith.constant 0 : index
    %200 = vector.load %arg13[%c0_59, %c0_60, %c0_61] : memref<1x1x128xbf16, #tpu.memory_space<vmem>>, vector<1x1x128xbf16>
    %201 = vector.shape_cast %200 : vector<1x1x128xbf16> to vector<1x128xbf16>
    %c0_62 = arith.constant 0 : index
    %c0_63 = arith.constant 0 : index
    %c0_64 = arith.constant 0 : index
    %202 = vector.load %arg14[%c0_62, %c0_63, %c0_64] : memref<1x1x128xbf16, #tpu.memory_space<vmem>>, vector<1x1x128xbf16>
    %203 = vector.shape_cast %202 : vector<1x1x128xbf16> to vector<1x128xbf16>
    %cst_65 = arith.constant dense<0.000000e+00> : vector<32xf32>
    %204 = vector.multi_reduction <add>, %199, %cst_65 [1] : vector<32x128xf32> to vector<32xf32>
    %205 = vector.shape_cast %204 : vector<32xf32> to vector<32x1xf32>
    %cst_66 = arith.constant 1.280000e+02 : f32
    %206 = vector.broadcast %cst_66 : f32 to vector<32x1xf32>
    %207 = arith.divf %205, %206 : vector<32x1xf32>
    %208 = vector.broadcast %207 : vector<32x1xf32> to vector<32x128xf32>
    %209 = arith.subf %199, %208 : vector<32x128xf32>
    %210 = arith.mulf %209, %209 : vector<32x128xf32>
    %cst_67 = arith.constant dense<0.000000e+00> : vector<32xf32>
    %211 = vector.multi_reduction <add>, %210, %cst_67 [1] : vector<32x128xf32> to vector<32xf32>
    %212 = vector.shape_cast %211 : vector<32xf32> to vector<32x1xf32>
    %cst_68 = arith.constant 1.280000e+02 : f32
    %213 = vector.broadcast %cst_68 : f32 to vector<32x1xf32>
    %214 = arith.divf %212, %213 : vector<32x1xf32>
    %215 = vector.broadcast %207 : vector<32x1xf32> to vector<32x128xf32>
    %216 = arith.subf %199, %215 : vector<32x128xf32>
    %cst_69 = arith.constant 9.99999974E-6 : f32
    %217 = vector.broadcast %cst_69 : f32 to vector<32x1xf32>
    %218 = arith.addf %214, %217 : vector<32x1xf32>
    %219 = math.rsqrt %218 : vector<32x1xf32>
    %220 = vector.broadcast %219 : vector<32x1xf32> to vector<32x128xf32>
    %221 = arith.mulf %216, %220 : vector<32x128xf32>
    %222 = arith.extf %201 : vector<1x128xbf16> to vector<1x128xf32>
    %223 = vector.broadcast %222 : vector<1x128xf32> to vector<32x128xf32>
    %224 = arith.mulf %221, %223 : vector<32x128xf32>
    %225 = arith.extf %203 : vector<1x128xbf16> to vector<1x128xf32>
    %226 = vector.broadcast %225 : vector<1x128xf32> to vector<32x128xf32>
    %227 = arith.addf %224, %226 : vector<32x128xf32>
    %228 = arith.truncf %227 : vector<32x128xf32> to vector<32x128xbf16>
    %c0_70 = arith.constant 0 : index
    %c0_71 = arith.constant 0 : index
    %c0_72 = arith.constant 0 : index
    %229 = vector.load %arg15[%c0_70, %c0_71, %c0_72] : memref<1x128x256xbf16, #tpu.memory_space<vmem>>, vector<1x128x256xbf16>
    %230 = vector.shape_cast %229 : vector<1x128x256xbf16> to vector<128x256xbf16>
    %cst_73 = arith.constant dense<0.000000e+00> : vector<32x256xf32>
    %231 = tpu.matmul %228, %230, %cst_73 {dimension_numbers = #tpu.dot_dimension_numbers<[1], [0], [0], [1], [0, 0, 1, 1], [], []>} : vector<32x128xbf16>, vector<128x256xbf16>, vector<32x256xf32> -> vector<32x256xf32>
    %c0_74 = arith.constant 0 : index
    %c0_75 = arith.constant 0 : index
    %c0_76 = arith.constant 0 : index
    %232 = vector.load %arg16[%c0_74, %c0_75, %c0_76] : memref<1x1x256xbf16, #tpu.memory_space<vmem>>, vector<1x1x256xbf16>
    %233 = vector.shape_cast %232 : vector<1x1x256xbf16> to vector<1x256xbf16>
    %234 = arith.extf %233 : vector<1x256xbf16> to vector<1x256xf32>
    %235 = vector.broadcast %234 : vector<1x256xf32> to vector<32x256xf32>
    %236 = arith.addf %231, %235 : vector<32x256xf32>
    %cst_77 = arith.constant 5.000000e-01 : f32
    %237 = vector.broadcast %cst_77 : f32 to vector<32x256xf32>
    %238 = arith.mulf %237, %236 : vector<32x256xf32>
    %cst_78 = arith.constant 4.471500e-02 : f32
    %239 = vector.broadcast %cst_78 : f32 to vector<32x256xf32>
    %240 = arith.mulf %239, %236 : vector<32x256xf32>
    %241 = arith.mulf %240, %236 : vector<32x256xf32>
    %242 = arith.mulf %241, %236 : vector<32x256xf32>
    %243 = arith.addf %236, %242 : vector<32x256xf32>
    %cst_79 = arith.constant 0.797884583 : f32
    %244 = vector.broadcast %cst_79 : f32 to vector<32x256xf32>
    %245 = arith.mulf %244, %243 : vector<32x256xf32>
    %246 = math.tanh %245 : vector<32x256xf32>
    %cst_80 = arith.constant 1.000000e+00 : f32
    %247 = vector.broadcast %cst_80 : f32 to vector<32x256xf32>
    %248 = arith.addf %247, %246 : vector<32x256xf32>
    %249 = arith.mulf %238, %248 : vector<32x256xf32>
    %250 = arith.truncf %249 : vector<32x256xf32> to vector<32x256xbf16>
    %c0_81 = arith.constant 0 : index
    %c0_82 = arith.constant 0 : index
    %c0_83 = arith.constant 0 : index
    %251 = vector.load %arg17[%c0_81, %c0_82, %c0_83] : memref<1x256x128xbf16, #tpu.memory_space<vmem>>, vector<1x256x128xbf16>
    %252 = vector.shape_cast %251 : vector<1x256x128xbf16> to vector<256x128xbf16>
    %cst_84 = arith.constant dense<0.000000e+00> : vector<32x128xf32>
    %253 = tpu.matmul %250, %252, %cst_84 {dimension_numbers = #tpu.dot_dimension_numbers<[1], [0], [0], [1], [0, 0, 1, 1], [], []>} : vector<32x256xbf16>, vector<256x128xbf16>, vector<32x128xf32> -> vector<32x128xf32>
    %c0_85 = arith.constant 0 : index
    %c0_86 = arith.constant 0 : index
    %c0_87 = arith.constant 0 : index
    %254 = vector.load %arg18[%c0_85, %c0_86, %c0_87] : memref<1x1x128xbf16, #tpu.memory_space<vmem>>, vector<1x1x128xbf16>
    %255 = vector.shape_cast %254 : vector<1x1x128xbf16> to vector<1x128xbf16>
    %256 = arith.extf %255 : vector<1x128xbf16> to vector<1x128xf32>
    %257 = vector.broadcast %256 : vector<1x128xf32> to vector<32x128xf32>
    %258 = arith.addf %253, %257 : vector<32x128xf32>
    %259 = arith.addf %258, %227 : vector<32x128xf32>
    %c0_88 = arith.constant 0 : index
    %c0_89 = arith.constant 0 : index
    %c0_90 = arith.constant 0 : index
    %260 = vector.load %arg19[%c0_88, %c0_89, %c0_90] : memref<1x1x128xbf16, #tpu.memory_space<vmem>>, vector<1x1x128xbf16>
    %261 = vector.shape_cast %260 : vector<1x1x128xbf16> to vector<1x128xbf16>
    %c0_91 = arith.constant 0 : index
    %c0_92 = arith.constant 0 : index
    %c0_93 = arith.constant 0 : index
    %262 = vector.load %arg20[%c0_91, %c0_92, %c0_93] : memref<1x1x128xbf16, #tpu.memory_space<vmem>>, vector<1x1x128xbf16>
    %263 = vector.shape_cast %262 : vector<1x1x128xbf16> to vector<1x128xbf16>
    %cst_94 = arith.constant dense<0.000000e+00> : vector<32xf32>
    %264 = vector.multi_reduction <add>, %259, %cst_94 [1] : vector<32x128xf32> to vector<32xf32>
    %265 = vector.shape_cast %264 : vector<32xf32> to vector<32x1xf32>
    %cst_95 = arith.constant 1.280000e+02 : f32
    %266 = vector.broadcast %cst_95 : f32 to vector<32x1xf32>
    %267 = arith.divf %265, %266 : vector<32x1xf32>
    %268 = vector.broadcast %267 : vector<32x1xf32> to vector<32x128xf32>
    %269 = arith.subf %259, %268 : vector<32x128xf32>
    %270 = arith.mulf %269, %269 : vector<32x128xf32>
    %cst_96 = arith.constant dense<0.000000e+00> : vector<32xf32>
    %271 = vector.multi_reduction <add>, %270, %cst_96 [1] : vector<32x128xf32> to vector<32xf32>
    %272 = vector.shape_cast %271 : vector<32xf32> to vector<32x1xf32>
    %cst_97 = arith.constant 1.280000e+02 : f32
    %273 = vector.broadcast %cst_97 : f32 to vector<32x1xf32>
    %274 = arith.divf %272, %273 : vector<32x1xf32>
    %275 = vector.broadcast %267 : vector<32x1xf32> to vector<32x128xf32>
    %276 = arith.subf %259, %275 : vector<32x128xf32>
    %cst_98 = arith.constant 9.99999974E-6 : f32
    %277 = vector.broadcast %cst_98 : f32 to vector<32x1xf32>
    %278 = arith.addf %274, %277 : vector<32x1xf32>
    %279 = math.rsqrt %278 : vector<32x1xf32>
    %280 = vector.broadcast %279 : vector<32x1xf32> to vector<32x128xf32>
    %281 = arith.mulf %276, %280 : vector<32x128xf32>
    %282 = arith.extf %261 : vector<1x128xbf16> to vector<1x128xf32>
    %283 = vector.broadcast %282 : vector<1x128xf32> to vector<32x128xf32>
    %284 = arith.mulf %281, %283 : vector<32x128xf32>
    %285 = arith.extf %263 : vector<1x128xbf16> to vector<1x128xf32>
    %286 = vector.broadcast %285 : vector<1x128xf32> to vector<32x128xf32>
    %287 = arith.addf %284, %286 : vector<32x128xf32>
    %288 = arith.truncf %287 : vector<32x128xf32> to vector<32x128xbf16>
    %c0_99 = arith.constant 0 : index
    %c0_100 = arith.constant 0 : index
    %289 = vector.load %arg26[%c0_99, %c0_100] : memref<32x128xbf16, #tpu.memory_space<vmem>>, vector<32x128xbf16>
    tpu.vector_store %arg26[%c0_99, %c0_100], %288 {strides = array<i32>} : memref<32x128xbf16, #tpu.memory_space<vmem>>, vector<32x128xbf16>,
    %c1_i32 = arith.constant 1 : i32
    %290 = arith.cmpi eq, %arg0, %c1_i32 : i32
    %291 = arith.extui %290 : i1 to i32
    %c0_i32_101 = arith.constant 0 : i32
    %292 = arith.cmpi ne, %291, %c0_i32_101 : i32
    scf.if %292 {
      %293 = vector.extract_strided_slice %288 {offsets = [0, 0], sizes = [1, 128], strides = [1, 1]} : vector<32x128xbf16> to vector<1x128xbf16>
      %294 = vector.extract_strided_slice %288 {offsets = [16, 0], sizes = [1, 128], strides = [1, 1]} : vector<32x128xbf16> to vector<1x128xbf16>
      %295 = tpu.concatenate %293, %294 in 0 : vector<1x128xbf16>, vector<1x128xbf16> -> vector<2x128xbf16>
      %c0_102 = arith.constant 0 : index
      %c0_103 = arith.constant 0 : index
      %296 = vector.load %arg21[%c0_102, %c0_103] : memref<128x128xbf16, #tpu.memory_space<vmem>>, vector<128x128xbf16>
      %cst_104 = arith.constant dense<0.000000e+00> : vector<2x128xf32>
      %297 = tpu.matmul %295, %296, %cst_104 {dimension_numbers = #tpu.dot_dimension_numbers<[1], [0], [0], [1], [0, 0, 1, 1], [], []>} : vector<2x128xbf16>, vector<128x128xbf16>, vector<2x128xf32> -> vector<2x128xf32>
      %c0_105 = arith.constant 0 : index
      %c0_106 = arith.constant 0 : index
      %298 = vector.load %arg22[%c0_105, %c0_106] : memref<1x128xbf16, #tpu.memory_space<vmem>>, vector<1x128xbf16>
      %299 = arith.extf %298 : vector<1x128xbf16> to vector<1x128xf32>
      %300 = vector.broadcast %299 : vector<1x128xf32> to vector<2x128xf32>
      %301 = arith.addf %297, %300 : vector<2x128xf32>
      %cst_107 = arith.constant 0.000000e+00 : f32
      %302 = vector.broadcast %cst_107 : f32 to vector<2x128xf32>
      %303 = arith.maximumf %301, %302 : vector<2x128xf32>
      %304 = arith.truncf %303 : vector<2x128xf32> to vector<2x128xbf16>
      %c0_108 = arith.constant 0 : index
      %c0_109 = arith.constant 0 : index
      %305 = vector.load %arg23[%c0_108, %c0_109] : memref<128x128xbf16, #tpu.memory_space<vmem>>, vector<128x128xbf16>
      %cst_110 = arith.constant dense<0.000000e+00> : vector<2x128xf32>
      %306 = tpu.matmul %304, %305, %cst_110 {dimension_numbers = #tpu.dot_dimension_numbers<[1], [0], [0], [1], [0, 0, 1, 1], [], []>} : vector<2x128xbf16>, vector<128x128xbf16>, vector<2x128xf32> -> vector<2x128xf32>
      %c0_111 = arith.constant 0 : index
      %c0_112 = arith.constant 0 : index
      %307 = vector.load %arg24[%c0_111, %c0_112] : memref<1x128xbf16, #tpu.memory_space<vmem>>, vector<1x128xbf16>
      %308 = arith.extf %307 : vector<1x128xbf16> to vector<1x128xf32>
      %309 = vector.broadcast %308 : vector<1x128xf32> to vector<2x128xf32>
      %310 = arith.addf %306, %309 : vector<2x128xf32>
      %311 = arith.truncf %310 : vector<2x128xf32> to vector<2x128xbf16>
      %c0_113 = arith.constant 0 : index
      %c0_114 = arith.constant 0 : index
      %312 = vector.load %arg25[%c0_113, %c0_114] : memref<2x128xbf16, #tpu.memory_space<vmem>>, vector<2x128xbf16>
      tpu.vector_store %arg25[%c0_113, %c0_114], %311 {strides = array<i32>} : memref<2x128xbf16, #tpu.memory_space<vmem>>, vector<2x128xbf16>,
    } else {
    }
    return
  }
  func.func @transform_0(%arg0: i32) -> (i32, i32) {
    %c0_i32 = arith.constant 0 : i32
    %c0_i32_0 = arith.constant 0 : i32
    %c0_i32_1 = arith.constant 0 : i32
    return %c0_i32, %c0_i32_0 : i32, i32
  }
  func.func @transform_1(%arg0: i32) -> (i32, i32) {
    %c0_i32 = arith.constant 0 : i32
    %c0_i32_0 = arith.constant 0 : i32
    %c0_i32_1 = arith.constant 0 : i32
    return %c0_i32, %c0_i32_0 : i32, i32
  }
  func.func @transform_2(%arg0: i32) -> (i32, i32) {
    %c0_i32 = arith.constant 0 : i32
    %c0_i32_0 = arith.constant 0 : i32
    %c0_i32_1 = arith.constant 0 : i32
    return %c0_i32, %c0_i32_0 : i32, i32
  }
  func.func @transform_3(%arg0: i32) -> (i32, i32) {
    %c0_i32 = arith.constant 0 : i32
    %c0_i32_0 = arith.constant 0 : i32
    %c0_i32_1 = arith.constant 0 : i32
    return %c0_i32, %c0_i32_0 : i32, i32
  }
  func.func @transform_4(%arg0: i32) -> (i32, i32) {
    %c0_i32 = arith.constant 0 : i32
    %c0_i32_0 = arith.constant 0 : i32
    %c0_i32_1 = arith.constant 0 : i32
    return %c0_i32, %c0_i32_0 : i32, i32
  }
  func.func @transform_5(%arg0: i32) -> (i32, i32) {
    %c0_i32 = arith.constant 0 : i32
    %c0_i32_0 = arith.constant 0 : i32
    %c0_i32_1 = arith.constant 0 : i32
    return %c0_i32, %c0_i32_0 : i32, i32
  }
  func.func @transform_6(%arg0: i32) -> (i32, i32) {
    %c0_i32 = arith.constant 0 : i32
    %c0_i32_0 = arith.constant 0 : i32
    %c0_i32_1 = arith.constant 0 : i32
    return %c0_i32, %c0_i32_0 : i32, i32
  }
  func.func @transform_7(%arg0: i32) -> (i32, i32) {
    %c0_i32 = arith.constant 0 : i32
    %c0_i32_0 = arith.constant 0 : i32
    %c0_i32_1 = arith.constant 0 : i32
    return %c0_i32, %c0_i32_0 : i32, i32
  }
  func.func @transform_8(%arg0: i32) -> (i32, i32, i32) {
    %c0_i32 = arith.constant 0 : i32
    %c0_i32_0 = arith.constant 0 : i32
    %c0_i32_1 = arith.constant 0 : i32
    return %arg0, %c0_i32, %c0_i32_0 : i32, i32, i32
  }
  func.func @transform_9(%arg0: i32) -> (i32, i32, i32) {
    %c0_i32 = arith.constant 0 : i32
    %c0_i32_0 = arith.constant 0 : i32
    %c0_i32_1 = arith.constant 0 : i32
    return %arg0, %c0_i32, %c0_i32_0 : i32, i32, i32
  }
  func.func @transform_10(%arg0: i32) -> (i32, i32, i32) {
    %c0_i32 = arith.constant 0 : i32
    %c0_i32_0 = arith.constant 0 : i32
    %c0_i32_1 = arith.constant 0 : i32
    return %arg0, %c0_i32, %c0_i32_0 : i32, i32, i32
  }
  func.func @transform_11(%arg0: i32) -> (i32, i32, i32) {
    %c0_i32 = arith.constant 0 : i32
    %c0_i32_0 = arith.constant 0 : i32
    %c0_i32_1 = arith.constant 0 : i32
    return %arg0, %c0_i32, %c0_i32_0 : i32, i32, i32
  }
  func.func @transform_12(%arg0: i32) -> (i32, i32, i32) {
    %c0_i32 = arith.constant 0 : i32
    %c0_i32_0 = arith.constant 0 : i32
    %c0_i32_1 = arith.constant 0 : i32
    return %arg0, %c0_i32, %c0_i32_0 : i32, i32, i32
  }
  func.func @transform_13(%arg0: i32) -> (i32, i32, i32) {
    %c0_i32 = arith.constant 0 : i32
    %c0_i32_0 = arith.constant 0 : i32
    %c0_i32_1 = arith.constant 0 : i32
    return %arg0, %c0_i32, %c0_i32_0 : i32, i32, i32
  }
  func.func @transform_14(%arg0: i32) -> (i32, i32, i32) {
    %c0_i32 = arith.constant 0 : i32
    %c0_i32_0 = arith.constant 0 : i32
    %c0_i32_1 = arith.constant 0 : i32
    return %arg0, %c0_i32, %c0_i32_0 : i32, i32, i32
  }
  func.func @transform_15(%arg0: i32) -> (i32, i32, i32) {
    %c0_i32 = arith.constant 0 : i32
    %c0_i32_0 = arith.constant 0 : i32
    %c0_i32_1 = arith.constant 0 : i32
    return %arg0, %c0_i32, %c0_i32_0 : i32, i32, i32
  }
  func.func @transform_16(%arg0: i32) -> (i32, i32, i32) {
    %c0_i32 = arith.constant 0 : i32
    %c0_i32_0 = arith.constant 0 : i32
    %c0_i32_1 = arith.constant 0 : i32
    return %arg0, %c0_i32, %c0_i32_0 : i32, i32, i32
  }
  func.func @transform_17(%arg0: i32) -> (i32, i32, i32) {
    %c0_i32 = arith.constant 0 : i32
    %c0_i32_0 = arith.constant 0 : i32
    %c0_i32_1 = arith.constant 0 : i32
    return %arg0, %c0_i32, %c0_i32_0 : i32, i32, i32
  }
  func.func @transform_18(%arg0: i32) -> (i32, i32, i32) {
    %c0_i32 = arith.constant 0 : i32
    %c0_i32_0 = arith.constant 0 : i32
    %c0_i32_1 = arith.constant 0 : i32
    return %arg0, %c0_i32, %c0_i32_0 : i32, i32, i32
  }
  func.func @transform_19(%arg0: i32) -> (i32, i32, i32) {
    %c0_i32 = arith.constant 0 : i32
    %c0_i32_0 = arith.constant 0 : i32
    %c0_i32_1 = arith.constant 0 : i32
    return %arg0, %c0_i32, %c0_i32_0 : i32, i32, i32
  }
  func.func @transform_20(%arg0: i32) -> (i32, i32) {
    %c0_i32 = arith.constant 0 : i32
    %c0_i32_0 = arith.constant 0 : i32
    %c0_i32_1 = arith.constant 0 : i32
    return %c0_i32, %c0_i32_0 : i32, i32
  }
  func.func @transform_21(%arg0: i32) -> (i32, i32) {
    %c0_i32 = arith.constant 0 : i32
    %c0_i32_0 = arith.constant 0 : i32
    %c0_i32_1 = arith.constant 0 : i32
    return %c0_i32, %c0_i32_0 : i32, i32
  }
  func.func @transform_22(%arg0: i32) -> (i32, i32) {
    %c0_i32 = arith.constant 0 : i32
    %c0_i32_0 = arith.constant 0 : i32
    %c0_i32_1 = arith.constant 0 : i32
    return %c0_i32, %c0_i32_0 : i32, i32
  }
  func.func @transform_23(%arg0: i32) -> (i32, i32) {
    %c0_i32 = arith.constant 0 : i32
    %c0_i32_0 = arith.constant 0 : i32
    %c0_i32_1 = arith.constant 0 : i32
    return %c0_i32, %c0_i32_0 : i32, i32
  }
  func.func @transform_24(%arg0: i32) -> (i32, i32) {
    %c0_i32 = arith.constant 0 : i32
    %c0_i32_0 = arith.constant 0 : i32
    %c0_i32_1 = arith.constant 0 : i32
    return %c0_i32, %c0_i32_0 : i32, i32
  }
}

</mosaic_0001>

<bundles_post_ra>
// kernel: model_forward.1
= control target key start
LH: loop header
LB: loop body
LE: loop exit
PB: predicated region body
PF: predicated region fallthrough
CT: control target
= control target key end

     0   :  { %s5494_s0 = inlined_call_operand.vmem [shape: s32[32,1], index: 0, kind: input, shape index: {}]   ;;  %s5495_s1 = inlined_call_operand.vmem [shape: s32[32,1], index: 1, kind: input, shape index: {}]   ;;  %s5496_s2 = inlined_call_operand.vmem [shape: s32[2,16], index: 2, kind: input, shape index: {}]   ;;  %s5497_s3 = inlined_call_operand.vmem [shape: bf16[128,128], index: 3, kind: input, shape index: {}]   ;;  %s5498_s4 = inlined_call_operand.hbm [shape: bf16[128,128], index: 4, kind: input, shape index: {}]   ;;  %s5499_s5 = inlined_call_operand.vmem [shape: bf16[1,128], index: 5, kind: input, shape index: {}]   ;;  %s5500_s6 = inlined_call_operand.vmem [shape: bf16[1,128], index: 6, kind: input, shape index: {}]   ;;  %s5501_s7 = inlined_call_operand.vmem [shape: bf16[1,128], index: 7, kind: input, shape index: {}]   ;;  %s5502_s8 = inlined_call_operand.hbm [shape: bf16[2,128,384], index: 8, kind: input, shape index: {}]   ;;  %s5503_s9 = inlined_call_operand.vmem [shape: bf16[2,1,384], index: 9, kind: input, shape index: {}]   ;;  %s5504_s10 = inlined_call_operand.hbm [shape: bf16[2,128,128], index: 10, kind: input, shape index: {}]   ;;  %s5505_s11 = inlined_call_operand.vmem [shape: bf16[2,1,128], index: 11, kind: input, shape index: {}]   ;;  %s5506_s12 = inlined_call_operand.vmem [shape: bf16[2,1,128], index: 12, kind: input, shape index: {}]   ;;  %s5507_s13 = inlined_call_operand.vmem [shape: bf16[2,1,128], index: 13, kind: input, shape index: {}]   ;;  %s5508_s14 = inlined_call_operand.hbm [shape: bf16[2,128,256], index: 14, kind: input, shape index: {}]   ;;  %s5509_s15 = inlined_call_operand.vmem [shape: bf16[2,1,256], index: 15, kind: input, shape index: {}]   ;;  %s5510_s16 = inlined_call_operand.hbm [shape: bf16[2,256,128], index: 16, kind: input, shape index: {}]   ;;  %s5511_s17 = inlined_call_operand.vmem [shape: bf16[2,1,128], index: 17, kind: input, shape index: {}]   ;;  %s5512_s18 = inlined_call_operand.vmem [shape: bf16[2,1,128], index: 18, kind: input, shape index: {}]   ;;  %s5513_s19 = inlined_call_operand.vmem [shape: bf16[2,1,128], index: 19, kind: input, shape index: {}]   ;;  %s5514_s20 = inlined_call_operand.hbm [shape: bf16[128,128], index: 20, kind: input, shape index: {}]   ;;  %s5515_s21 = inlined_call_operand.vmem [shape: bf16[1,128], index: 21, kind: input, shape index: {}]   ;;  %s5516_s22 = inlined_call_operand.hbm [shape: bf16[128,128], index: 22, kind: input, shape index: {}]   ;;  %s5517_s23 = inlined_call_operand.vmem [shape: bf16[1,128], index: 23, kind: input, shape index: {}]   ;;  %s5518_s24 = inlined_call_operand.hbm [shape: bf16[2,128], index: 24, kind: output, shape index: {}]  }
   0x1   :  { %5532 = sst [smem:[#allocation24_spill]] %s5494_s0 }
   0x2   :  { %5533 = sst [smem:[#allocation25_spill]] %s5495_s1 }
   0x3   :  { %5534 = sst [smem:[#allocation26_spill]] %s5496_s2 }
   0x4   :  { %5535 = sst [smem:[#allocation27_spill]] %s5497_s3 }
   0x5   :  { %5536 = sst [smem:[#allocation28_spill]] %s5498_s4 }
   0x6   :  { %5537 = sst [smem:[#allocation29_spill]] %s5499_s5 }
   0x7   :  { %5538 = sst [smem:[#allocation30_spill]] %s5500_s6 }
   0x8   :  { %5539 = sst [smem:[#allocation31_spill]] %s5501_s7 }
   0x9   :  { %5540 = sst [smem:[#allocation32_spill]] %s5502_s8 }
   0xa   :  { %5541 = sst [smem:[#allocation33_spill]] %s5503_s9 }
   0xb   :  { %5542 = sst [smem:[#allocation34_spill]] %s5504_s10 }
   0xc   :  { %5543 = sst [smem:[#allocation35_spill]] %s5506_s12 }
   0xd   :  { %5544 = sst [smem:[#allocation36_spill]] %s5507_s13 }
   0xe   :  { %5545 = sst [smem:[#allocation37_spill]] %s5508_s14 }
   0xf   :  { %5546 = sst [smem:[#allocation38_spill]] %s5509_s15 }
  0x10   :  { %5547 = sst [smem:[#allocation39_spill]] %s5511_s17 }
  0x11   :  { %5548 = sst [smem:[#allocation40_spill]] %s5512_s18 }
  0x12   :  { %5549 = sst [smem:[#allocation41_spill]] %s5513_s19 }
  0x13   :  { %5550 = sst [smem:[#allocation42_spill]] %s5514_s20 }
  0x14   :  { %5551 = sst [smem:[#allocation43_spill]] %s5515_s21 }
  0x15   :  { %5552 = sst [smem:[#allocation44_spill]] %s5517_s23 }
  0x16   :  { %5553 = sst [smem:[#allocation45_spill]] %s5518_s24 }
  0x17   :  { %29 = vsyncpa [#allocation4], 0 }
  0x18   :  { %30 = vsyncpa [#allocation7], 0 }
  0x19   :  { %32 = vsyncpa [#allocation7 + $0x1], 0 }
  0x1a   :  { %33 = vsyncpa [#allocation10], 0 }
  0x1b   :  { %35 = vsyncpa [#allocation10 + $0x1], 0 }
  0x1c   :  { %36 = vsyncpa [#allocation13], 0 }
  0x1d   :  { %37 = vsyncpa [#allocation5], 0  ;;  %s4658_s5 = smov 0   ;;  %s4660_s26 = smov 0  }
  0x1e   :  { %s4662_s27 = smov 0   ;;  %s4664_s28 = smov 0  }
  0x1f LB: > { %5554 = sst [smem:[#allocation21_spill]] %s4510_s27  ;;  %s4677_s6 = sadd.s32 4294967295, %s4514_s28   ;;  %s4514_s28 = sphi %s4664_s28, %s5595_s28   ;;  %s4510_s27 = sphi %s4662_s27, %s5597_s27   ;;  %s4506_s26 = sphi %s4660_s26, %s5599_s26   ;;  %s4502_s5 = sphi %s4658_s5, %s5598_s5  }
  0x20   : > { %p231_p0 = scmp.ne.s32.totalorder %s4506_s26, %s4502_s5  ;;  %p232_p1 = scmp.eq.s32.totalorder %s4677_s6, 0 }
  0x21   : > { %p3392_p2 = scmp.ge.s32.totalorder %s4514_s28, 1  ;;  %p633_p3 = scmp.lt.s32.totalorder %s4514_s28, 3 }
  0x22   : > { %p3393_p4 = scmp.ne.s32.totalorder %s4677_s6, 0  ;;  %p4686_p5 = por %p232_p1, %p231_p0 }
  0x23   : > { %p4690_p6 = pnand %p3392_p2, %p633_p3  ;;  %s5557_s20 = sld [smem:[#allocation42_spill]] }
  0x24   : > { %s4516_s3 = smov [#allocation12]   ;;  %s4706_s4 = sadd.s32 1, %s4514_s28  }
  0x25   : > { %p4004_p7 = pneg %p4690_p6  ;;  %s681_s25 = sshll.u32 %s4516_s3, 4  ;;  %s682_s25 = int_to_ptr.vmem [resolvable:$true] %s681_s25 }
  0x26   : > { %5559 = sst [smem:[#allocation22_spill]] %s4706_s4  ;;  %s5523_s1 = smov 64  }
  0x27   : > { %p4701_p8 = pnand %p4004_p7, %p232_p1  ;;  %s5525_s5 = smov 4  }
  0x28   : > { %s215_s0 = ssub.s32 %s4514_s28, %s4706_s4  ;;  %s218_s7 = sadd.s32 1, %s4510_s27 }
  0x29   : > { %s679_s30 = sshll.u32 %s5557_s20, 4  ;;  %p216_p9 = scmp.eq.s32.totalorder %s215_s0, 0  ;;  %s680_s30 = int_to_ptr.hbm [resolvable:$true] %s679_s30 }
  0x2a   : > { %4010 = dma.hbm_to_vmem [thread:$0]  (!%p4701_p8), %s680_s30, 1024, %s682_s25, [#allocation13], %s5523_s1, %s5523_s1, %s5525_s5  }
  0x2b   : > { %p225_p10 = scmp.ne.s32.totalorder %s4510_s27, %s4506_s26  ;;  %p226_p11 = scmp.eq.s32.totalorder %s4514_s28, 0 }
  0x2c   : > { %p4030_p12 = scmp.lt.s32.totalorder %s4514_s28, 2  ;;  %s5530_s20 = sand.u32 1, %s4514_s28  }
  0x2d   : > { %s4721_s3 = scalar_select %p216_p9, %s4510_s27, %s218_s7  }
  0x2e   : > { %p227_p13 = por %p226_p11, %p225_p10  ;;  %s4725_s24 = sand.u32 1, %s4510_s27  }
  0x2f   : > { %5560 = sst [smem:[#allocation23_spill]] %s4721_s3  ;;  %s3976_s23 = smul.u32 192, %s4725_s24 }
  0x30   : > { %p4728_p0 = pnand %p4030_p12, %p227_p13  ;;  %s3977_s30 = smul.u32 192, %s4514_s28 }
  0x31   : > { %s5562_s1 = sld [smem:[#allocation32_spill]]  ;;  %s719_s4 = scalar_lea.vmem [#allocation6], %s3976_s23 }
  0x32   : > { %s727_s7 = sshll.u32 %s719_s4, 4  ;;  %s4738_s27 = scalar_lea.sflag [#allocation7], %s5530_s20  ;;  %s728_s7 = int_to_ptr.vmem [resolvable:$true] %s727_s7 }
  0x33   : > { %p4260_p3 = pneg %p4728_p0 }
  0x37   : > { %s724_s5 = scalar_lea.hbm %s5562_s1, %s3977_s30  ;;  %s4263_s23 = scalar_lea.hbm %s5562_s1, 384 }
  0x38   : > { %s725_s3 = sshll.u32 %s724_s5, 4  ;;  %s726_s3 = int_to_ptr.hbm [resolvable:$true] %s725_s3 }
  0x39   : > { %s4256_s19 = sshra.s32 %s726_s3, 4  ;;  %s4257_s19 = int_to_ptr.hbm [resolvable:$true] %s4256_s19 }
  0x3a   : > { %s4258_s18 = scalar_lea.hbm %s4257_s19, 192  ;;  %p4264_p10 = scmp.lt.s32.totalorder %s4257_s19, %s5562_s1 }
  0x3b   : > { %p4259_p2 = scmp.ne.s32.totalorder %s4257_s19, %s4258_s18  ;;  %p4265_p11 = scmp.lt.s32.totalorder %s4263_s23, %s4258_s18 }
  0x3d   : > { %p4261_p7 = pnand %p4260_p3, %p4259_p2  ;;  %p4266_p12 = por %p4265_p11, %p4264_p10 }
  0x3f   : > { %p4262_p9 = pneg %p4261_p7 }
  0x41   : > { %p4267_p13 = pnand %p4266_p12, %p4262_p9 }
  0x43   : > { %4270 = shalt.err (!%p4267_p13)
}
  0x44   : > { %s4519_s0 = smov 192   ;;  %s4520_s20 = smov 12  }
  0x45   : > { %4017 = dma.hbm_to_vmem [thread:$0]  (!%p4728_p0), %s726_s3, 3072, %s728_s7, %s4738_s27, %s4519_s0, %s4519_s0, %s4520_s20  }
  0x46   : > { %s3401_s25 = sshll.u32 %s4725_s24, 7  ;;  %s3838_s30 = sshll.u32 %s4514_s28, 7 }
  0x47   : > { %s5563_s14 = sld [smem:[#allocation37_spill]]  ;;  %s788_s18 = scalar_lea.vmem [#allocation9], %s3401_s25 }
  0x48   : > { %s796_s23 = sshll.u32 %s788_s18, 4  ;;  %s5564_s5 = sand.u32 1, %s4514_s28   ;;  %s797_s23 = int_to_ptr.vmem [resolvable:$true] %s796_s23 }
  0x49   : > { %s4761_s1 = scalar_lea.sflag [#allocation10], %s5564_s5 }
  0x4d   : > { %s793_s19 = scalar_lea.hbm %s5563_s14, %s3838_s30  ;;  %s4293_s15 = scalar_lea.hbm %s5563_s14, 256 }
  0x4e   : > { %s794_s4 = sshll.u32 %s793_s19, 4  ;;  %s795_s4 = int_to_ptr.hbm [resolvable:$true] %s794_s4 }
  0x4f   : > { %s4286_s9 = sshra.s32 %s795_s4, 4  ;;  %s4287_s9 = int_to_ptr.hbm [resolvable:$true] %s4286_s9 }
  0x50   : > { %s4288_s13 = scalar_lea.hbm %s4287_s9, 128  ;;  %p4294_p10 = scmp.lt.s32.totalorder %s4287_s9, %s5563_s14 }
  0x51   : > { %p4289_p2 = scmp.ne.s32.totalorder %s4287_s9, %s4288_s13  ;;  %p4295_p11 = scmp.lt.s32.totalorder %s4293_s15, %s4288_s13 }
  0x53   : > { %p4291_p7 = pnand %p4289_p2, %p4260_p3  ;;  %p4296_p12 = por %p4295_p11, %p4294_p10 }
  0x55   : > { %p4292_p9 = pneg %p4291_p7 }
  0x57   : > { %p4297_p13 = pnand %p4296_p12, %p4292_p9 }
  0x59   : > { %4300 = shalt.err (!%p4297_p13)
}
  0x5a   : > { %s4521_s0 = smov 128   ;;  %s4522_s19 = smov 8  }
  0x5b   : > { %4023 = dma.hbm_to_vmem [thread:$0]  (!%p4728_p0), %s795_s4, 2048, %s797_s23, %s4761_s1, %s4521_s0, %s4521_s0, %s4522_s19  }
  0x5c   : > { %s822_s20 = scalar_lea.hbm %s5510_s16, %s3838_s30  ;;  %s817_s3 = scalar_lea.vmem [#allocation11], %s3401_s25 }
  0x5d   : > { %s825_s12 = sshll.u32 %s817_s3, 4  ;;  %s823_s9 = sshll.u32 %s822_s20, 4  ;;  %s4778_s12 = int_to_ptr.vmem [resolvable:$true] %s825_s12  ;;  %s4780_s9 = int_to_ptr.hbm [resolvable:$true] %s823_s9 }
  0x5e   : > { %s5565_s17 = sld [smem:[#allocation28_spill]]  ;;  %s4523_s14 = smov [#allocation3]  }
  0x5f   : > { %s658_s23 = sshll.u32 %s4523_s14, 4  ;;  %s696_s30 = sshll.u32 %s5516_s22, 4  ;;  %s659_s23 = int_to_ptr.vmem [resolvable:$true] %s658_s23  ;;  %s697_s30 = int_to_ptr.hbm [resolvable:$true] %s696_s30 }
  0x60   : > { %s5566_s25 = smov 4   ;;  %s5567_s19 = smov 64  }
  0x61   : > { %s3398_s18 = sshll.u32 %s4725_s24, 6  ;;  %s4524_s5 = smov [#allocation14]  }
  0x62   : > { %s698_s20 = sshll.u32 %s4524_s5, 4  ;;  %s3837_s3 = sshll.u32 %s4514_s28, 6  ;;  %s699_s20 = int_to_ptr.vmem [resolvable:$true] %s698_s20 }
  0x63   : > { %4013 = dma.hbm_to_vmem [thread:$0]  (!%p4701_p8), %s697_s30, 1024, %s699_s20, [#allocation13], %s5567_s19, %s5567_s19, %s5566_s25  }
  0x64   : > { %s656_s7 = sshll.u32 %s5565_s17, 4  ;;  %s5568_s10 = sld [smem:[#allocation34_spill]]  ;;  %s657_s7 = int_to_ptr.hbm [resolvable:$true] %s656_s7 }
  0x65   : > { %4007 = dma.hbm_to_vmem [thread:$0]  (!%p4701_p8), %s657_s7, 1024, %s659_s23, [#allocation4], %s5567_s19, %s5567_s19, %s5566_s25  }
  0x66   : > { %s748_s17 = scalar_lea.vmem [#allocation8], %s3398_s18 }
  0x67   : > { %s756_s4 = sshll.u32 %s748_s17, 4  ;;  %s757_s4 = int_to_ptr.vmem [resolvable:$true] %s756_s4 }
  0x6a   : > { %s753_s15 = scalar_lea.hbm %s5568_s10, %s3837_s3  ;;  %s4383_s23 = scalar_lea.hbm %s5568_s10, 128 }
  0x6b   : > { %s754_s0 = sshll.u32 %s753_s15, 4  ;;  %s755_s0 = int_to_ptr.hbm [resolvable:$true] %s754_s0 }
  0x6c   : > { %s4376_s24 = sshra.s32 %s755_s0, 4  ;;  %s4377_s24 = int_to_ptr.hbm [resolvable:$true] %s4376_s24 }
  0x6d   : > { %s4378_s7 = scalar_lea.hbm %s4377_s24, 64  ;;  %p4384_p8 = scmp.lt.s32.totalorder %s4377_s24, %s5568_s10 }
  0x6e   : > { %p4379_p2 = scmp.ne.s32.totalorder %s4377_s24, %s4378_s7  ;;  %p4385_p10 = scmp.lt.s32.totalorder %s4383_s23, %s4378_s7 }
  0x70   : > { %p4381_p7 = pnand %p4379_p2, %p4260_p3  ;;  %p4386_p11 = por %p4385_p10, %p4384_p8 }
  0x72   : > { %p4382_p9 = pneg %p4381_p7 }
  0x74   : > { %p4387_p12 = pnand %p4386_p11, %p4382_p9 }
  0x76   : > { %4390 = shalt.err (!%p4387_p12)
}
  0x77   : > { %4020 = dma.hbm_to_vmem [thread:$0]  (!%p4728_p0), %s755_s0, 1024, %s757_s4, %s4738_s27, %s5567_s19, %s5567_s19, %s5566_s25  }
  0x78   : > { %s4406_s18 = sshra.s32 %s4780_s9, 4  ;;  %s4413_s13 = scalar_lea.hbm %s5510_s16, 256  ;;  %s4407_s18 = int_to_ptr.hbm [resolvable:$true] %s4406_s18 }
  0x79   : > { %s4408_s20 = scalar_lea.hbm %s4407_s18, 128  ;;  %p4414_p9 = scmp.lt.s32.totalorder %s4407_s18, %s5510_s16 }
  0x7a   : > { %p4409_p13 = scmp.ne.s32.totalorder %s4407_s18, %s4408_s20  ;;  %p4415_p8 = scmp.lt.s32.totalorder %s4413_s13, %s4408_s20 }
  0x7c   : > { %p4411_p2 = pnand %p4409_p13, %p4260_p3  ;;  %p4416_p10 = por %p4415_p8, %p4414_p9 }
  0x7e   : > { %p4412_p7 = pneg %p4411_p2 }
  0x80   : > { %p4417_p11 = pnand %p4416_p10, %p4412_p7 }
  0x82   : > { %4420 = shalt.err (!%p4417_p11)
}
  0x83   : > { %4026 = dma.hbm_to_vmem [thread:$0]  (!%p4728_p0), %s4780_s9, 2048, %s4778_s12, %s4761_s1, %s5567_s19, %s5567_s19, %s5566_s25  }
  0x84   : > { %855 = sbr.rel (%p4690_p6) target bundleno = 3366 (0xd26), region = 116 }
  0x89   : > { %4481 = dma.done.wait (%p232_p1), [#allocation4], 1024  }
  0x8a   : > { %4483 = vsyncadd (%p232_p1), [#allocation4], 4294966272  ;;  %s862_s21 = sand.u32 1, %s4677_s6   ;;  %s864_s27 = sand.u32 1, %s4506_s26  }
  0x8b   : > { %s3978_s4 = smul.u32 192, %s864_s27  ;;  %s863_s0 = scalar_lea.sflag [#allocation7], %s862_s21 }
  0x8d   : > { %s4844_s24 = scalar_lea.vmem [#allocation6], %s3978_s4 }
  0x8e   : > { %4485 = dma.done.wait (%p4686_p5), %s863_s0, 4096  }
  0x8f   : > { %4487 = vsyncadd (%p4686_p5), %s863_s0, 4294963200  ;;  %s3409_s12 = sshll.u32 %s864_s27, 6  ;;  %s3410_s29 = sshll.u32 %s864_s27, 7 }
  0x90   : > { %s4850_s1 = scalar_lea.vmem [#allocation8], %s3409_s12  ;;  %s883_s9 = scalar_lea.sflag [#allocation10], %s862_s21 }
  0x91   : > { %s4852_s25 = scalar_lea.vmem [#allocation9], %s3410_s29 }
  0x92   : > { %4489 = dma.done.wait (%p4686_p5), %s883_s9, 4096  }
  0x93   : > { %4491 = vsyncadd (%p4686_p5), %s883_s9, 4294963200  ;;  %s4858_s19 = scalar_lea.vmem [#allocation11], %s3410_s29 }
  0x94   : > { %4493 = dma.done.wait (%p232_p1), [#allocation13], 2048  }
  0x95   : > { %4495 = vsyncadd (%p232_p1), [#allocation13], 4294965248  ;;  %p1008_p6 = scmp.lt.s32.totalorder %s4677_s6, 1  ;;  %s5571_s27 = sld [smem:[#allocation33_spill]] }
  0x96   : > { %s5572_s9 = sld [smem:[#allocation38_spill]] }
  0x97   : > { %s4866_s7 = scalar_select %p1008_p6, %s4677_s6, 1 }
  0x98   : > { %s5573_s23 = sld [smem:[#allocation39_spill]] }
  0x99   : > { %s3979_s2 = smul.u32 3, %s4866_s7  ;;  %s3414_s0 = sshll.u32 %s4866_s7, 1 }
  0x9a   : > { %s5574_s20 = sld [smem:[#allocation40_spill]] }
  0x9b   : > { %s4884_s4 = scalar_lea.vmem %s5571_s27, %s3979_s2  ;;  %s5575_s15 = sld [smem:[#allocation41_spill]] }
  0x9c   : > { %s4890_s10 = scalar_lea.vmem %s5572_s9, %s3414_s0  ;;  %s5576_s27 = sld [smem:[#allocation25_spill]] (!%p3393_p4) }
  0x9d   : > { %1038 = sbr.rel (%p3393_p4) target bundleno = 705 (0x2c1), region = 148  ;;  %s5578_s9 = sld [smem:[#allocation24_spill]] (!%p3393_p4) }
  0x9e   : > { %s1027_s30 = scalar_lea.vmem %s5573_s23, %s4866_s7  ;;  %s5579_s8 = sld [smem:[#allocation27_spill]] (!%p3393_p4) }
  0x9f   : > { %s5580_s5 = sld [smem:[#allocation29_spill]] (!%p3393_p4) }
  0xa0   : > { %s1030_s3 = scalar_lea.vmem %s5574_s20, %s4866_s7  ;;  %s5581_s13 = sld [smem:[#allocation30_spill]] (!%p3393_p4) }
  0xa1   : > { %s1033_s17 = scalar_lea.vmem %s5575_s15, %s4866_s7 }
  0xa2   : > { %s5577_s12 = smov %s5576_s27  ;;  %v1045_v0 = vld [vmem:[%s5576_s27 + $0x10] sm:$0xff]  ;;  %v4525_v2 = vmov 0   ;;  %v3855_v5 = vld [vmem:[#allocation3 + $0x38] sm:$0xff]  ;;  %v3854_v7 = vld [vmem:[#allocation3 + $0x30] sm:$0xff]  ;;  %v1047_v25 = vlaneseq  ;;  %v4526_v29 = vmov 1.0|1.0  }
  0xa3   : > { %v1041_v1 = vld [vmem:[%s5578_s9 + $0x10] sm:$0xff]  ;;  %4086 = vset.pattern.permute.xlu1 %v4525_v2  ;;  %4085 = vset.pattern.permute.xlu0 %v4525_v2  ;;  %v1039_v3 = vld [vmem:[%s5578_s9] sm:$0xff]  ;;  %v1046_v8 = vld [vmem:[%s5577_s12 + $0x18] sm:$0xff]  ;;  %v4527_v55 = vmov 128.0   ;;  %s5582_s27 = sld [smem:[#allocation31_spill]] }
  0xa4   : > { %1078 = vperm.xlu1 %4086, %v1045_v0   ;;  %1056 = vperm.xlu0 %4085, %v1041_v1   ;;  %v3847_v4 = vld [vmem:[%s5579_s8 + $0x38] sm:$0xff]  ;;  %v3846_v6 = vld [vmem:[%s5579_s8 + $0x30] sm:$0xff]  ;;  %v3845_v10 = vld [vmem:[%s5579_s8 + $0x28] sm:$0xff]  ;;  %v1048_v27 = vand.u32 127, %v1047_v25  ;;  %4088 = vrcp.f32 %v4527_v55 }
  0xa5   : > { %4087 = vset.pattern.permute.xlu2 %v4525_v2  ;;  %1240 = vmatpush.bf16.msra.mxu1 %v3847_v4  ;;  %v1042_v9 = vld [vmem:[%s5578_s9 + $0x18] sm:$0xff]  ;;  %v1040_v11 = vld [vmem:[%s5578_s9 + $0x8] sm:$0xff]  ;;  %v3844_v13 = vld [vmem:[%s5579_s8 + $0x20] sm:$0xff] }
  0xa6   : > { %1050 = vperm.xlu2 %4087, %v1039_v3   ;;  %3960 = vmatpush.bf16.msra.mxu2 %v3855_v5  ;;  %v3853_v12 = vld [vmem:[#allocation3 + $0x28] sm:$0xff]  ;;  %v3852_v14 = vld [vmem:[#allocation3 + $0x20] sm:$0xff]  ;;  %v1044_v15 = vld [vmem:[%s5577_s12 + $0x8] sm:$0xff] }
  0xa7   : > { %3968 = vmatpush.bf16.msra.mxu3 %v3847_v4  ;;  %1173 = vmatpush.bf16.msra.mxu0 %v3855_v5  ;;  %v1043_v16 = vld [vmem:[%s5577_s12] sm:$0xff]  ;;  %v3843_v17 = vld [vmem:[%s5579_s8 + $0x18] sm:$0xff]  ;;  %v3842_v18 = vld [vmem:[%s5579_s8 + $0x10] sm:$0xff] }
  0xa8   : > { %v3851_v19 = vld [vmem:[#allocation3 + $0x18] sm:$0xff]  ;;  %v3850_v21 = vld [vmem:[#allocation3 + $0x10] sm:$0xff]  ;;  %v3849_v23 = vld [vmem:[#allocation3 + $0x8] sm:$0xff] }
  0xa9   : > { %1241 = vmatpush.bf16.msra.mxu1 %v3846_v6  ;;  %v3841_v20 = vld [vmem:[%s5579_s8 + $0x8] sm:$0xff]  ;;  %v3840_v22 = vld [vmem:[%s5579_s8] sm:$0xff]  ;;  %v3848_v24 = vld [vmem:[#allocation3] sm:$0xff] }
  0xaa   : > { %3961 = vmatpush.bf16.msra.mxu2 %v3854_v7  ;;  %v1259_v36 = vld [vmem:[%s5580_s5] sm:$0x1]  ;;  %v4089_v56 = vpop.eup %4088 }
  0xab   : > { %3969 = vmatpush.bf16.msra.mxu3 %v3846_v6  ;;  %1174 = vmatpush.bf16.msra.mxu0 %v3854_v7  ;;  %v1260_v37 = vunpack.c.l.bf16 %v1259_v36  ;;  %v1277_v57 = vmul.f32 128.0, %v4089_v56  ;;  %vm1281_vm12 = vweird.f32 %v4089_v56 }
  0xac   : > { %1081 = vperm.xlu1 %4086, %v1046_v8   ;;  %1059 = vperm.xlu0 %4085, %v1042_v9  }
  0xad   : > { %1242 = vmatpush.bf16.msra.mxu1 %v3845_v10  ;;  %v1261_v40 = vperm.slane %v1260_v37, 0  ;;  %v1278_v58 = vsub.f32 1.0, %v1277_v57 }
  0xae   : > { %1053 = vperm.xlu2 %4087, %v1040_v11   ;;  %3962 = vmatpush.bf16.msra.mxu2 %v3853_v12 }
  0xaf   : > { %3970 = vmatpush.bf16.msra.mxu3 %v3845_v10  ;;  %1175 = vmatpush.bf16.msra.mxu0 %v3853_v12  ;;  %v1279_v59 = vmul.f32 %v4089_v56, %v1278_v58 }
  0xb1   : > { %1243 = vmatpush.bf16.msra.mxu1 %v3844_v13  ;;  %v1280_v60 = vadd.f32 %v4089_v56, %v1279_v59 }
  0xb2   : > { %3963 = vmatpush.bf16.msra.mxu2 %v3852_v14 }
  0xb3   : > { %3971 = vmatpush.bf16.msra.mxu3 %v3844_v13  ;;  %1176 = vmatpush.bf16.msra.mxu0 %v3852_v14  ;;  %v1282_v61 = vsel %vm1281_vm12, %v4089_v56, %v1280_v60 }
  0xb4   : > { %1075 = vperm.xlu1 %4086, %v1044_v15   ;;  %1072 = vperm.xlu0 %4085, %v1043_v16  }
  0xb5   : > { %1244 = vmatpush.bf16.msra.mxu1 %v3843_v17 }
  0xb6   : > { %3964 = vmatpush.bf16.msra.mxu2 %v3851_v19 }
  0xb7   : > { %3972 = vmatpush.bf16.msra.mxu3 %v3843_v17  ;;  %1177 = vmatpush.bf16.msra.mxu0 %v3851_v19 }
  0xb9   : > { %1245 = vmatpush.bf16.msra.mxu1 %v3842_v18 }
  0xba   : > { %3965 = vmatpush.bf16.msra.mxu2 %v3850_v21 }
  0xbb   : > { %3973 = vmatpush.bf16.msra.mxu3 %v3842_v18  ;;  %1178 = vmatpush.bf16.msra.mxu0 %v3850_v21 }
  0xbd   : > { %1246 = vmatpush.bf16.msra.mxu1 %v3841_v20 }
  0xbe   : > { %3966 = vmatpush.bf16.msra.mxu2 %v3849_v23 }
  0xbf   : > { %3974 = vmatpush.bf16.msra.mxu3 %v3841_v20  ;;  %1179 = vmatpush.bf16.msra.mxu0 %v3849_v23 }
  0xc1   : > { %1247 = vmatpush.bf16.msra.mxu1 %v3840_v22 }
  0xc2   : > { %3967 = vmatpush.bf16.msra.mxu2 %v3848_v24 }
  0xc3   : > { %3975 = vmatpush.bf16.msra.mxu3 %v3840_v22  ;;  %1180 = vmatpush.bf16.msra.mxu0 %v3848_v24 }
 0x100   : > { %v1051_v26 = vpop.permute.xlu2 %1050 }
 0x101   : > { %vm1061_vm0 = vcmp.eq.s32.totalorder %v1051_v26, %v1048_v27 }
 0x108   : > { %v1054_v28 = vpop.permute.xlu2 %1053 }
 0x109   : > { %vm1062_vm1 = vcmp.eq.s32.totalorder %v1054_v28, %v1048_v27 }
 0x10a   : > { %vm3484_vm2 = vmpackc.low %vm1062_vm1, %vm1061_vm0 }
 0x10b   : > { %3485 = vmatmul.msk.bf16.vlgmr.msra.gmra.mxu1 %vm3484_vm2, %v4526_v29 }
 0x116   : > { %v1079_v30 = vpop.permute.xlu1 %1078  ;;  %v1057_v31 = vpop.permute.xlu0 %1056 }
 0x117   : > { %vm1085_vm3 = vcmp.eq.s32.totalorder %v1079_v30, %v1048_v27  ;;  %vm1063_vm6 = vcmp.eq.s32.totalorder %v1057_v31, %v1048_v27 }
 0x11e   : > { %v1082_v32 = vpop.permute.xlu1 %1081  ;;  %v1060_v33 = vpop.permute.xlu0 %1059 }
 0x11f   : > { %vm1086_vm4 = vcmp.eq.s32.totalorder %v1082_v32, %v1048_v27  ;;  %vm1064_vm5 = vcmp.eq.s32.totalorder %v1060_v33, %v1048_v27 }
 0x120   : > { %vm3450_vm7 = vmpackc.low %vm1086_vm4, %vm1085_vm3 }
 0x121   : > { %vm3486_vm8 = vmpackc.low %vm1064_vm5, %vm1063_vm6  ;;  %3451 = vmatmul.msk.bf16.vlgmr.msra.gmra.mxu2 %vm3450_vm7, %v4526_v29 }
 0x122   : > { %3487 = vmatmul.msk.bf16.vlgmr.msra.gmra.mxu3 %vm3486_vm8, %v4526_v29 }
 0x126   : > { %v1076_v34 = vpop.permute.xlu1 %1075  ;;  %v1073_v35 = vpop.permute.xlu0 %1072 }
 0x127   : > { %vm1084_vm9 = vcmp.eq.s32.totalorder %v1076_v34, %v1048_v27  ;;  %vm1083_vm10 = vcmp.eq.s32.totalorder %v1073_v35, %v1048_v27 }
 0x128   : > { %vm3448_vm11 = vmpackc.low %vm1084_vm9, %vm1083_vm10 }
 0x129   : > { %3449 = vmatmul.msk.bf16.vlgmr.msra.gmra.mxu0 %vm3448_vm11, %v4526_v29 }
 0x188   : > { %v1249_v38 = vpop.f32.mrf.mxu1 }
 0x190   : > { %v1251_v49 = vpop.f32.mrf.mxu1 }
 0x1a4   : > { %v1187_v39 = vpop.f32.mrf.mxu2 }
 0x1a5   : > { %v1254_v41 = vpop.f32.mrf.mxu3 }
 0x1a6   : > { %v1255_v42 = vadd.f32 %v1254_v41, %v1187_v39  ;;  %v1182_v43 = vpop.f32.mrf.mxu0 }
 0x1a7   : > { %v1250_v44 = vadd.f32 %v1249_v38, %v1182_v43 }
 0x1a8   : > { %v1264_v45 = vadd.f32 %v1261_v40, %v1255_v42 }
 0x1a9   : > { %v1262_v46 = vadd.f32 %v1261_v40, %v1250_v44 }
 0x1aa   : > { %1272 = vadd.xlane.f32.xlu1 %v1264_v45 }
 0x1ab   : > { %1268 = vadd.xlane.f32.xlu2 %v1262_v46 }
 0x1ac   : > { %v1189_v47 = vpop.f32.mrf.mxu2 }
 0x1ad   : > { %v1256_v48 = vpop.f32.mrf.mxu3 }
 0x1ae   : > { %v1257_v50 = vadd.f32 %v1256_v48, %v1189_v47  ;;  %v1184_v51 = vpop.f32.mrf.mxu0 }
 0x1af   : > { %v1252_v52 = vadd.f32 %v1251_v49, %v1184_v51 }
 0x1b0   : > { %v1265_v54 = vadd.f32 %v1261_v40, %v1257_v50 }
 0x1b1   : > { %v1263_v53 = vadd.f32 %v1261_v40, %v1252_v52  ;;  %v1266_v40 = vld [vmem:[%s5581_s13] sm:$0x1] }
 0x1b3   : > { %1270 = vadd.xlane.f32.xlu0 %v1263_v53  ;;  %1274 = vadd.xlane.f32.xlu2 %v1265_v54 }
 0x21d   : > { %v1273_v62 = vpop.xlane.xlu1 %1272 }
 0x21e   : > { %v1285_v63 = vmul.f32 %v1282_v61, %v1273_v62  ;;  %v1269_v0 = vpop.xlane.xlu2 %1268 }
 0x21f   : > { %v1283_v1 = vmul.f32 %v1282_v61, %v1269_v0 }
 0x220   : > { %v4957_v2 = vsub.f32 %v1264_v45, %v1285_v63  ;;  %v1267_v45 = vld [vmem:[%s5582_s27] sm:$0x1] }
 0x221   : > { %v4959_v3 = vsub.f32 %v1262_v46, %v1283_v1  ;;  %v1355_v46 = vunpack.c.l.bf16 %v1266_v40  ;;  %v1361_v52 = vunpack.c.l.bf16 %v1267_v45 }
 0x222   : > { %v1293_v4 = vmul.f32 %v4957_v2, %v4957_v2 }
 0x223   : > { %v1291_v5 = vmul.f32 %v4959_v3, %v4959_v3  ;;  %v1356_v55 = vperm.slane %v1355_v46, 0  ;;  %v1362_v63 = vperm.slane %v1361_v52, 0 }
 0x224   : > { %1299 = vadd.xlane.f32.xlu1 %v1293_v4 }
 0x225   : > { %1295 = vadd.xlane.f32.xlu2 %v1291_v5 }
 0x226   : > { %v1271_v6 = vpop.xlane.xlu0 %1270  ;;  %v1275_v7 = vpop.xlane.xlu2 %1274 }
 0x227   : > { %v1284_v8 = vmul.f32 %v1282_v61, %v1271_v6  ;;  %v1286_v9 = vmul.f32 %v1282_v61, %v1275_v7 }
 0x229   : > { %v4965_v10 = vsub.f32 %v1263_v53, %v1284_v8  ;;  %v4967_v11 = vsub.f32 %v1265_v54, %v1286_v9 }
 0x22b   : > { %v1292_v12 = vmul.f32 %v4965_v10, %v4965_v10  ;;  %v1294_v13 = vmul.f32 %v4967_v11, %v4967_v11 }
 0x22d   : > { %1297 = vadd.xlane.f32.xlu0 %v1292_v12  ;;  %1301 = vadd.xlane.f32.xlu2 %v1294_v13 }
 0x297   : > { %v1300_v14 = vpop.xlane.xlu1 %1299 }
 0x298   : > { %v1305_v15 = vmul.f32 %v1300_v14, %v1282_v61  ;;  %v1296_v16 = vpop.xlane.xlu2 %1295 }
 0x299   : > { %v1303_v17 = vmul.f32 %v1296_v16, %v1282_v61 }
 0x29a   : > { %v1309_v18 = vadd.f32 1e-05, %v1305_v15 }
 0x29b   : > { %v1307_v19 = vadd.f32 1e-05, %v1303_v17 }
 0x29c   : > { %4090 = vrsqrt.f32 %v1309_v18  ;;  %vm1337_vm0 = vweird.f32 %v1309_v18 }
 0x29d   : > { %4092 = vrsqrt.f32 %v1307_v19  ;;  %vm1317_vm15 = vweird.f32 %v1307_v19 }
 0x2a0   : > { %v1298_v20 = vpop.xlane.xlu0 %1297  ;;  %v1302_v21 = vpop.xlane.xlu2 %1301 }
 0x2a1   : > { %v1304_v22 = vmul.f32 %v1298_v20, %v1282_v61  ;;  %v1306_v23 = vmul.f32 %v1302_v21, %v1282_v61 }
 0x2a2   : > { %v4091_v24 = vpop.eup %4090 }
 0x2a3   : > { %v4093_v25 = vpop.eup %4092  ;;  %v1332_v26 = vmul.f32 %v4091_v24, %v1309_v18  ;;  %v1308_v27 = vadd.f32 1e-05, %v1304_v22  ;;  %v1310_v28 = vadd.f32 1e-05, %v1306_v23  ;;  %vm1338_vm14 = vweird.f32 %v4091_v24 }
 0x2a4   : > { %v1312_v29 = vmul.f32 %v4093_v25, %v1307_v19  ;;  %vm1318_vm13 = vweird.f32 %v4093_v25  ;;  %vm1339_vm2 = vmor %vm1337_vm0, %vm1338_vm14 }
 0x2a5   : > { %v1333_v30 = vmul.f32 %v4091_v24, %v1332_v26  ;;  %4094 = vrsqrt.f32 %v1308_v27  ;;  %vm1319_vm1 = vmor %vm1317_vm15, %vm1318_vm13  ;;  %vm1327_vm5 = vweird.f32 %v1308_v27  ;;  %vm1347_vm7 = vweird.f32 %v1310_v28 }
 0x2a6   : > { %v1313_v31 = vmul.f32 %v4093_v25, %v1312_v29  ;;  %4096 = vrsqrt.f32 %v1310_v28 }
 0x2a7   : > { %v1334_v32 = vmul.f32 0.5, %v1333_v30 }
 0x2a8   : > { %v1314_v33 = vmul.f32 0.5, %v1313_v31 }
 0x2a9   : > { %v1335_v34 = vsub.f32 1.5, %v1334_v32 }
 0x2aa   : > { %v1315_v35 = vsub.f32 1.5, %v1314_v33 }
 0x2ab   : > { %v4095_v36 = vpop.eup %4094  ;;  %v1336_v41 = vmul.f32 %v4091_v24, %v1335_v34 }
 0x2ac   : > { %v4097_v37 = vpop.eup %4096  ;;  %v1316_v38 = vmul.f32 %v4093_v25, %v1315_v35  ;;  %v1322_v39 = vmul.f32 %v4095_v36, %v1308_v27  ;;  %vm1328_vm3 = vweird.f32 %v4095_v36 }
 0x2ad   : > { %v1342_v42 = vmul.f32 %v4097_v37, %v1310_v28  ;;  %v1340_v49 = vsel %vm1339_vm2, %v4091_v24, %v1336_v41  ;;  %vm1348_vm4 = vweird.f32 %v4097_v37  ;;  %vm1329_vm6 = vmor %vm1327_vm5, %vm1328_vm3 }
 0x2ae   : > { %v1323_v43 = vmul.f32 %v4095_v36, %v1322_v39  ;;  %v1320_v47 = vsel %vm1319_vm1, %v4093_v25, %v1316_v38  ;;  %v1353_v56 = vmul.f32 %v1340_v49, %v4957_v2  ;;  %vm1349_vm8 = vmor %vm1347_vm7, %vm1348_vm4 }
 0x2af   : > { %v1343_v44 = vmul.f32 %v4097_v37, %v1342_v42  ;;  %v1351_v53 = vmul.f32 %v1320_v47, %v4959_v3 }
 0x2b0   : > { %v1324_v48 = vmul.f32 0.5, %v1323_v43  ;;  %v1359_v0 = vmul.f32 %v1356_v55, %v1353_v56 }
 0x2b1   : > { %v1344_v50 = vmul.f32 0.5, %v1343_v44  ;;  %v1357_v60 = vmul.f32 %v1356_v55, %v1351_v53 }
 0x2b2   : > { %v1325_v51 = vsub.f32 1.5, %v1324_v48  ;;  %v1365_v2 = vadd.f32 %v1362_v63, %v1359_v0 }
 0x2b3   : > { %v1345_v54 = vsub.f32 1.5, %v1344_v50  ;;  %v1363_v5 = vadd.f32 %v1362_v63, %v1357_v60 }
 0x2b4   : > { %v1326_v57 = vmul.f32 %v4095_v36, %v1325_v51 }
 0x2b5   : > { %v1346_v58 = vmul.f32 %v4097_v37, %v1345_v54 }
 0x2b6   : > { %v1330_v59 = vsel %vm1329_vm6, %v4095_v36, %v1326_v57 }
 0x2b7   : > { %v1352_v61 = vmul.f32 %v1330_v59, %v4965_v10  ;;  %v1350_v62 = vsel %vm1349_vm8, %v4097_v37, %v1346_v58 }
 0x2b8   : > { %v1354_v1 = vmul.f32 %v1350_v62, %v4967_v11 }
 0x2b9   : > { %v1358_v3 = vmul.f32 %v1356_v55, %v1352_v61 }
 0x2ba   : > { %v1360_v4 = vmul.f32 %v1356_v55, %v1354_v1 }
 0x2bb   : > { %v1364_v6 = vadd.f32 %v1362_v63, %v1358_v3 }
 0x2bc   : > { %v1366_v7 = vadd.f32 %v1362_v63, %v1360_v4 }
 0x2bd   : > { %v3941_v8 = vpack.c.bf16 %v1364_v6, %v1363_v5 }
 0x2be   : > { %v3946_v9 = vpack.c.bf16 %v1366_v7, %v1365_v2 }
 0x2bf   : > { %3942 = vst [vmem:[#allocation2] sm:$0xff] %v3941_v8  }
 0x2c0   : > { %3958 = vst [vmem:[#allocation2 + $0x8] sm:$0xff] %v3946_v9  }
 0x2c1 PF: > { %v3582_v10 = vld [vmem:[%s4844_s24 + $0xa8] sm:$0xf]  ;;  %v3880_v11 = vld [vmem:[%s4844_s24 + $0xb0] sm:$0xf0]  ;;  %v3879_v12 = vld [vmem:[%s4844_s24 + $0xac] sm:$0xf]  ;;  %s5584_s28 = scalar_lea.vmem %s5505_s11, %s4866_s7 }
 0x2c2   : > { %v3583_v13 = vor.u32 %v3880_v11, %v3582_v10  ;;  %v3584_v14 = vld [vmem:[%s4844_s24 + $0xb4] sm:$0xf0]  ;;  %v3570_v15 = vld [vmem:[%s4844_s24 + $0x90] sm:$0xf]  ;;  %v3877_v16 = vld [vmem:[%s4844_s24 + $0x98] sm:$0xf0] }
 0x2c3   : > { %v3587_v17 = vor.u32 %v3879_v12, %v3584_v14  ;;  %v3876_v18 = vld [vmem:[%s4844_s24 + $0x94] sm:$0xf]  ;;  %v3572_v19 = vld [vmem:[%s4844_s24 + $0x9c] sm:$0xf0]  ;;  %v3571_v20 = vor.u32 %v3877_v16, %v3570_v15  ;;  %v3558_v22 = vld [vmem:[%s4844_s24 + $0x78] sm:$0xf] }
 0x2c4   : > { %1563 = vmatpush.bf16.msra.mxu0 %v3583_v13  ;;  %v3575_v21 = vor.u32 %v3876_v18, %v3572_v19  ;;  %v3874_v23 = vld [vmem:[%s4844_s24 + $0x80] sm:$0xf0]  ;;  %v3873_v24 = vld [vmem:[%s4844_s24 + $0x7c] sm:$0xf]  ;;  %v3560_v25 = vld [vmem:[%s4844_s24 + $0x84] sm:$0xf0] }
 0x2c5   : > { %1582 = vmatpush.bf16.msra.mxu1 %v3587_v17  ;;  %v3559_v26 = vor.u32 %v3874_v23, %v3558_v22  ;;  %v3563_v27 = vor.u32 %v3873_v24, %v3560_v25  ;;  %v3546_v28 = vld [vmem:[%s4844_s24 + $0x60] sm:$0xf]  ;;  %v3871_v29 = vld [vmem:[%s4844_s24 + $0x68] sm:$0xf0]  ;;  %v3870_v30 = vld [vmem:[%s4844_s24 + $0x64] sm:$0xf] }
 0x2c6   : > { %v3548_v31 = vld [vmem:[%s4844_s24 + $0x6c] sm:$0xf0]  ;;  %v3547_v32 = vor.u32 %v3871_v29, %v3546_v28  ;;  %v3534_v34 = vld [vmem:[%s4844_s24 + $0x48] sm:$0xf]  ;;  %v3868_v35 = vld [vmem:[%s4844_s24 + $0x50] sm:$0xf0] }
 0x2c7   : > { %v3551_v33 = vor.u32 %v3870_v30, %v3548_v31  ;;  %v3867_v36 = vld [vmem:[%s4844_s24 + $0x4c] sm:$0xf]  ;;  %v3536_v37 = vld [vmem:[%s4844_s24 + $0x54] sm:$0xf0]  ;;  %v3535_v38 = vor.u32 %v3868_v35, %v3534_v34  ;;  %v3522_v40 = vld [vmem:[%s4844_s24 + $0x30] sm:$0xf] }
 0x2c8   : > { %1564 = vmatpush.bf16.msra.mxu0 %v3571_v20  ;;  %v3539_v39 = vor.u32 %v3867_v36, %v3536_v37  ;;  %v3865_v41 = vld [vmem:[%s4844_s24 + $0x38] sm:$0xf0]  ;;  %v3864_v42 = vld [vmem:[%s4844_s24 + $0x34] sm:$0xf]  ;;  %v3524_v43 = vld [vmem:[%s4844_s24 + $0x3c] sm:$0xf0] }
 0x2c9   : > { %1583 = vmatpush.bf16.msra.mxu1 %v3575_v21  ;;  %v3523_v44 = vor.u32 %v3865_v41, %v3522_v40  ;;  %v3590_v45 = vld [vmem:[%s4844_s24 + $0xb0] sm:$0xf]  ;;  %v3881_v46 = vld [vmem:[%s4844_s24 + $0xb8] sm:$0xf0]  ;;  %v3578_v47 = vld [vmem:[%s4844_s24 + $0x98] sm:$0xf]  ;;  %v3527_v48 = vor.u32 %v3864_v42, %v3524_v43 }
 0x2ca   : > { %v3510_v49 = vld [vmem:[%s4844_s24 + $0x18] sm:$0xf]  ;;  %v3862_v50 = vld [vmem:[%s4844_s24 + $0x20] sm:$0xf0]  ;;  %v3591_v51 = vor.u32 %v3881_v46, %v3590_v45  ;;  %v3861_v53 = vld [vmem:[%s4844_s24 + $0x1c] sm:$0xf] }
 0x2cb   : > { %v3878_v52 = vld [vmem:[%s4844_s24 + $0xa0] sm:$0xf0]  ;;  %v3512_v54 = vld [vmem:[%s4844_s24 + $0x24] sm:$0xf0]  ;;  %v3511_v56 = vor.u32 %v3862_v50, %v3510_v49  ;;  %v3566_v57 = vld [vmem:[%s4844_s24 + $0x80] sm:$0xf] }
 0x2cc   : > { %1565 = vmatpush.bf16.msra.mxu0 %v3559_v26  ;;  %1601 = vmatpush.bf16.msra.mxu2 %v3591_v51  ;;  %v3579_v55 = vor.u32 %v3878_v52, %v3578_v47  ;;  %v3875_v58 = vld [vmem:[%s4844_s24 + $0x88] sm:$0xf0]  ;;  %v3515_v59 = vor.u32 %v3861_v53, %v3512_v54  ;;  %v3498_v60 = vld [vmem:[%s4844_s24] sm:$0xf]  ;;  %v3858_v62 = vld [vmem:[%s4844_s24 + $0x4] sm:$0xf] }
 0x2cd   : > { %1584 = vmatpush.bf16.msra.mxu1 %v3563_v27  ;;  %v3859_v61 = vld [vmem:[%s4844_s24 + $0x8] sm:$0xf0]  ;;  %v3500_v63 = vld [vmem:[%s4844_s24 + $0xc] sm:$0xf0]  ;;  %v3567_v0 = vor.u32 %v3875_v58, %v3566_v57  ;;  %v3554_v3 = vld [vmem:[%s4844_s24 + $0x68] sm:$0xf] }
 0x2ce   : > { %v3499_v1 = vor.u32 %v3859_v61, %v3498_v60  ;;  %v3872_v4 = vld [vmem:[%s4844_s24 + $0x70] sm:$0xf0]  ;;  %v3503_v5 = vor.u32 %v3858_v62, %v3500_v63  ;;  %v3542_v7 = vld [vmem:[%s4844_s24 + $0x50] sm:$0xf]  ;;  %v3869_v8 = vld [vmem:[%s4844_s24 + $0x58] sm:$0xf0] }
 0x2cf   : > { %v3856_v6 = vld [vmem:[#allocation2] sm:$0xff]  ;;  %v3555_v2 = vor.u32 %v3872_v4, %v3554_v3  ;;  %v3543_v9 = vor.u32 %v3869_v8, %v3542_v7  ;;  %v3530_v10 = vld [vmem:[%s4844_s24 + $0x38] sm:$0xf]  ;;  %v3866_v11 = vld [vmem:[%s4844_s24 + $0x40] sm:$0xf0]  ;;  %vm1646_vm9 = vcmask 261120  }
 0x2d0   : > { %1566 = vmatpush.bf16.msra.mxu0 %v3547_v32  ;;  %1602 = vmatpush.bf16.msra.mxu2 %v3579_v55  ;;  %v3531_v12 = vor.u32 %v3866_v11, %v3530_v10  ;;  %v3518_v13 = vld [vmem:[%s4844_s24 + $0x20] sm:$0xf]  ;;  %v3863_v14 = vld [vmem:[%s4844_s24 + $0x28] sm:$0xf0]  ;;  %v3506_v16 = vld [vmem:[%s4844_s24 + $0x8] sm:$0xf] }
 0x2d1   : > { %1585 = vmatpush.bf16.msra.mxu1 %v3551_v33  ;;  %v3519_v15 = vor.u32 %v3863_v14, %v3518_v13  ;;  %v3860_v17 = vld [vmem:[%s4844_s24 + $0x10] sm:$0xf0]  ;;  %v3857_v19 = vld [vmem:[#allocation2 + $0x8] sm:$0xff]  ;;  %v1411_v20 = vld [vmem:[%s4884_s4] sm:$0x7]  ;;  %s4528_s24 = smov 96  }
 0x2d2   : > { %v3507_v18 = vor.u32 %v3860_v17, %v3506_v16  ;;  %v1412_v21 = vunpack.c.l.bf16 %v1411_v20  ;;  %s4529_s4 = smov 64   ;;  %s4530_s0 = smov 32   ;;  %vm1672_vm10 = vcmask 130048   ;;  %vm1958_vm11 = vcmask 523264  }
 0x2d3   : > { %s5583_s20 = sld [smem:[#allocation26_spill]]  ;;  %vm1961_vm12 = vcmask 785408   ;;  %p3768_p1 = scmp.ne.s32.totalorder %s4677_s6, 1 }
 0x2d4   : > { %1567 = vmatpush.bf16.msra.mxu0 %v3535_v38  ;;  %1603 = vmatpush.bf16.msra.mxu2 %v3567_v0  ;;  %v1415_v22 = vperm.slane %v1412_v21, 2  ;;  %v1414_v26 = vperm.slane %v1412_v21, 0  ;;  %v1416_v45 = vperm.slane %v1412_v21, 4  ;;  %s5585_s18 = sld [smem:[#allocation35_spill]] }
 0x2d5   : > { %1586 = vmatpush.bf16.msra.mxu1 %v3539_v39  ;;  %s5587_s21 = sld [smem:[#allocation36_spill]] }
 0x2d6   : > { %v1421_v25 = vperm.slane %v1415_v22, 0  ;;  %v5032_v28 = vperm.slane %v1414_v26, 0  ;;  %v5044_v47 = vperm.slane %v1416_v45, 0 }
 0x2d8   : > { %1568 = vmatpush.bf16.msra.mxu0 %v3523_v44  ;;  %1604 = vmatpush.bf16.msra.mxu2 %v3555_v2 }
 0x2d9   : > { %1587 = vmatpush.bf16.msra.mxu1 %v3527_v48  ;;  %v1632_v8 = vld [vmem:[%s5583_s20] sm:$0x3] }
 0x2da   : > { %s5586_s14 = scalar_lea.vmem %s5585_s18, %s4866_s7 }
 0x2db   : > { %s5588_s27 = scalar_lea.vmem %s5587_s21, %s4866_s7 }
 0x2dc   : > { %1569 = vmatpush.bf16.msra.mxu0 %v3511_v56  ;;  %1605 = vmatpush.bf16.msra.mxu2 %v3543_v9  ;;  %v1633_v9 = vcvt.s32.f32 %v1632_v8 }
 0x2dd   : > { %1588 = vmatpush.bf16.msra.mxu1 %v3515_v59 }
 0x2de   : > { %v1634_v10 = vsub.f32 1.0, %v1633_v9 }
 0x2e0   : > { %1570 = vmatpush.bf16.msra.mxu0 %v3499_v1  ;;  %1606 = vmatpush.bf16.msra.mxu2 %v3531_v12  ;;  %v5069_v11 = vmul.f32 -1e+09, %v1634_v10 }
 0x2e1   : > { %1589 = vmatpush.bf16.msra.mxu1 %v3503_v5 }
 0x2e2   : > { %v5072_v12 = vperm.slane %v5069_v11, 0 }
 0x2e3   : > { %1571 = vmatmul.bf16.vlgmr.msra.gmra.mxu0 %v3856_v6 }
 0x2e4   : > { %1590 = vmatmul.bf16.vlgmr.msra.gmra.mxu1 %v3856_v6  ;;  %1607 = vmatpush.bf16.msra.mxu2 %v3519_v15 }
 0x2e8   : > { %1608 = vmatpush.bf16.msra.mxu2 %v3507_v18 }
 0x2eb   : > { %1609 = vmatmul.bf16.vlgmr.msra.gmra.mxu2 %v3856_v6 }
 0x2f3   : > { %1576 = vmatmul.bf16.gmra.mxu0 %v3857_v19 }
 0x2f4   : > { %1595 = vmatmul.bf16.gmra.mxu1 %v3857_v19 }
 0x2fb   : > { %1614 = vmatmul.bf16.gmra.mxu2 %v3857_v19 }
 0x360   : > { %v1572_v23 = vpop.f32.mrf.mxu0 }
 0x361   : > { %v1591_v24 = vpop.f32.mrf.mxu1  ;;  %v1573_v33 = vadd.f32 %v1572_v23, %v5032_v28 }
 0x362   : > { %v1592_v27 = vadd.f32 %v1591_v24, %v1421_v25 }
 0x363   : > { %v1620_v38 = vpack.c.bf16 %v1573_v33, %v1573_v33 }
 0x364   : > { %v1624_v31 = vpack.c.bf16 %v1592_v27, %v1592_v27 }
 0x365   : > { %v1638_v43 = vunpack.c.l.b16 %v1620_v38 }
 0x366   : > { %v1643_v36 = vunpack.c.l.b16 %v1624_v31 }
 0x368   : > { %v1574_v29 = vpop.f32.mrf.mxu0 }
 0x369   : > { %v1593_v30 = vpop.f32.mrf.mxu1  ;;  %v1575_v34 = vadd.f32 %v1574_v29, %v5032_v28 }
 0x36a   : > { %v1594_v32 = vadd.f32 %v1593_v30, %v1421_v25 }
 0x36b   : > { %v1621_v39 = vpack.c.bf16 %v1575_v34, %v1575_v34 }
 0x36c   : > { %v1625_v35 = vpack.c.bf16 %v1594_v32, %v1594_v32 }
 0x36d   : > { %v1639_v44 = vunpack.c.l.b16 %v1621_v39 }
 0x36e   : > { %v1644_v37 = vunpack.c.l.b16 %v1625_v35  ;;  %v1610_v49 = vpop.f32.mrf.mxu2 }
 0x36f   : > { %v5042_v46 = vpack.c.b16 %v1639_v44, %v1638_v43  ;;  %v1611_v52 = vadd.f32 %v1610_v49, %v5044_v47 }
 0x370   : > { %v5036_v40 = vpack.c.b16 %v1644_v37, %v1643_v36  ;;  %v1577_v15 = vpop.f32.mrf.mxu0 }
 0x371   : > { %v1596_v41 = vpop.f32.mrf.mxu1  ;;  %v1628_v55 = vpack.c.bf16 %v1611_v52, %v1611_v52  ;;  %v1578_v18 = vadd.f32 %v1577_v15, %v5032_v28 }
 0x372   : > { %1721 = vrot.lane.b32.xlu2 %v5036_v40, %s4528_s24  ;;  %v1651_v42 = vsel %vm1646_vm9, %v5036_v40, 0  ;;  %v1597_v50 = vadd.f32 %v1596_v41, %v1421_v25 }
 0x373   : > { %1660 = vmatpush.bf16.xpose.msra.mxu3 %v1651_v42  ;;  %v1698_v60 = vunpack.c.l.b16 %v1628_v55  ;;  %v1622_v21 = vpack.c.bf16 %v1578_v18, %v1578_v18 }
 0x374   : > { %v1626_v53 = vpack.c.bf16 %v1597_v50, %v1597_v50 }
 0x375   : > { %v1966_v26 = vunpack.c.l.b16 %v1622_v21  ;;  %v1996_v21 = vperm.slane %v5069_v11, 1 }
 0x376   : > { %v1612_v56 = vpop.f32.mrf.mxu2  ;;  %v1971_v57 = vunpack.c.l.b16 %v1626_v53 }
 0x377   : > { %v1613_v59 = vadd.f32 %v1612_v56, %v5044_v47 }
 0x378   : > { %v1579_v22 = vpop.f32.mrf.mxu0 }
 0x379   : > { %v1598_v48 = vpop.f32.mrf.mxu1  ;;  %v1629_v61 = vpack.c.bf16 %v1613_v59, %v1613_v59  ;;  %v1580_v24 = vadd.f32 %v1579_v22, %v5032_v28 }
 0x37a   : > { %1719 = vrot.lane.b32.xlu2 %v5042_v46, %s4528_s24  ;;  %3592 = vmatmul.msk.bf16.vlgmr.msra.gmra.mxu3 %vm1646_vm9, %v5042_v46  ;;  %v1599_v51 = vadd.f32 %v1598_v48, %v1421_v25 }
 0x37b   : > { %v1699_v63 = vunpack.c.l.b16 %v1629_v61  ;;  %v1623_v27 = vpack.c.bf16 %v1580_v24, %v1580_v24 }
 0x37c   : > { %v1627_v54 = vpack.c.bf16 %v1599_v51, %v1599_v51 }
 0x37d   : > { %v5054_v0 = vpack.c.b16 %v1699_v63, %v1698_v60  ;;  %v1967_v29 = vunpack.c.l.b16 %v1623_v27 }
 0x37e   : > { %v1972_v58 = vunpack.c.l.b16 %v1627_v54 }
 0x37f   : > { %1712 = vmatpush.bf16.msrb.mxu3 %v5054_v0  ;;  %v1968_v30 = vpack.c.b16 %v1967_v29, %v1966_v26 }
 0x380   : > { %v1973_v62 = vpack.c.b16 %v1972_v58, %v1971_v57 }
 0x382   : > { %1792 = vrot.lane.b32.xlu2 %v5036_v40, %s4529_s4  ;;  %v1978_v34 = vsel %vm1646_vm9, %v1973_v62, 0 }
 0x383   : > { %1987 = vmatpush.bf16.xpose.msrb.mxu0 %v1978_v34 }
 0x38a   : > { %2047 = vrot.lane.b32.xlu2 %v1973_v62, %s4528_s24  ;;  %3600 = vmatmul.msk.bf16.vlgmr.msrb.gmra.mxu0 %vm1646_vm9, %v1968_v30 }
 0x392   : > { %1790 = vrot.lane.b32.xlu2 %v5042_v46, %s4529_s4 }
 0x39a   : > { %2189 = vrot.lane.b32.xlu2 %v1973_v62, %s4530_s0 }
 0x3a2   : > { %2116 = vrot.lane.b32.xlu2 %v1968_v30, %s4529_s4 }
 0x3cc   : > { %v1722_v1 = vpop.permute.xlu2 %1721 }
 0x3cd   : > { %v1727_v3 = vsel %vm1646_vm9, %v1722_v1, 0  ;;  %v5108_v1 = vpop.f32.mrf.mxu2 }
 0x3ce   : > { %1736 = vmatpush.bf16.xpose.msra.mxu3 %v1727_v3 }
 0x3d4   : > { %v5062_v4 = vpop.permute.xlu2 %1719 }
 0x3d5   : > { %v5110_v3 = vpop.f32.mrf.mxu2 }
 0x3dc   : > { %v1793_v5 = vpop.permute.xlu2 %1792 }
 0x3dd   : > { %v1798_v6 = vsel %vm1646_vm9, %v1793_v5, 0 }
 0x3de   : > { %1807 = vmatpush.bf16.xpose.msrb.mxu1 %v1798_v6 }
 0x3e4   : > { %v2048_v2 = vpop.permute.xlu2 %2047 }
 0x3e5   : > { %v2053_v45 = vsel %vm1646_vm9, %v2048_v2, 0 }
 0x3ec   : > { %v1791_v7 = vpop.permute.xlu2 %1790 }
 0x3ed   : > { %3596 = vmatmul.msk.bf16.vlgmr.msrb.gmra.mxu1 %vm1646_vm9, %v1791_v7 }
 0x3f4   : > { %v2190_v53 = vpop.permute.xlu2 %2189 }
 0x3fc   : > { %v2117_v54 = vpop.permute.xlu2 %2116 }
 0x3fd   : > { %v1662_v13 = vpop.f32.mrf.mxu3 }
 0x3fe   : > { %v1667_v14 = vmul.f32 0.17677669, %v1662_v13 }
 0x400   : > { %v1670_v16 = vadd.f32 %v5072_v12, %v1667_v14 }
 0x402   : > { %v1673_v17 = vsel %vm1672_vm10, %v1670_v16, -inf }
 0x403   : > { %1674 = vmax.xlane.f32.xlu0 %v1673_v17 }
 0x405   : > { %v1664_v19 = vpop.f32.mrf.mxu3 }
 0x406   : > { %v1668_v20 = vmul.f32 0.17677669, %v1664_v19 }
 0x407   : > { %v1989_v5 = vpop.f32.mrf.mxu0 }
 0x408   : > { %v1671_v23 = vadd.f32 %v5072_v12, %v1668_v20  ;;  %v1994_v18 = vmul.f32 0.17677669, %v1989_v5 }
 0x40a   : > { %v1676_v25 = vsel %vm1672_vm10, %v1671_v23, -inf  ;;  %v5132_v26 = vadd.f32 %v1996_v21, %v1994_v18 }
 0x40b   : > { %1677 = vmax.xlane.f32.xlu0 %v1676_v25 }
 0x40f   : > { %v1991_v13 = vpop.f32.mrf.mxu0 }
 0x410   : > { %v1995_v29 = vmul.f32 0.17677669, %v1991_v13 }
 0x41f   : > { %1863 = vrot.lane.b32.xlu0 %v5036_v40, %s4530_s0 }
 0x427   : > { %2045 = vrot.lane.b32.xlu0 %v1968_v30, %s4528_s24 }
 0x42f   : > { %2118 = vrot.lane.b32.xlu0 %v1973_v62, %s4529_s4  ;;  %v2195_v62 = vsel %vm1646_vm9, %v2190_v53, 0 }
 0x46a   : > { %v1809_v31 = vpop.f32.mrf.mxu1 }
 0x46b   : > { %v1814_v32 = vmul.f32 0.17677669, %v1809_v31 }
 0x46d   : > { %v5086_v28 = vadd.f32 %v1814_v32, %v5072_v12 }
 0x46f   : > { %v1818_v33 = vsel %vm1672_vm10, %v5086_v28, -inf }
 0x470   : > { %1819 = vmax.xlane.f32.xlu0 %v1818_v33 }
 0x472   : > { %v1811_v7 = vpop.f32.mrf.mxu1 }
 0x473   : > { %v1815_v10 = vmul.f32 0.17677669, %v1811_v7 }
 0x476   : > { %v1675_v35 = vpop.xlane.xlu0 %1674 }
 0x477   : > { %v1679_v36 = vsub.f32 %v1670_v16, %v1675_v35  ;;  %v5120_v16 = vadd.f32 %v1815_v10, %v5072_v12  ;;  %v5140_v35 = vadd.f32 %v1996_v21, %v1995_v29 }
 0x479   : > { %v1681_v37 = vmul.f32 1.442695, %v1679_v36  ;;  %v1821_v19 = vsel %vm1672_vm10, %v5120_v16, -inf }
 0x47b   : > { %4128 = vpow2.f32 %v1681_v37 }
 0x47e   : > { %v1678_v38 = vpop.xlane.xlu0 %1677 }
 0x47f   : > { %v1680_v39 = vsub.f32 %v1671_v23, %v1678_v38 }
 0x481   : > { %v4129_v40 = vpop.eup %4128  ;;  %v1683_v41 = vmul.f32 1.442695, %v1680_v39 }
 0x482   : > { %v1685_v42 = vsel %vm1672_vm10, %v4129_v40, 0.0 }
 0x483   : > { %4130 = vpow2.f32 %v1683_v41  ;;  %1686 = vadd.xlane.f32.xlu1 %v1685_v42 }
 0x489   : > { %v4131_v43 = vpop.eup %4130 }
 0x48a   : > { %v1688_v44 = vsel %vm1672_vm10, %v4131_v43, 0.0 }
 0x48b   : > { %1689 = vadd.xlane.f32.xlu1 %v1688_v44 }
 0x491   : > { %v1864_v48 = vpop.permute.xlu0 %1863 }
 0x492   : > { %v1869_v49 = vsel %vm1646_vm9, %v1864_v48, 0 }
 0x493   : > { %1878 = vmatpush.bf16.xpose.msrb.mxu2 %v1869_v49 }
 0x499   : > { %v2046_v50 = vpop.permute.xlu0 %2045 }
 0x49b   : > { %2062 = vmatpush.bf16.xpose.msra.mxu2 %v2053_v45 }
 0x4a1   : > { %v2119_v51 = vpop.permute.xlu0 %2118 }
 0x4a2   : > { %v2124_v52 = vsel %vm1646_vm9, %v2119_v51, 0 }
 0x4a3   : > { %2133 = vmatpush.bf16.xpose.msra.mxu0 %v2124_v52 }
 0x4a4   : > { %1861 = vrot.lane.b32.xlu1 %v5042_v46, %s4530_s0 }
 0x4aa   : > { %3604 = vmatmul.msk.bf16.vlgmr.msra.gmra.mxu0 %vm1646_vm9, %v2117_v54 }
 0x4ac   : > { %2187 = vrot.lane.b32.xlu1 %v1968_v30, %s4530_s0  ;;  %v1999_v30 = vsel %vm1672_vm10, %v5132_v26, -inf }
 0x4f6   : > { %v1687_v55 = vpop.xlane.xlu1 %1686 }
 0x4f7   : > { %4132 = vrcp.f32 %v1687_v55 }
 0x4fd   : > { %v4133_v57 = vpop.eup %4132 }
 0x4fe   : > { %v1690_v56 = vpop.xlane.xlu1 %1689  ;;  %v1693_v59 = vmul.f32 %v4133_v57, %v4129_v40  ;;  %v2002_v40 = vsel %vm1672_vm10, %v5140_v35, -inf }
 0x4ff   : > { %4134 = vrcp.f32 %v1690_v56 }
 0x505   : > { %v4135_v58 = vpop.eup %4134 }
 0x506   : > { %v1694_v60 = vmul.f32 %v4135_v58, %v4131_v43 }
 0x508   : > { %v1695_v61 = vpack.c.bf16 %v1694_v60, %v1693_v59 }
 0x50a   : > { %3593 = vmatmul.msk.bf16.vlgmr.msrb.gmra.mxu3 %vm1672_vm10, %v1695_v61 }
 0x516   : > { %v1862_v46 = vpop.permute.xlu1 %1861 }
 0x517   : > { %3598 = vmatmul.msk.bf16.vlgmr.msrb.gmra.mxu2 %vm1646_vm9, %v1862_v46 }
 0x518   : > { %2204 = vmatpush.bf16.xpose.msrb.mxu2 %v2195_v62  ;;  %v1820_v62 = vpop.xlane.xlu0 %1819 }
 0x51a   : > { %3594 = vmatmul.msk.bf16.vlgmr.msra.gmra.mxu3 %vm1646_vm9, %v5062_v4 }
 0x51e   : > { %v2188_v63 = vpop.permute.xlu1 %2187 }
 0x527   : > { %3602 = vmatmul.msk.bf16.vlgmr.msra.gmra.mxu2 %vm1646_vm9, %v2046_v50  ;;  %v2135_v23 = vpop.f32.mrf.mxu0 }
 0x528   : > { %v2140_v32 = vmul.f32 0.17677669, %v2135_v23 }
 0x52a   : > { %v5142_v37 = vadd.f32 %v2140_v32, %v1996_v21 }
 0x52c   : > { %v2144_v42 = vsel %vm1672_vm10, %v5142_v37, -inf }
 0x52f   : > { %v2137_v36 = vpop.f32.mrf.mxu0 }
 0x530   : > { %v2141_v39 = vmul.f32 0.17677669, %v2137_v36 }
 0x532   : > { %v5152_v45 = vadd.f32 %v2141_v39, %v1996_v21 }
 0x534   : > { %v2147_v52 = vsel %vm1672_vm10, %v5152_v45, -inf }
 0x537   : > { %3606 = vmatmul.msk.bf16.vlgmr.msrb.gmra.mxu2 %vm1646_vm9, %v2188_v63 }
 0x58d   : > { %v5115_v9 = vpop.f32.mrf.mxu3 }
 0x595   : > { %v5130_v22 = vpop.f32.mrf.mxu3 }
 0x59a   : > { %v1880_v6 = vpop.f32.mrf.mxu2 }
 0x59b   : > { %v1885_v2 = vmul.f32 0.17677669, %v1880_v6 }
 0x59d   : > { %v5113_v8 = vadd.f32 %v1885_v2, %v5072_v12  ;;  %v1738_v11 = vpop.f32.mrf.mxu3 }
 0x59e   : > { %v1743_v53 = vmul.f32 0.17677669, %v1738_v11 }
 0x59f   : > { %v1889_v4 = vsel %vm1672_vm10, %v5113_v8, -inf }
 0x5a0   : > { %1890 = vmax.xlane.f32.xlu2 %v1889_v4  ;;  %v1745_v57 = vadd.f32 %v1743_v53, %v5072_v12 }
 0x5a2   : > { %v1882_v14 = vpop.f32.mrf.mxu2  ;;  %v1747_v61 = vsel %vm1672_vm10, %v1745_v57, -inf }
 0x5a3   : > { %v1886_v15 = vmul.f32 0.17677669, %v1882_v14 }
 0x5a5   : > { %v5123_v17 = vadd.f32 %v1886_v15, %v5072_v12  ;;  %v1740_v48 = vpop.f32.mrf.mxu3 }
 0x5a6   : > { %v1744_v50 = vmul.f32 0.17677669, %v1740_v48 }
 0x5a7   : > { %v1892_v20 = vsel %vm1672_vm10, %v5123_v17, -inf }
 0x5a8   : > { %1822 = vmax.xlane.f32.xlu2 %v1821_v19  ;;  %1893 = vmax.xlane.f32.xlu1 %v1892_v20  ;;  %v1746_v56 = vadd.f32 %v1744_v50, %v5072_v12  ;;  %v1824_v12 = vsub.f32 %v5086_v28, %v1820_v62 }
 0x5aa   : > { %v2064_v24 = vpop.f32.mrf.mxu2  ;;  %v1750_v59 = vsel %vm1672_vm10, %v1746_v56, -inf  ;;  %v1826_v6 = vmul.f32 1.442695, %v1824_v12 }
 0x5ab   : > { %v2069_v25 = vmul.f32 0.17677669, %v2064_v24 }
 0x5ad   : > { %v5134_v27 = vadd.f32 %v2069_v25, %v1996_v21 }
 0x5af   : > { %v2073_v31 = vsel %vm1672_vm10, %v5134_v27, -inf }
 0x5b0   : > { %2000 = vmax.xlane.f32.xlu2 %v1999_v30  ;;  %2074 = vmax.xlane.f32.xlu1 %v2073_v31  ;;  %v1616_v30 = vadd.f32 %v5108_v1, %v5044_v47  ;;  %v1618_v31 = vadd.f32 %v5110_v3, %v5044_v47 }
 0x5b2   : > { %v2066_v33 = vpop.f32.mrf.mxu2  ;;  %v1630_v36 = vpack.c.bf16 %v1616_v30, %v1616_v30  ;;  %v1631_v39 = vpack.c.bf16 %v1618_v31, %v1618_v31 }
 0x5b3   : > { %v2070_v34 = vmul.f32 0.17677669, %v2066_v33 }
 0x5b5   : > { %v5144_v38 = vadd.f32 %v2070_v34, %v1996_v21 }
 0x5b7   : > { %v2076_v41 = vsel %vm1672_vm10, %v5144_v38, -inf }
 0x5b8   : > { %2003 = vmax.xlane.f32.xlu1 %v2002_v40  ;;  %2077 = vmax.xlane.f32.xlu0 %v2076_v41 }
 0x5b9   : > { %2145 = vmax.xlane.f32.xlu2 %v2144_v42 }
 0x5ba   : > { %v2206_v43 = vpop.f32.mrf.mxu2 }
 0x5bb   : > { %v2211_v44 = vmul.f32 0.17677669, %v2206_v43  ;;  %v2024_v43 = vunpack.c.l.b16 %v1630_v36 }
 0x5bd   : > { %v5154_v49 = vadd.f32 %v2211_v44, %v1996_v21  ;;  %v2025_v44 = vunpack.c.l.b16 %v1631_v39 }
 0x5bf   : > { %v2215_v51 = vsel %vm1672_vm10, %v5154_v49, -inf  ;;  %v5199_v47 = vpack.c.b16 %v2025_v44, %v2024_v43 }
 0x5c0   : > { %2216 = vmax.xlane.f32.xlu0 %v2215_v51  ;;  %2148 = vmax.xlane.f32.xlu1 %v2147_v52 }
 0x5c2   : > { %v2208_v54 = vpop.f32.mrf.mxu2 }
 0x5c3   : > { %v2212_v55 = vmul.f32 0.17677669, %v2208_v54 }
 0x5c5   : > { %v5162_v58 = vadd.f32 %v2212_v55, %v1996_v21 }
 0x5c7   : > { %v2218_v60 = vsel %vm1672_vm10, %v5162_v58, -inf }
 0x5c8   : > { %1751 = vmax.xlane.f32.xlu0 %v1750_v59  ;;  %2219 = vmax.xlane.f32.xlu2 %v2218_v60 }
 0x5c9   : > { %1748 = vmax.xlane.f32.xlu1 %v1747_v61 }
 0x5dc   : > { %1770 = vrot.lane.b32.xlu0 %v5054_v0, %s4528_s24 }
 0x613   : > { %v1891_v46 = vpop.xlane.xlu2 %1890 }
 0x614   : > { %v1895_v63 = vsub.f32 %v5113_v8, %v1891_v46 }
 0x616   : > { %v1897_v5 = vmul.f32 1.442695, %v1895_v63 }
 0x618   : > { %4136 = vpow2.f32 %v1897_v5 }
 0x619   : > { %4138 = vpow2.f32 %v1826_v6 }
 0x61b   : > { %v1894_v2 = vpop.xlane.xlu1 %1893  ;;  %v1823_v7 = vpop.xlane.xlu2 %1822 }
 0x61c   : > { %v1896_v10 = vsub.f32 %v5123_v17, %v1894_v2  ;;  %v1825_v14 = vsub.f32 %v5120_v16, %v1823_v7 }
 0x61e   : > { %v5173_v4 = vpop.eup %4136  ;;  %v1899_v13 = vmul.f32 1.442695, %v1896_v10  ;;  %v1828_v8 = vmul.f32 1.442695, %v1825_v14 }
 0x61f   : > { %v1901_v15 = vsel %vm1672_vm10, %v5173_v4, 0.0  ;;  %v5178_v18 = vpop.eup %4138 }
 0x620   : > { %1902 = vadd.xlane.f32.xlu2 %v1901_v15  ;;  %4140 = vpow2.f32 %v1899_v13  ;;  %v1830_v17 = vsel %vm1672_vm10, %v5178_v18, 0.0 }
 0x621   : > { %4142 = vpow2.f32 %v1828_v8 }
 0x623   : > { %v2075_v28 = vpop.xlane.xlu1 %2074  ;;  %v2001_v48 = vpop.xlane.xlu2 %2000 }
 0x624   : > { %v2079_v41 = vsub.f32 %v5134_v27, %v2075_v28  ;;  %v2005_v50 = vsub.f32 %v5132_v26, %v2001_v48 }
 0x626   : > { %v5180_v19 = vpop.eup %4140  ;;  %v2081_v1 = vmul.f32 1.442695, %v2079_v41  ;;  %v2007_v53 = vmul.f32 1.442695, %v2005_v50 }
 0x627   : > { %v1904_v20 = vsel %vm1672_vm10, %v5180_v19, 0.0  ;;  %v5188_v23 = vpop.eup %4142 }
 0x628   : > { %1831 = vadd.xlane.f32.xlu2 %v1830_v17  ;;  %1905 = vadd.xlane.f32.xlu1 %v1904_v20  ;;  %v1833_v24 = vsel %vm1672_vm10, %v5188_v23, 0.0 }
 0x62b   : > { %v2004_v16 = vpop.xlane.xlu1 %2003  ;;  %v5186_v21 = vpop.xlane.xlu0 %2077 }
 0x62c   : > { %v2006_v26 = vsub.f32 %v5140_v35, %v2004_v16  ;;  %v2146_v59 = vpop.xlane.xlu2 %2145  ;;  %v2080_v8 = vsub.f32 %v5144_v38, %v5186_v21 }
 0x62d   : > { %v2150_v35 = vsub.f32 %v5142_v37, %v2146_v59 }
 0x62e   : > { %v2083_v17 = vmul.f32 1.442695, %v2080_v8 }
 0x630   : > { %1834 = vadd.xlane.f32.xlu1 %v1833_v24 }
 0x633   : > { %v2149_v25 = vpop.xlane.xlu1 %2148  ;;  %v2217_v29 = vpop.xlane.xlu0 %2216 }
 0x634   : > { %v2221_v61 = vsub.f32 %v5154_v49, %v2217_v29  ;;  %v2152_v49 = vmul.f32 1.442695, %v2150_v35  ;;  %v2151_v10 = vsub.f32 %v5152_v45, %v2149_v25 }
 0x636   : > { %v2223_v46 = vmul.f32 1.442695, %v2221_v61 }
 0x63b   : > { %v1752_v32 = vpop.xlane.xlu0 %1751  ;;  %v2220_v63 = vpop.xlane.xlu2 %2219 }
 0x63c   : > { %v1749_v11 = vpop.xlane.xlu1 %1748  ;;  %v1754_v33 = vsub.f32 %v1746_v56, %v1752_v32  ;;  %v2222_v5 = vsub.f32 %v5162_v58, %v2220_v63 }
 0x63d   : > { %v1753_v34 = vsub.f32 %v1745_v57, %v1749_v11  ;;  %v2009_v57 = vmul.f32 1.442695, %v2006_v26 }
 0x63e   : > { %v1757_v40 = vmul.f32 1.442695, %v1754_v33  ;;  %v2225_v2 = vmul.f32 1.442695, %v2222_v5 }
 0x63f   : > { %v1755_v42 = vmul.f32 1.442695, %v1753_v34 }
 0x640   : > { %1912 = vrot.lane.b32.xlu2 %v5054_v0, %s4530_s0 }
 0x641   : > { %4144 = vpow2.f32 %v1755_v42 }
 0x642   : > { %4146 = vpow2.f32 %v1757_v40 }
 0x643   : > { %4148 = vpow2.f32 %v2081_v1 }
 0x644   : > { %4150 = vpow2.f32 %v2007_v53 }
 0x645   : > { %4152 = vpow2.f32 %v2009_v57 }
 0x646   : > { %4154 = vpow2.f32 %v2223_v46 }
 0x647   : > { %v5201_v3 = vpop.eup %4144  ;;  %4156 = vpow2.f32 %v2152_v49 }
 0x648   : > { %v5204_v51 = vpop.eup %4146  ;;  %v1759_v27 = vsel %vm1672_vm10, %v5201_v3, 0.0  ;;  %2096 = vrot.lane.b32.xlu2 %v5199_v47, %s4528_s24  ;;  %4158 = vpow2.f32 %v2225_v2 }
 0x649   : > { %1760 = vadd.xlane.f32.xlu1 %v1759_v27  ;;  %v1762_v52 = vsel %vm1672_vm10, %v5204_v51, 0.0  ;;  %v5212_v54 = vpop.eup %4148 }
 0x64a   : > { %1763 = vadd.xlane.f32.xlu0 %v1762_v52  ;;  %v2085_v56 = vsel %vm1672_vm10, %v5212_v54, 0.0  ;;  %v5217_v60 = vpop.eup %4150 }
 0x64b   : > { %v2011_v62 = vsel %vm1672_vm10, %v5217_v60, 0.0  ;;  %v5222_v12 = vpop.eup %4152 }
 0x64c   : > { %v2014_v6 = vsel %vm1672_vm10, %v5222_v12, 0.0  ;;  %v5230_v7 = vpop.eup %4154 }
 0x64d   : > { %v2227_v37 = vsel %vm1672_vm10, %v5230_v7, 0.0  ;;  %v5235_v13 = vpop.eup %4156 }
 0x64e   : > { %v1771_v55 = vpop.permute.xlu0 %1770  ;;  %v5237_v58 = vpop.eup %4158  ;;  %v2156_v14 = vsel %vm1672_vm10, %v5235_v13, 0.0 }
 0x64f   : > { %1783 = vmatpush.bf16.msrb.mxu3 %v1771_v55  ;;  %v2230_v15 = vsel %vm1672_vm10, %v5237_v58, 0.0 }
 0x651   : > { %2086 = vadd.xlane.f32.xlu1 %v2085_v56 }
 0x659   : > { %2012 = vadd.xlane.f32.xlu1 %v2011_v62 }
 0x65e   : > { %1841 = vrot.lane.b32.xlu0 %v5054_v0, %s4529_s4  ;;  %v2154_v0 = vmul.f32 1.442695, %v2151_v10 }
 0x660   : > { %4160 = vpow2.f32 %v2154_v0 }
 0x661   : > { %2015 = vadd.xlane.f32.xlu1 %v2014_v6  ;;  %4162 = vpow2.f32 %v2083_v17 }
 0x666   : > { %v5243_v45 = vpop.eup %4160 }
 0x667   : > { %v2159_v28 = vsel %vm1672_vm10, %v5243_v45, 0.0  ;;  %v5249_v20 = vpop.eup %4162 }
 0x668   : > { %v2088_v16 = vsel %vm1672_vm10, %v5249_v20, 0.0 }
 0x669   : > { %2228 = vadd.xlane.f32.xlu1 %v2227_v37 }
 0x671   : > { %2157 = vadd.xlane.f32.xlu1 %v2156_v14  ;;  %2231 = vadd.xlane.f32.xlu2 %v2230_v15 }
 0x679   : > { %2160 = vadd.xlane.f32.xlu1 %v2159_v28 }
 0x688   : > { %2089 = vadd.xlane.f32.xlu0 %v2088_v16 }
 0x692   : > { %2238 = vrot.lane.b32.xlu1 %v5199_v47, %s4530_s0 }
 0x693   : > { %v1903_v24 = vpop.xlane.xlu2 %1902 }
 0x69b   : > { %v1832_v25 = vpop.xlane.xlu2 %1831  ;;  %v1906_v21 = vpop.xlane.xlu1 %1905 }
 0x69c   : > { %2167 = vrot.lane.b32.xlu0 %v5199_v47, %s4529_s4 }
 0x6a3   : > { %v1913_v38 = vpop.permute.xlu2 %1912  ;;  %v1835_v29 = vpop.xlane.xlu1 %1834 }
 0x6a4   : > { %1925 = vmatpush.bf16.msra.mxu3 %v1913_v38 }
 0x6ab   : > { %v2097_v40 = vpop.permute.xlu2 %2096 }
 0x6bc   : > { %v1761_v30 = vpop.xlane.xlu1 %1760 }
 0x6bd   : > { %4164 = vrcp.f32 %v1761_v30  ;;  %v1764_v31 = vpop.xlane.xlu0 %1763 }
 0x6be   : > { %4166 = vrcp.f32 %v1764_v31 }
 0x6bf   : > { %4168 = vrcp.f32 %v1835_v29 }
 0x6c0   : > { %4170 = vrcp.f32 %v1832_v25 }
 0x6c1   : > { %4172 = vrcp.f32 %v1906_v21 }
 0x6c2   : > { %4174 = vrcp.f32 %v1903_v24 }
 0x6c3   : > { %v4165_v32 = vpop.eup %4164 }
 0x6c4   : > { %v4167_v11 = vpop.eup %4166  ;;  %v1767_v33 = vmul.f32 %v4165_v32, %v5201_v3  ;;  %v2087_v34 = vpop.xlane.xlu1 %2086 }
 0x6c5   : > { %v1768_v36 = vmul.f32 %v4167_v11, %v5204_v51  ;;  %v4169_v41 = vpop.eup %4168  ;;  %v3889_v11 = vld [vmem:[%s4850_s1 + $0x38] sm:$0xff] }
 0x6c6   : > { %v4171_v43 = vpop.eup %4170  ;;  %v1839_v44 = vmul.f32 %v4169_v41, %v5188_v23  ;;  %2357 = vmatpush.bf16.msrb.mxu0 %v3889_v11 }
 0x6c7   : > { %v1769_v39 = vpack.c.bf16 %v1768_v36, %v1767_v33  ;;  %v4173_v1 = vpop.eup %4172  ;;  %v1838_v48 = vmul.f32 %v4171_v43, %v5178_v18  ;;  %v3885_v43 = vld [vmem:[%s4850_s1 + $0x18] sm:$0xff] }
 0x6c8   : > { %v4175_v50 = vpop.eup %4174  ;;  %v1910_v27 = vmul.f32 %v4173_v1, %v5180_v19  ;;  %v3883_v1 = vld [vmem:[%s4850_s1 + $0x8] sm:$0xff] }
 0x6c9   : > { %3595 = vmatmul.msk.bf16.vlgmr.msrb.gmra.mxu3 %vm1672_vm10, %v1769_v39  ;;  %v1840_v51 = vpack.c.bf16 %v1839_v44, %v1838_v48  ;;  %v1909_v53 = vmul.f32 %v4175_v50, %v5173_v4  ;;  %v3887_v39 = vld [vmem:[%s4850_s1 + $0x28] sm:$0xff]  ;;  %v3884_v44 = vld [vmem:[%s4850_s1 + $0x10] sm:$0xff]  ;;  %v3882_v48 = vld [vmem:[%s4850_s1] sm:$0xff] }
 0x6ca   : > { %2109 = vmatpush.bf16.msrb.mxu3 %v2097_v40 }
 0x6cb   : > { %v1911_v55 = vpack.c.bf16 %v1910_v27, %v1909_v53 }
 0x6cc   : > { %v2013_v42 = vpop.xlane.xlu1 %2012 }
 0x6d0   : > { %v1842_v3 = vpop.permute.xlu0 %1841 }
 0x6d1   : > { %1854 = vmatpush.bf16.msra.mxu1 %v1842_v3 }
 0x6d4   : > { %3597 = vmatmul.msk.bf16.vlgmr.msra.gmra.mxu1 %vm1672_vm10, %v1840_v51  ;;  %v2016_v52 = vpop.xlane.xlu1 %2015 }
 0x6d5   : > { %2038 = vmatpush.bf16.msrb.mxu1 %v5199_v47  ;;  %4176 = vrcp.f32 %v2016_v52 }
 0x6d6   : > { %4178 = vrcp.f32 %v2013_v42  ;;  %v3886_v42 = vld [vmem:[%s4850_s1 + $0x20] sm:$0xff] }
 0x6d7   : > { %4180 = vrcp.f32 %v2087_v34  ;;  %v3888_v34 = vld [vmem:[%s4850_s1 + $0x30] sm:$0xff] }
 0x6d8   : > { %2358 = vmatpush.bf16.msrb.mxu0 %v3888_v34 }
 0x6d9   : > { %3599 = vmatmul.msk.bf16.vlgmr.msra.gmra.mxu3 %vm1672_vm10, %v1911_v55 }
 0x6db   : > { %v4177_v23 = vpop.eup %4176 }
 0x6dc   : > { %v4179_v18 = vpop.eup %4178  ;;  %v2020_v26 = vmul.f32 %v4177_v23, %v5222_v12  ;;  %v2229_v19 = vpop.xlane.xlu1 %2228  ;;  %2359 = vmatpush.bf16.msrb.mxu0 %v3887_v39 }
 0x6dd   : > { %v2019_v56 = vmul.f32 %v4179_v18, %v5217_v60  ;;  %v4181_v4 = vpop.eup %4180 }
 0x6de   : > { %v2093_v46 = vmul.f32 %v4181_v4, %v5212_v54 }
 0x6df   : > { %v2021_v57 = vpack.c.bf16 %v2020_v26, %v2019_v56 }
 0x6e0   : > { %2360 = vmatpush.bf16.msrb.mxu0 %v3886_v42 }
 0x6e4   : > { %3601 = vmatmul.msk.bf16.vlgmr.msrb.gmra.mxu1 %vm1672_vm10, %v2021_v57  ;;  %v2158_v47 = vpop.xlane.xlu1 %2157  ;;  %v2232_v12 = vpop.xlane.xlu2 %2231  ;;  %2361 = vmatpush.bf16.msrb.mxu0 %v3885_v43 }
 0x6e8   : > { %2362 = vmatpush.bf16.msrb.mxu0 %v3884_v44 }
 0x6ec   : > { %v2161_v61 = vpop.xlane.xlu1 %2160  ;;  %2363 = vmatpush.bf16.msrb.mxu0 %v3883_v1 }
 0x6f0   : > { %2364 = vmatpush.bf16.msrb.mxu0 %v3882_v48 }
 0x6fb   : > { %v2090_v59 = vpop.xlane.xlu0 %2089 }
 0x6fc   : > { %4182 = vrcp.f32 %v2090_v59 }
 0x6fd   : > { %4184 = vrcp.f32 %v2161_v61 }
 0x6fe   : > { %4186 = vrcp.f32 %v2158_v47 }
 0x6ff   : > { %4188 = vrcp.f32 %v2232_v12 }
 0x700   : > { %4190 = vrcp.f32 %v2229_v19 }
 0x702   : > { %v4183_v62 = vpop.eup %4182 }
 0x703   : > { %v2094_v63 = vmul.f32 %v4183_v62, %v5249_v20  ;;  %v4185_v5 = vpop.eup %4184 }
 0x704   : > { %v2239_v35 = vpop.permute.xlu1 %2238  ;;  %v4187_v6 = vpop.eup %4186  ;;  %v2165_v49 = vmul.f32 %v4185_v5, %v5243_v45 }
 0x705   : > { %v2095_v60 = vpack.c.bf16 %v2094_v63, %v2093_v46  ;;  %2251 = vmatpush.bf16.msra.mxu3 %v2239_v35  ;;  %v4189_v2 = vpop.eup %4188  ;;  %v2164_v10 = vmul.f32 %v4187_v6, %v5235_v13 }
 0x706   : > { %v4191_v37 = vpop.eup %4190  ;;  %v2236_v14 = vmul.f32 %v4189_v2, %v5237_v58 }
 0x707   : > { %3603 = vmatmul.msk.bf16.vlgmr.msrb.gmra.mxu3 %vm1672_vm10, %v2095_v60  ;;  %v2166_v0 = vpack.c.bf16 %v2165_v49, %v2164_v10  ;;  %v2235_v15 = vmul.f32 %v4191_v37, %v5230_v7 }
 0x709   : > { %v2237_v8 = vpack.c.bf16 %v2236_v14, %v2235_v15  ;;  %v1375_v15 = vld [vmem:[#allocation2] sm:$0xff]  }
 0x70e   : > { %v2168_v54 = vpop.permute.xlu0 %2167 }
 0x70f   : > { %2180 = vmatpush.bf16.msra.mxu1 %v2168_v54 }
 0x712   : > { %3605 = vmatmul.msk.bf16.vlgmr.msra.gmra.mxu1 %vm1672_vm10, %v2166_v0  ;;  %v2306_v0 = vld [vmem:[%s5584_s28] sm:$0x1]  ;;  %s5593_s28 = sld [smem:[#allocation44_spill]] (!%p3768_p1) }
 0x713   : > { %v2307_v14 = vunpack.c.l.bf16 %v2306_v0  ;;  %v3898_v0 = vld [vmem:[%s4852_s25 + $0x44] sm:$0xf] }
 0x717   : > { %3607 = vmatmul.msk.bf16.vlgmr.msra.gmra.mxu3 %vm1672_vm10, %v2237_v8  ;;  %v2308_v8 = vperm.slane %v2307_v14, 0 }
 0x74c   : > { %v1785_v28 = vpop.f32.mrf.mxu3 }
 0x751   : > { %v1856_v17 = vpop.f32.mrf.mxu1 }
 0x754   : > { %v1787_v20 = vpop.f32.mrf.mxu3 }
 0x755   : > { %v4098_v45 = vpack.i.bf16 %v1787_v20, %v1785_v28  ;;  %v2376_v28 = vunpack.c.l.bf16 %v1375_v15 }
 0x757   : > { %4099 = vrot.lane.b32.xlu0 %v4098_v45, %s4530_s0 }
 0x759   : > { %v1858_v13 = vpop.f32.mrf.mxu1 }
 0x75a   : > { %v4103_v16 = vpack.i.bf16 %v1858_v13, %v1856_v17  ;;  %v2377_v13 = vunpack.c.h.bf16 %v1375_v15  ;;  %v3676_v15 = vld [vmem:[%s4852_s25 + $0x48] sm:$0xf0] }
 0x75c   : > { %v1927_v24 = vpop.f32.mrf.mxu3  ;;  %4104 = vrot.lane.b32.xlu2 %v4103_v16, %s4529_s4 }
 0x761   : > { %v2040_v7 = vpop.f32.mrf.mxu1 }
 0x764   : > { %v1929_v58 = vpop.f32.mrf.mxu3 }
 0x765   : > { %v4108_v25 = vpack.i.bf16 %v1929_v58, %v1927_v24 }
 0x767   : > { %4109 = vrot.lane.b32.xlu1 %v4108_v25, %s4528_s24  ;;  %v1377_v25 = vld [vmem:[#allocation2 + $0x8] sm:$0xff]  }
 0x769   : > { %v2042_v38 = vpop.f32.mrf.mxu1 }
 0x78a   : > { %v2111_v21 = vpop.f32.mrf.mxu3 }
 0x78f   : > { %v2182_v29 = vpop.f32.mrf.mxu1 }
 0x792   : > { %v2113_v30 = vpop.f32.mrf.mxu3 }
 0x793   : > { %v4118_v31 = vpack.i.bf16 %v2113_v30, %v2111_v21  ;;  %v2379_v30 = vunpack.c.h.bf16 %v1377_v25 }
 0x795   : > { %4119 = vrot.lane.b32.xlu0 %v4118_v31, %s4530_s0 }
 0x797   : > { %v2184_v32 = vpop.f32.mrf.mxu1 }
 0x798   : > { %v4113_v33 = vpack.i.bf16 %v2184_v32, %v2182_v29 }
 0x79a   : > { %v2253_v36 = vpop.f32.mrf.mxu3  ;;  %4114 = vrot.lane.b32.xlu1 %v4113_v33, %s4529_s4  ;;  %v4531_v33 = vmov 128.0  }
 0x79b   : > { %4192 = vrcp.f32 %v4531_v33  ;;  %v3642_v33 = vld [vmem:[%s4852_s25] sm:$0xf] }
 0x7a1   : > { %v4193_v34 = vpop.eup %4192 }
 0x7a2   : > { %v2255_v40 = vpop.f32.mrf.mxu3  ;;  %vm2399_vm13 = vweird.f32 %v4193_v34 }
 0x7a3   : > { %v4123_v41 = vpack.i.bf16 %v2255_v40, %v2253_v36  ;;  %v2395_v36 = vmul.f32 128.0, %v4193_v34 }
 0x7a5   : > { %4124 = vrot.lane.b32.xlu0 %v4123_v41, %s4528_s24  ;;  %v2396_v39 = vsub.f32 1.0, %v2395_v36 }
 0x7a7   : > { %v2397_v40 = vmul.f32 %v4193_v34, %v2396_v39 }
 0x7a9   : > { %v2398_v41 = vadd.f32 %v4193_v34, %v2397_v40  ;;  %v3890_v40 = vld [vmem:[%s4852_s25 + $0x4] sm:$0xf] }
 0x7ab   : > { %v5312_v42 = vsel %vm2399_vm13, %v4193_v34, %v2398_v41  ;;  %v3891_v34 = vld [vmem:[%s4852_s25 + $0x4] sm:$0xf0]  ;;  %v3644_v41 = vld [vmem:[%s4852_s25 + $0x8] sm:$0xf0] }
 0x7b6   : > { %v4105_v27 = vpop.permute.xlu2 %4104 }
 0x7b7   : > { %v4107_v55 = vunpack.i.h.bf16 %v4105_v27  ;;  %v4106_v23 = vunpack.i.l.bf16 %v4105_v27 }
 0x7c9   : > { %v4100_v3 = vpop.permute.xlu0 %4099 }
 0x7ca   : > { %v4102_v50 = vunpack.i.h.bf16 %v4100_v3  ;;  %v4101_v51 = vunpack.i.l.bf16 %v4100_v3 }
 0x7cc   : > { %v1957_v52 = vsel %vm1646_vm9, %v5130_v22, %v4102_v50  ;;  %v1956_v53 = vsel %vm1646_vm9, %v5115_v9, %v4101_v51 }
 0x7cd   : > { %v1959_v57 = vsel %vm1958_vm11, %v1956_v53, %v4106_v23  ;;  %v1960_v19 = vsel %vm1958_vm11, %v1957_v52, %v4107_v55 }
 0x7d9   : > { %v4110_v18 = vpop.permute.xlu1 %4109 }
 0x7da   : > { %v4112_v26 = vunpack.i.h.bf16 %v4110_v18  ;;  %v4111_v56 = vunpack.i.l.bf16 %v4110_v18 }
 0x7dc   : > { %v1962_v47 = vsel %vm1961_vm12, %v1959_v57, %v4111_v56  ;;  %v1963_v59 = vsel %vm1961_vm12, %v1960_v19, %v4112_v26  ;;  %v3698_v19 = vld [vmem:[%s4852_s25 + $0x70] sm:$0xf] }
 0x7dd   : > { %v2288_v61 = vpack.c.bf16 %v1963_v59, %v1962_v47  ;;  %v3905_v47 = vld [vmem:[%s4852_s25 + $0x74] sm:$0xf0]  ;;  %v3904_v59 = vld [vmem:[%s4852_s25 + $0x74] sm:$0xf] }
 0x7df   : > { %2365 = vmatmul.bf16.vlgmr.msrb.gmra.mxu0 %v2288_v61  ;;  %v3699_v61 = vor.u32 %v3905_v47, %v3698_v19 }
 0x7e1   : > { %2592 = vmatpush.bf16.msrb.mxu1 %v3699_v61  ;;  %v2384_v61 = vld [vmem:[%s5586_s14] sm:$0x1] }
 0x807   : > { %v4120_v22 = vpop.permute.xlu0 %4119 }
 0x808   : > { %v4122_v9 = vunpack.i.h.bf16 %v4120_v22  ;;  %v4121_v62 = vunpack.i.l.bf16 %v4120_v22  ;;  %v3700_v22 = vld [vmem:[%s4852_s25 + $0x78] sm:$0xf0] }
 0x80a   : > { %v2283_v12 = vsel %vm1646_vm9, %v2042_v38, %v4122_v9  ;;  %v2282_v60 = vsel %vm1646_vm9, %v2040_v7, %v4121_v62  ;;  %v2378_v7 = vunpack.c.l.bf16 %v1377_v25  ;;  %v3690_v9 = vld [vmem:[%s4852_s25 + $0x60] sm:$0xf]  ;;  %v3903_v62 = vld [vmem:[%s4852_s25 + $0x64] sm:$0xf0]  ;;  %v3894_v25 = vld [vmem:[%s4852_s25 + $0x24] sm:$0xf] }
 0x80c   : > { %v4115_v4 = vpop.permute.xlu1 %4114 }
 0x80d   : > { %v4117_v46 = vunpack.i.h.bf16 %v4115_v4  ;;  %v4116_v63 = vunpack.i.l.bf16 %v4115_v4  ;;  %v3703_v4 = vor.u32 %v3904_v59, %v3700_v22 }
 0x80f   : > { %v2284_v49 = vsel %vm1958_vm11, %v2282_v60, %v4116_v63  ;;  %v2285_v2 = vsel %vm1958_vm11, %v2283_v12, %v4117_v46  ;;  %2611 = vmatpush.bf16.msra.mxu2 %v3703_v4  ;;  %v3902_v46 = vld [vmem:[%s4852_s25 + $0x64] sm:$0xf]  ;;  %v3691_v63 = vor.u32 %v3903_v62, %v3690_v9  ;;  %v3682_v60 = vld [vmem:[%s4852_s25 + $0x50] sm:$0xf]  ;;  %v2473_v4 = vunpack.c.l.bf16 %v2384_v61 }
 0x811   : > { %2593 = vmatpush.bf16.msrb.mxu1 %v3691_v63 }
 0x817   : > { %v4125_v35 = vpop.permute.xlu0 %4124 }
 0x818   : > { %v4127_v5 = vunpack.i.h.bf16 %v4125_v35  ;;  %v4126_v6 = vunpack.i.l.bf16 %v4125_v35  ;;  %v3692_v35 = vld [vmem:[%s4852_s25 + $0x68] sm:$0xf0] }
 0x819   : > { %v3695_v12 = vor.u32 %v3902_v46, %v3692_v35  ;;  %v2385_v46 = vld [vmem:[%s5588_s27] sm:$0x1] }
 0x81a   : > { %v2286_v10 = vsel %vm1961_vm12, %v2284_v49, %v4126_v6  ;;  %v2287_v54 = vsel %vm1961_vm12, %v2285_v2, %v4127_v5  ;;  %v3901_v5 = vld [vmem:[%s4852_s25 + $0x54] sm:$0xf0]  ;;  %v3900_v6 = vld [vmem:[%s4852_s25 + $0x54] sm:$0xf]  ;;  %v3684_v2 = vld [vmem:[%s4852_s25 + $0x58] sm:$0xf0] }
 0x81b   : > { %v2289_v37 = vpack.c.bf16 %v2287_v54, %v2286_v10  ;;  %2612 = vmatpush.bf16.msra.mxu2 %v3695_v12  ;;  %v3683_v49 = vor.u32 %v3901_v5, %v3682_v60  ;;  %v3687_v10 = vor.u32 %v3900_v6, %v3684_v2  ;;  %v3674_v54 = vld [vmem:[%s4852_s25 + $0x40] sm:$0xf]  ;;  %v2474_v12 = vperm.slane %v2473_v4, 0 }
 0x81c   : > { %v2479_v60 = vunpack.c.l.bf16 %v2385_v46  ;;  %v3914_v46 = vld [vmem:[%s4858_s19 + $0x40] sm:$0xff] }
 0x81d   : > { %2370 = vmatmul.bf16.gmra.mxu0 %v2289_v37  ;;  %2594 = vmatpush.bf16.msrb.mxu1 %v3683_v49  ;;  %v3899_v37 = vld [vmem:[%s4852_s25 + $0x44] sm:$0xf0] }
 0x81e   : > { %v3675_v14 = vor.u32 %v3899_v37, %v3674_v54 }
 0x81f   : > { %2613 = vmatpush.bf16.msra.mxu2 %v3687_v10  ;;  %v2480_v10 = vperm.slane %v2479_v60, 0 }
 0x821   : > { %2595 = vmatpush.bf16.msrb.mxu1 %v3675_v14 }
 0x85c   : > { %v2366_v17 = vpop.f32.mrf.mxu0 }
 0x85d   : > { %v2367_v20 = vadd.f32 %v2366_v17, %v2308_v8  ;;  %v3897_v17 = vld [vmem:[%s4852_s25 + $0x34] sm:$0xf0] }
 0x85f   : > { %v2380_v45 = vadd.f32 %v2376_v28, %v2367_v20  ;;  %v3666_v28 = vld [vmem:[%s4852_s25 + $0x30] sm:$0xf]  ;;  %v3896_v20 = vld [vmem:[%s4852_s25 + $0x34] sm:$0xf] }
 0x861   : > { %2386 = vadd.xlane.f32.xlu1 %v2380_v45 }
 0x864   : > { %v2368_v16 = vpop.f32.mrf.mxu0 }
 0x865   : > { %v2369_v24 = vadd.f32 %v2368_v16, %v2308_v8 }
 0x867   : > { %v2381_v58 = vadd.f32 %v2377_v13, %v2369_v24  ;;  %v3668_v13 = vld [vmem:[%s4852_s25 + $0x38] sm:$0xf0]  ;;  %v3658_v24 = vld [vmem:[%s4852_s25 + $0x20] sm:$0xf] }
 0x868   : > { %v3671_v16 = vor.u32 %v3896_v20, %v3668_v13 }
 0x869   : > { %2388 = vadd.xlane.f32.xlu0 %v2381_v58 }
 0x89a   : > { %v2371_v38 = vpop.f32.mrf.mxu0 }
 0x89b   : > { %v2372_v21 = vadd.f32 %v2371_v38, %v2308_v8  ;;  %v3660_v38 = vld [vmem:[%s4852_s25 + $0x28] sm:$0xf0] }
 0x89d   : > { %v2382_v29 = vadd.f32 %v2378_v7, %v2372_v21  ;;  %v3663_v21 = vor.u32 %v3894_v25, %v3660_v38 }
 0x89f   : > { %2390 = vadd.xlane.f32.xlu2 %v2382_v29 }
 0x8a2   : > { %v2373_v31 = vpop.f32.mrf.mxu0 }
 0x8a3   : > { %v2374_v32 = vadd.f32 %v2373_v31, %v2308_v8  ;;  %v3679_v8 = vor.u32 %v3898_v0, %v3676_v15  ;;  %v3892_v31 = vld [vmem:[%s4852_s25 + $0x14] sm:$0xf] }
 0x8a5   : > { %v2383_v11 = vadd.f32 %v2379_v30, %v2374_v32  ;;  %2614 = vmatpush.bf16.msra.mxu2 %v3679_v8  ;;  %v3893_v30 = vld [vmem:[%s4852_s25 + $0x14] sm:$0xf0] }
 0x8a7   : > { %2392 = vadd.xlane.f32.xlu1 %v2383_v11 }
 0x8a9   : > { %2615 = vmatpush.bf16.msra.mxu2 %v3671_v16 }
 0x8ad   : > { %2616 = vmatpush.bf16.msra.mxu2 %v3663_v21 }
 0x8d4   : > { %v2387_v43 = vpop.xlane.xlu1 %2386 }
 0x8d5   : > { %v2401_v44 = vmul.f32 %v5312_v42, %v2387_v43 }
 0x8d7   : > { %v5315_v1 = vsub.f32 %v2380_v45, %v2401_v44  ;;  %v3667_v45 = vor.u32 %v3897_v17, %v3666_v28  ;;  %v3643_v44 = vor.u32 %v3891_v34, %v3642_v33 }
 0x8d9   : > { %v2409_v48 = vmul.f32 %v5315_v1, %v5315_v1  ;;  %2596 = vmatpush.bf16.msrb.mxu1 %v3667_v45 }
 0x8db   : > { %2413 = vadd.xlane.f32.xlu0 %v2409_v48  ;;  %v3647_v48 = vor.u32 %v3890_v40, %v3644_v41  ;;  %v3913_v41 = vld [vmem:[%s4858_s19 + $0x38] sm:$0xff] }
 0x8dc   : > { %v2389_v3 = vpop.xlane.xlu0 %2388  ;;  %2837 = vmatpush.bf16.msrb.mxu3 %v3913_v41 }
 0x8dd   : > { %v2402_v50 = vmul.f32 %v5312_v42, %v2389_v3 }
 0x8df   : > { %v5320_v51 = vsub.f32 %v2381_v58, %v2402_v50  ;;  %v3895_v58 = vld [vmem:[%s4852_s25 + $0x24] sm:$0xf0] }
 0x8e0   : > { %v3659_v7 = vor.u32 %v3895_v58, %v3658_v24 }
 0x8e1   : > { %v2410_v27 = vmul.f32 %v5320_v51, %v5320_v51 }
 0x8e2   : > { %2597 = vmatpush.bf16.msrb.mxu1 %v3659_v7 }
 0x8e3   : > { %2415 = vadd.xlane.f32.xlu2 %v2410_v27 }
 0x912   : > { %v2391_v52 = vpop.xlane.xlu2 %2390 }
 0x913   : > { %v2403_v53 = vmul.f32 %v5312_v42, %v2391_v52 }
 0x915   : > { %v5325_v55 = vsub.f32 %v2382_v29, %v2403_v53  ;;  %v3650_v29 = vld [vmem:[%s4852_s25 + $0x10] sm:$0xf] }
 0x916   : > { %v3651_v32 = vor.u32 %v3893_v30, %v3650_v29 }
 0x917   : > { %v2411_v23 = vmul.f32 %v5325_v55, %v5325_v55 }
 0x918   : > { %2598 = vmatpush.bf16.msrb.mxu1 %v3651_v32 }
 0x919   : > { %2417 = vadd.xlane.f32.xlu1 %v2411_v23 }
 0x91a   : > { %v2393_v18 = vpop.xlane.xlu1 %2392 }
 0x91b   : > { %v2404_v26 = vmul.f32 %v5312_v42, %v2393_v18 }
 0x91c   : > { %2599 = vmatpush.bf16.msrb.mxu1 %v3643_v44  ;;  %v3911_v44 = vld [vmem:[%s4858_s19 + $0x28] sm:$0xff] }
 0x91d   : > { %v5330_v56 = vsub.f32 %v2383_v11, %v2404_v26  ;;  %v3652_v11 = vld [vmem:[%s4852_s25 + $0x18] sm:$0xf0] }
 0x91e   : > { %v3655_v39 = vor.u32 %v3892_v31, %v3652_v11 }
 0x91f   : > { %v2412_v57 = vmul.f32 %v5330_v56, %v5330_v56 }
 0x920   : > { %2617 = vmatpush.bf16.msra.mxu2 %v3655_v39 }
 0x921   : > { %2419 = vadd.xlane.f32.xlu0 %v2412_v57 }
 0x924   : > { %2618 = vmatpush.bf16.msra.mxu2 %v3647_v48  ;;  %v3920_v48 = vld [vmem:[%s4858_s19 + $0x70] sm:$0xff] }
 0x94e   : > { %v2414_v36 = vpop.xlane.xlu0 %2413 }
 0x94f   : > { %v2421_v43 = vmul.f32 %v2414_v36, %v5312_v42 }
 0x951   : > { %v2425_v3 = vadd.f32 1e-05, %v2421_v43  ;;  %v3921_v43 = vld [vmem:[%s4858_s19 + $0x78] sm:$0xff] }
 0x952   : > { %2856 = vmatpush.bf16.msra.mxu0 %v3921_v43 }
 0x953   : > { %4194 = vrsqrt.f32 %v2425_v3  ;;  %vm2435_vm15 = vweird.f32 %v2425_v3 }
 0x956   : > { %v2416_v50 = vpop.xlane.xlu2 %2415  ;;  %2857 = vmatpush.bf16.msra.mxu0 %v3920_v48 }
 0x957   : > { %v2422_v27 = vmul.f32 %v2416_v50, %v5312_v42  ;;  %v3919_v50 = vld [vmem:[%s4858_s19 + $0x68] sm:$0xff] }
 0x959   : > { %v4195_v52 = vpop.eup %4194  ;;  %v2426_v53 = vadd.f32 1e-05, %v2422_v27  ;;  %v2503_v27 = vld [vmem:[%s4890_s10] sm:$0x3] }
 0x95a   : > { %v2430_v23 = vmul.f32 %v4195_v52, %v2425_v3  ;;  %vm2436_vm14 = vweird.f32 %v4195_v52  ;;  %v3910_v3 = vld [vmem:[%s4858_s19 + $0x20] sm:$0xff]  ;;  %2858 = vmatpush.bf16.msra.mxu0 %v3919_v50 }
 0x95b   : > { %4196 = vrsqrt.f32 %v2426_v53  ;;  %vm2437_vm0 = vmor %vm2435_vm15, %vm2436_vm14  ;;  %vm2445_vm2 = vweird.f32 %v2426_v53 }
 0x95c   : > { %v2431_v18 = vmul.f32 %v4195_v52, %v2430_v23  ;;  %v2504_v23 = vunpack.c.l.bf16 %v2503_v27 }
 0x95e   : > { %v2432_v26 = vmul.f32 0.5, %v2431_v18  ;;  %v3908_v18 = vld [vmem:[%s4858_s19 + $0x10] sm:$0xff]  ;;  %v2507_v4 = vperm.slane %v2504_v23, 2 }
 0x960   : > { %v2433_v57 = vsub.f32 1.5, %v2432_v26  ;;  %v3917_v26 = vld [vmem:[%s4858_s19 + $0x58] sm:$0xff] }
 0x961   : > { %v4197_v19 = vpop.eup %4196 }
 0x962   : > { %v2434_v47 = vmul.f32 %v4195_v52, %v2433_v57  ;;  %v2440_v59 = vmul.f32 %v4197_v19, %v2426_v53  ;;  %vm2446_vm1 = vweird.f32 %v4197_v19  ;;  %v3918_v53 = vld [vmem:[%s4858_s19 + $0x60] sm:$0xff]  ;;  %v2506_v57 = vperm.slane %v2504_v23, 0 }
 0x963   : > { %vm2447_vm3 = vmor %vm2445_vm2, %vm2446_vm1  ;;  %2859 = vmatpush.bf16.msra.mxu0 %v3918_v53 }
 0x964   : > { %v2441_v22 = vmul.f32 %v4197_v19, %v2440_v59  ;;  %v2438_v9 = vsel %vm2437_vm0, %v4195_v52, %v2434_v47  ;;  %v3909_v52 = vld [vmem:[%s4858_s19 + $0x18] sm:$0xff]  ;;  %v3916_v47 = vld [vmem:[%s4858_s19 + $0x50] sm:$0xff]  ;;  %v3906_v59 = vld [vmem:[%s4858_s19] sm:$0xff]  ;;  %v5411_v61 = vperm.slane %v2506_v57, 0 }
 0x965   : > { %v2469_v35 = vmul.f32 %v2438_v9, %v5315_v1 }
 0x966   : > { %v2442_v62 = vmul.f32 0.5, %v2441_v22  ;;  %v3915_v22 = vld [vmem:[%s4858_s19 + $0x48] sm:$0xff] }
 0x967   : > { %v2475_v2 = vmul.f32 %v2474_v12, %v2469_v35  ;;  %2860 = vmatpush.bf16.msra.mxu0 %v3917_v26  ;;  %v5416_v35 = vperm.slane %v2507_v4, 0 }
 0x968   : > { %v2443_v63 = vsub.f32 1.5, %v2442_v62 }
 0x969   : > { %v5380_v37 = vadd.f32 %v2480_v10, %v2475_v2 }
 0x96a   : > { %v2444_v5 = vmul.f32 %v4197_v19, %v2443_v63 }
 0x96b   : > { %2861 = vmatpush.bf16.msra.mxu0 %v3916_v47 }
 0x96c   : > { %v2448_v6 = vsel %vm2447_vm3, %v4197_v19, %v2444_v5  ;;  %v3907_v19 = vld [vmem:[%s4858_s19 + $0x8] sm:$0xff] }
 0x96d   : > { %v2470_v49 = vmul.f32 %v2448_v6, %v5320_v51 }
 0x96f   : > { %v2476_v54 = vmul.f32 %v2474_v12, %v2470_v49  ;;  %2862 = vmatpush.bf16.msra.mxu0 %v3915_v22 }
 0x971   : > { %v5382_v0 = vadd.f32 %v2480_v10, %v2476_v54 }
 0x973   : > { %v2485_v14 = vpack.c.bf16 %v5382_v0, %v5380_v37  ;;  %2863 = vmatpush.bf16.msra.mxu0 %v3914_v46 }
 0x975   : > { %2600 = vmatmul.bf16.vlgmr.msrb.gmra.mxu1 %v2485_v14  ;;  %2619 = vmatmul.bf16.vlgmr.msra.gmra.mxu2 %v2485_v14 }
 0x98c   : > { %v2418_v1 = vpop.xlane.xlu1 %2417 }
 0x98d   : > { %v2423_v15 = vmul.f32 %v2418_v1, %v5312_v42 }
 0x98f   : > { %v2427_v8 = vadd.f32 1e-05, %v2423_v15 }
 0x991   : > { %4198 = vrsqrt.f32 %v2427_v8  ;;  %vm2455_vm5 = vweird.f32 %v2427_v8 }
 0x994   : > { %v2420_v28 = vpop.xlane.xlu0 %2419 }
 0x995   : > { %v2424_v51 = vmul.f32 %v2420_v28, %v5312_v42 }
 0x997   : > { %v4199_v17 = vpop.eup %4198  ;;  %v2428_v20 = vadd.f32 1e-05, %v2424_v51 }
 0x998   : > { %v2450_v45 = vmul.f32 %v4199_v17, %v2427_v8  ;;  %vm2456_vm4 = vweird.f32 %v4199_v17 }
 0x999   : > { %4200 = vrsqrt.f32 %v2428_v20  ;;  %vm2457_vm6 = vmor %vm2455_vm5, %vm2456_vm4  ;;  %vm2465_vm8 = vweird.f32 %v2428_v20 }
 0x99a   : > { %v2451_v13 = vmul.f32 %v4199_v17, %v2450_v45 }
 0x99c   : > { %v2452_v16 = vmul.f32 0.5, %v2451_v13 }
 0x99e   : > { %v2453_v24 = vsub.f32 1.5, %v2452_v16 }
 0x99f   : > { %v4201_v58 = vpop.eup %4200 }
 0x9a0   : > { %v2454_v25 = vmul.f32 %v4199_v17, %v2453_v24  ;;  %v2460_v7 = vmul.f32 %v4201_v58, %v2428_v20  ;;  %vm2466_vm7 = vweird.f32 %v4201_v58 }
 0x9a1   : > { %vm2467_vm9 = vmor %vm2465_vm8, %vm2466_vm7 }
 0x9a2   : > { %v2461_v38 = vmul.f32 %v4201_v58, %v2460_v7  ;;  %v2458_v29 = vsel %vm2457_vm6, %v4199_v17, %v2454_v25 }
 0x9a3   : > { %v2471_v31 = vmul.f32 %v2458_v29, %v5325_v55 }
 0x9a4   : > { %v2462_v21 = vmul.f32 0.5, %v2461_v38 }
 0x9a5   : > { %v2477_v34 = vmul.f32 %v2474_v12, %v2471_v31 }
 0x9a6   : > { %v2463_v30 = vsub.f32 1.5, %v2462_v21 }
 0x9a7   : > { %v5390_v39 = vadd.f32 %v2480_v10, %v2477_v34 }
 0x9a8   : > { %v2464_v32 = vmul.f32 %v4201_v58, %v2463_v30 }
 0x9aa   : > { %v2468_v11 = vsel %vm2467_vm9, %v4201_v58, %v2464_v32 }
 0x9ab   : > { %v2472_v33 = vmul.f32 %v2468_v11, %v5330_v56  ;;  %v3912_v56 = vld [vmem:[%s4858_s19 + $0x30] sm:$0xff] }
 0x9ac   : > { %2838 = vmatpush.bf16.msrb.mxu3 %v3912_v56 }
 0x9ad   : > { %v2478_v36 = vmul.f32 %v2474_v12, %v2472_v33 }
 0x9af   : > { %v5392_v40 = vadd.f32 %v2480_v10, %v2478_v36 }
 0x9b0   : > { %2839 = vmatpush.bf16.msrb.mxu3 %v3911_v44 }
 0x9b1   : > { %v2486_v55 = vpack.c.bf16 %v5392_v40, %v5390_v39 }
 0x9b3   : > { %2605 = vmatmul.bf16.gmra.mxu1 %v2486_v55  ;;  %2624 = vmatmul.bf16.gmra.mxu2 %v2486_v55 }
 0x9b4   : > { %2840 = vmatpush.bf16.msrb.mxu3 %v3910_v3 }
 0x9b8   : > { %2841 = vmatpush.bf16.msrb.mxu3 %v3909_v52 }
 0x9bc   : > { %2842 = vmatpush.bf16.msrb.mxu3 %v3908_v18 }
 0x9c0   : > { %2843 = vmatpush.bf16.msrb.mxu3 %v3907_v19 }
 0x9c4   : > { %2844 = vmatpush.bf16.msrb.mxu3 %v3906_v59 }
 0x9f2   : > { %v2601_v9 = vpop.f32.mrf.mxu1 }
 0x9f3   : > { %v2602_v62 = vadd.f32 %v2601_v9, %v5411_v61 }
 0x9f5   : > { %v2638_v63 = vmul.f32 0.044715, %v2602_v62  ;;  %v2630_v32 = vmul.f32 0.5, %v2602_v62 }
 0x9f7   : > { %v2646_v12 = vmul.f32 %v2638_v63, %v2602_v62 }
 0x9f8   : > { %v2620_v60 = vpop.f32.mrf.mxu2 }
 0x9f9   : > { %v2654_v5 = vmul.f32 %v2646_v12, %v2602_v62  ;;  %v2621_v6 = vadd.f32 %v2620_v60, %v5416_v35 }
 0x9fa   : > { %v2603_v49 = vpop.f32.mrf.mxu1 }
 0x9fb   : > { %v2662_v2 = vadd.f32 %v2654_v5, %v2602_v62  ;;  %v2639_v10 = vmul.f32 0.044715, %v2621_v6  ;;  %v2604_v54 = vadd.f32 %v2603_v49, %v5411_v61  ;;  %v2631_v44 = vmul.f32 0.5, %v2621_v6 }
 0x9fd   : > { %v2647_v14 = vmul.f32 %v2639_v10, %v2621_v6  ;;  %v2640_v1 = vmul.f32 0.044715, %v2604_v54  ;;  %v2670_v15 = vmul.f32 0.7978846, %v2662_v2  ;;  %v2632_v11 = vmul.f32 0.5, %v2604_v54 }
 0x9ff   : > { %v2655_v8 = vmul.f32 %v2647_v14, %v2621_v6  ;;  %v2648_v28 = vmul.f32 %v2640_v1, %v2604_v54  ;;  %4202 = vtanh.f32 %v2670_v15 }
 0xa00   : > { %v2622_v51 = vpop.f32.mrf.mxu2 }
 0xa01   : > { %v2663_v17 = vadd.f32 %v2655_v8, %v2621_v6  ;;  %v2656_v20 = vmul.f32 %v2648_v28, %v2604_v54  ;;  %v2623_v45 = vadd.f32 %v2622_v51, %v5416_v35 }
 0xa03   : > { %v2664_v13 = vadd.f32 %v2656_v20, %v2604_v54  ;;  %v2641_v16 = vmul.f32 0.044715, %v2623_v45  ;;  %v2671_v24 = vmul.f32 0.7978846, %v2663_v17  ;;  %v2633_v48 = vmul.f32 0.5, %v2623_v45 }
 0xa05   : > { %v2672_v58 = vmul.f32 0.7978846, %v2664_v13  ;;  %v2649_v25 = vmul.f32 %v2641_v16, %v2623_v45  ;;  %v4203_v38 = vpop.eup %4202 }
 0xa06   : > { %v2686_v30 = vadd.f32 1.0, %v4203_v38 }
 0xa07   : > { %v2657_v7 = vmul.f32 %v2649_v25, %v2623_v45  ;;  %4204 = vtanh.f32 %v2672_v58 }
 0xa08   : > { %4206 = vtanh.f32 %v2671_v24  ;;  %v2694_v36 = vmul.f32 %v2686_v30, %v2630_v32 }
 0xa09   : > { %v2665_v21 = vadd.f32 %v2657_v7, %v2623_v45 }
 0xa0b   : > { %v2673_v29 = vmul.f32 0.7978846, %v2665_v21 }
 0xa0d   : > { %v4205_v31 = vpop.eup %4204  ;;  %4208 = vtanh.f32 %v2673_v29 }
 0xa0e   : > { %v2688_v33 = vadd.f32 1.0, %v4205_v31  ;;  %v4207_v34 = vpop.eup %4206 }
 0xa0f   : > { %v2687_v56 = vadd.f32 1.0, %v4207_v34 }
 0xa10   : > { %v2696_v55 = vmul.f32 %v2688_v33, %v2632_v11  ;;  %v2738_v33 = vld [vmem:[%s1027_s30] sm:$0x1] }
 0xa11   : > { %v2695_v50 = vmul.f32 %v2687_v56, %v2631_v44  ;;  %v2739_v34 = vunpack.c.l.bf16 %v2738_v33 }
 0xa12   : > { %v2702_v41 = vpack.c.bf16 %v2696_v55, %v2694_v36 }
 0xa13   : > { %v4209_v43 = vpop.eup %4208  ;;  %v2740_v36 = vperm.slane %v2739_v34, 0 }
 0xa14   : > { %2845 = vmatmul.bf16.vlgmr.msrb.gmra.mxu3 %v2702_v41  ;;  %v2689_v3 = vadd.f32 1.0, %v4209_v43 }
 0xa16   : > { %v2697_v27 = vmul.f32 %v2689_v3, %v2633_v48 }
 0xa18   : > { %v2703_v52 = vpack.c.bf16 %v2697_v27, %v2695_v50 }
 0xa1a   : > { %2864 = vmatmul.bf16.vlgmr.msra.gmra.mxu0 %v2703_v52 }
 0xa30   : > { %v2606_v53 = vpop.f32.mrf.mxu1 }
 0xa31   : > { %v2607_v23 = vadd.f32 %v2606_v53, %v5411_v61 }
 0xa33   : > { %v2642_v18 = vmul.f32 0.044715, %v2607_v23  ;;  %v2634_v45 = vmul.f32 0.5, %v2607_v23 }
 0xa35   : > { %v2650_v26 = vmul.f32 %v2642_v18, %v2607_v23 }
 0xa36   : > { %v2625_v57 = vpop.f32.mrf.mxu2 }
 0xa37   : > { %v2626_v19 = vadd.f32 %v2625_v57, %v5416_v35  ;;  %v2658_v47 = vmul.f32 %v2650_v26, %v2607_v23 }
 0xa38   : > { %v2608_v59 = vpop.f32.mrf.mxu1 }
 0xa39   : > { %v2643_v22 = vmul.f32 0.044715, %v2626_v19  ;;  %v2609_v4 = vadd.f32 %v2608_v59, %v5411_v61  ;;  %v2666_v9 = vadd.f32 %v2658_v47, %v2607_v23  ;;  %v2635_v21 = vmul.f32 0.5, %v2626_v19 }
 0xa3b   : > { %v2644_v62 = vmul.f32 0.044715, %v2609_v4  ;;  %v2651_v46 = vmul.f32 %v2643_v22, %v2626_v19  ;;  %v2674_v12 = vmul.f32 0.7978846, %v2666_v9  ;;  %v2636_v13 = vmul.f32 0.5, %v2609_v4 }
 0xa3d   : > { %v2652_v63 = vmul.f32 %v2644_v62, %v2609_v4  ;;  %v2659_v60 = vmul.f32 %v2651_v46, %v2626_v19  ;;  %4210 = vtanh.f32 %v2674_v12 }
 0xa3e   : > { %v2627_v5 = vpop.f32.mrf.mxu2 }
 0xa3f   : > { %v2628_v6 = vadd.f32 %v2627_v5, %v5416_v35  ;;  %v2660_v49 = vmul.f32 %v2652_v63, %v2609_v4  ;;  %v2667_v2 = vadd.f32 %v2659_v60, %v2626_v19 }
 0xa41   : > { %v2645_v10 = vmul.f32 0.044715, %v2628_v6  ;;  %v2668_v54 = vadd.f32 %v2660_v49, %v2609_v4  ;;  %v2675_v15 = vmul.f32 0.7978846, %v2667_v2  ;;  %v2637_v29 = vmul.f32 0.5, %v2628_v6 }
 0xa43   : > { %v2676_v14 = vmul.f32 0.7978846, %v2668_v54  ;;  %v2653_v1 = vmul.f32 %v2645_v10, %v2628_v6  ;;  %v4211_v61 = vpop.eup %4210 }
 0xa44   : > { %v2690_v17 = vadd.f32 1.0, %v4211_v61 }
 0xa45   : > { %4212 = vtanh.f32 %v2676_v14  ;;  %v2661_v8 = vmul.f32 %v2653_v1, %v2628_v6 }
 0xa46   : > { %4214 = vtanh.f32 %v2675_v15  ;;  %v2698_v24 = vmul.f32 %v2690_v17, %v2634_v45 }
 0xa47   : > { %v2669_v28 = vadd.f32 %v2661_v8, %v2628_v6 }
 0xa49   : > { %v2677_v51 = vmul.f32 0.7978846, %v2669_v28 }
 0xa4b   : > { %v4213_v20 = vpop.eup %4212  ;;  %4216 = vtanh.f32 %v2677_v51 }
 0xa4c   : > { %v2692_v35 = vadd.f32 1.0, %v4213_v20  ;;  %v4215_v16 = vpop.eup %4214  ;;  %v2879_v20 = vld [vmem:[%s1030_s3] sm:$0x1] }
 0xa4d   : > { %v2691_v7 = vadd.f32 1.0, %v4215_v16  ;;  %v2961_v16 = vunpack.c.l.bf16 %v2879_v20 }
 0xa4e   : > { %v2700_v58 = vmul.f32 %v2692_v35, %v2636_v13  ;;  %v2880_v13 = vld [vmem:[%s1033_s17] sm:$0x1]  ;;  %s5592_s17 = sld [smem:[#allocation43_spill]] (!%p3768_p1) }
 0xa4f   : > { %v2699_v31 = vmul.f32 %v2691_v7, %v2635_v21  ;;  %v2962_v21 = vperm.slane %v2961_v16, 0 }
 0xa50   : > { %v2704_v25 = vpack.c.bf16 %v2700_v58, %v2698_v24 }
 0xa51   : > { %v4217_v38 = vpop.eup %4216 }
 0xa52   : > { %2850 = vmatmul.bf16.gmra.mxu3 %v2704_v25  ;;  %v2693_v30 = vadd.f32 1.0, %v4217_v38  ;;  %v2967_v25 = vunpack.c.l.bf16 %v2880_v13 }
 0xa54   : > { %v2701_v32 = vmul.f32 %v2693_v30, %v2637_v29 }
 0xa56   : > { %v2705_v11 = vpack.c.bf16 %v2701_v32, %v2699_v31  ;;  %v2968_v31 = vperm.slane %v2967_v25, 0 }
 0xa58   : > { %2869 = vmatmul.bf16.gmra.mxu0 %v2705_v11 }
 0xa97   : > { %v2846_v55 = vpop.f32.mrf.mxu3  ;;  %v2865_v41 = vpop.f32.mrf.mxu0 }
 0xa98   : > { %v2847_v56 = vadd.f32 %v2846_v55, %v2740_v36 }
 0xa9a   : > { %v2866_v43 = vadd.f32 %v2865_v41, %v2847_v56 }
 0xa9c   : > { %v2875_v44 = vadd.f32 %v2866_v43, %v5380_v37 }
 0xa9e   : > { %2881 = vadd.xlane.f32.xlu2 %v2875_v44 }
 0xa9f   : > { %v2848_v48 = vpop.f32.mrf.mxu3  ;;  %v2867_v50 = vpop.f32.mrf.mxu0 }
 0xaa0   : > { %v2849_v3 = vadd.f32 %v2848_v48, %v2740_v36 }
 0xaa2   : > { %v2868_v27 = vadd.f32 %v2867_v50, %v2849_v3 }
 0xaa4   : > { %v2876_v52 = vadd.f32 %v2868_v27, %v5382_v0 }
 0xaa6   : > { %2883 = vadd.xlane.f32.xlu1 %v2876_v52 }
 0xad5   : > { %v2851_v53 = vpop.f32.mrf.mxu3  ;;  %v2870_v23 = vpop.f32.mrf.mxu0 }
 0xad6   : > { %v2852_v18 = vadd.f32 %v2851_v53, %v2740_v36 }
 0xad8   : > { %v2871_v26 = vadd.f32 %v2870_v23, %v2852_v18 }
 0xada   : > { %v2877_v57 = vadd.f32 %v2871_v26, %v5390_v39 }
 0xadc   : > { %2885 = vadd.xlane.f32.xlu0 %v2877_v57 }
 0xadd   : > { %v2853_v19 = vpop.f32.mrf.mxu3  ;;  %v2872_v59 = vpop.f32.mrf.mxu0 }
 0xade   : > { %v2854_v47 = vadd.f32 %v2853_v19, %v2740_v36 }
 0xae0   : > { %v2873_v22 = vadd.f32 %v2872_v59, %v2854_v47 }
 0xae2   : > { %v2878_v37 = vadd.f32 %v2873_v22, %v5392_v40 }
 0xae4   : > { %2887 = vadd.xlane.f32.xlu2 %v2878_v37 }
 0xb11   : > { %v2882_v4 = vpop.xlane.xlu2 %2881 }
 0xb12   : > { %v2889_v9 = vmul.f32 %v2882_v4, %v5312_v42 }
 0xb14   : > { %v2893_v62 = vsub.f32 %v2875_v44, %v2889_v9 }
 0xb16   : > { %v2897_v0 = vmul.f32 %v2893_v62, %v2893_v62 }
 0xb18   : > { %2901 = vadd.xlane.f32.xlu1 %v2897_v0 }
 0xb19   : > { %v2884_v46 = vpop.xlane.xlu1 %2883 }
 0xb1a   : > { %v2890_v63 = vmul.f32 %v2884_v46, %v5312_v42 }
 0xb1c   : > { %v2894_v12 = vsub.f32 %v2876_v52, %v2890_v63 }
 0xb1e   : > { %v2898_v60 = vmul.f32 %v2894_v12, %v2894_v12 }
 0xb20   : > { %2903 = vadd.xlane.f32.xlu0 %v2898_v60 }
 0xb4f   : > { %v2886_v39 = vpop.xlane.xlu0 %2885 }
 0xb50   : > { %v2891_v5 = vmul.f32 %v2886_v39, %v5312_v42 }
 0xb52   : > { %v5437_v6 = vsub.f32 %v2877_v57, %v2891_v5 }
 0xb54   : > { %v2899_v40 = vmul.f32 %v5437_v6, %v5437_v6 }
 0xb56   : > { %2905 = vadd.xlane.f32.xlu2 %v2899_v40 }
 0xb57   : > { %v2888_v49 = vpop.xlane.xlu2 %2887 }
 0xb58   : > { %v2892_v2 = vmul.f32 %v2888_v49, %v5312_v42 }
 0xb5a   : > { %v5442_v10 = vsub.f32 %v2878_v37, %v2892_v2 }
 0xb5c   : > { %v2900_v54 = vmul.f32 %v5442_v10, %v5442_v10 }
 0xb5e   : > { %2907 = vadd.xlane.f32.xlu1 %v2900_v54 }
 0xb8b   : > { %v2902_v14 = vpop.xlane.xlu1 %2901 }
 0xb8c   : > { %v2909_v1 = vmul.f32 %v2902_v14, %v5312_v42 }
 0xb8e   : > { %v2913_v15 = vadd.f32 1e-05, %v2909_v1 }
 0xb90   : > { %4218 = vrsqrt.f32 %v2913_v15  ;;  %vm2923_vm11 = vweird.f32 %v2913_v15 }
 0xb93   : > { %v2904_v8 = vpop.xlane.xlu0 %2903 }
 0xb94   : > { %v2910_v61 = vmul.f32 %v2904_v8, %v5312_v42 }
 0xb96   : > { %v4219_v28 = vpop.eup %4218  ;;  %v2914_v51 = vadd.f32 1e-05, %v2910_v61 }
 0xb97   : > { %v2918_v17 = vmul.f32 %v4219_v28, %v2913_v15  ;;  %vm2924_vm10 = vweird.f32 %v4219_v28 }
 0xb98   : > { %4220 = vrsqrt.f32 %v2914_v51  ;;  %vm2925_vm12 = vmor %vm2923_vm11, %vm2924_vm10  ;;  %vm2933_vm14 = vweird.f32 %v2914_v51 }
 0xb99   : > { %v2919_v45 = vmul.f32 %v4219_v28, %v2918_v17 }
 0xb9b   : > { %v2920_v35 = vmul.f32 0.5, %v2919_v45 }
 0xb9d   : > { %v2921_v24 = vsub.f32 1.5, %v2920_v35 }
 0xb9e   : > { %v4221_v58 = vpop.eup %4220 }
 0xb9f   : > { %v2922_v7 = vmul.f32 %v4219_v28, %v2921_v24  ;;  %v2928_v38 = vmul.f32 %v4221_v58, %v2914_v51  ;;  %vm2934_vm13 = vweird.f32 %v4221_v58 }
 0xba0   : > { %vm2935_vm15 = vmor %vm2933_vm14, %vm2934_vm13 }
 0xba1   : > { %v2926_v29 = vsel %vm2925_vm12, %v4219_v28, %v2922_v7  ;;  %v2929_v30 = vmul.f32 %v4221_v58, %v2928_v38 }
 0xba2   : > { %v2957_v32 = vmul.f32 %v2926_v29, %v2893_v62 }
 0xba3   : > { %v2930_v11 = vmul.f32 0.5, %v2929_v30 }
 0xba4   : > { %v2963_v33 = vmul.f32 %v2962_v21, %v2957_v32 }
 0xba5   : > { %v2931_v34 = vsub.f32 1.5, %v2930_v11 }
 0xba6   : > { %v5458_v36 = vadd.f32 %v2968_v31, %v2963_v33 }
 0xba7   : > { %v2932_v55 = vmul.f32 %v4221_v58, %v2931_v34 }
 0xba8   : > { %v2973_v41 = vpack.c.bf16 %v5458_v36, %v5458_v36 }
 0xba9   : > { %v2936_v56 = vsel %vm2935_vm15, %v4221_v58, %v2932_v55 }
 0xbaa   : > { %v2958_v43 = vmul.f32 %v2936_v56, %v2894_v12 }
 0xbac   : > { %v2964_v44 = vmul.f32 %v2962_v21, %v2958_v43 }
 0xbae   : > { %v2970_v48 = vadd.f32 %v2968_v31, %v2964_v44 }
 0xbb0   : > { %v3951_v3 = vpack.c.bf16 %v2970_v48, %v5458_v36 }
 0xbb2   : > { %3952 = vst [vmem:[#allocation2] sm:$0xff] %v3951_v3  }
 0xbc9   : > { %v2906_v50 = vpop.xlane.xlu2 %2905 }
 0xbca   : > { %v2911_v27 = vmul.f32 %v2906_v50, %v5312_v42 }
 0xbcc   : > { %v2915_v52 = vadd.f32 1e-05, %v2911_v27 }
 0xbce   : > { %4222 = vrsqrt.f32 %v2915_v52  ;;  %vm2943_vm1 = vweird.f32 %v2915_v52 }
 0xbd1   : > { %v2908_v53 = vpop.xlane.xlu1 %2907 }
 0xbd2   : > { %v2912_v23 = vmul.f32 %v2908_v53, %v5312_v42 }
 0xbd4   : > { %v4223_v18 = vpop.eup %4222  ;;  %v2916_v26 = vadd.f32 1e-05, %v2912_v23 }
 0xbd5   : > { %v2938_v57 = vmul.f32 %v4223_v18, %v2915_v52  ;;  %vm2944_vm0 = vweird.f32 %v4223_v18 }
 0xbd6   : > { %4224 = vrsqrt.f32 %v2916_v26  ;;  %vm2945_vm2 = vmor %vm2943_vm1, %vm2944_vm0  ;;  %vm2953_vm4 = vweird.f32 %v2916_v26 }
 0xbd7   : > { %v2939_v19 = vmul.f32 %v4223_v18, %v2938_v57 }
 0xbd9   : > { %v2940_v47 = vmul.f32 0.5, %v2939_v19 }
 0xbdb   : > { %v2941_v59 = vsub.f32 1.5, %v2940_v47 }
 0xbdc   : > { %v4225_v22 = vpop.eup %4224 }
 0xbdd   : > { %v2942_v37 = vmul.f32 %v4223_v18, %v2941_v59  ;;  %v2948_v4 = vmul.f32 %v4225_v22, %v2916_v26  ;;  %vm2954_vm3 = vweird.f32 %v4225_v22 }
 0xbde   : > { %vm2955_vm5 = vmor %vm2953_vm4, %vm2954_vm3 }
 0xbdf   : > { %v2946_v9 = vsel %vm2945_vm2, %v4223_v18, %v2942_v37  ;;  %v2949_v62 = vmul.f32 %v4225_v22, %v2948_v4 }
 0xbe0   : > { %v2959_v0 = vmul.f32 %v2946_v9, %v5437_v6 }
 0xbe1   : > { %v2950_v46 = vmul.f32 0.5, %v2949_v62 }
 0xbe2   : > { %v2965_v63 = vmul.f32 %v2962_v21, %v2959_v0 }
 0xbe3   : > { %v2951_v42 = vsub.f32 1.5, %v2950_v46 }
 0xbe4   : > { %v2971_v12 = vadd.f32 %v2968_v31, %v2965_v63 }
 0xbe5   : > { %v2952_v60 = vmul.f32 %v4225_v22, %v2951_v42 }
 0xbe6   : > { %v2975_v39 = vpack.c.bf16 %v2971_v12, %v2971_v12 }
 0xbe7   : > { %v2956_v5 = vsel %vm2955_vm5, %v4225_v22, %v2952_v60 }
 0xbe8   : > { %v2960_v40 = vmul.f32 %v2956_v5, %v5442_v10 }
 0xbea   : > { %v2966_v49 = vmul.f32 %v2962_v21, %v2960_v40 }
 0xbec   : > { %v2972_v2 = vadd.f32 %v2968_v31, %v2966_v49  ;;  %2984 = sbr.rel (%p3768_p1) target bundleno = 3355 (0xd1b), region = 152 }
 0xbee   : > { %v3956_v54 = vpack.c.bf16 %v2972_v2, %v2971_v12 }
 0xbf0   : > { %3959 = vst [vmem:[#allocation2 + $0x8] sm:$0xff] %v3956_v54  }
 0xbf1   : > { %v3929_v6 = vld [vmem:[#allocation12 + $0x38] sm:$0xff]  ;;  %v3928_v14 = vld [vmem:[#allocation12 + $0x30] sm:$0xff]  ;;  %v3927_v8 = vld [vmem:[#allocation12 + $0x28] sm:$0xff]  ;;  %v2986_v45 = vunpack.c.l.b16 %v2975_v39  ;;  %vm2992_vm6 = vcmask 1040384   ;;  %vm2993_vm7 = vsmask.f32 256 }
 0xbf2   : > { %3063 = vmatpush.bf16.msra.mxu0 %v3929_v6  ;;  %v3937_v1 = vld [vmem:[#allocation14 + $0x38] sm:$0xff]  ;;  %v3936_v15 = vld [vmem:[#allocation14 + $0x30] sm:$0xff]  ;;  %v3935_v61 = vld [vmem:[#allocation14 + $0x28] sm:$0xff] }
 0xbf3   : > { %3145 = vmatpush.bf16.msra.mxu1 %v3937_v1  ;;  %v3926_v28 = vld [vmem:[#allocation12 + $0x20] sm:$0xff]  ;;  %v3925_v51 = vld [vmem:[#allocation12 + $0x18] sm:$0xff]  ;;  %v3924_v20 = vld [vmem:[#allocation12 + $0x10] sm:$0xff]  ;;  %v2987_v16 = vpack.c.b16 %v2986_v45, %v2986_v45 }
 0xbf4   : > { %v3934_v10 = vld [vmem:[#allocation14 + $0x20] sm:$0xff]  ;;  %v3933_v17 = vld [vmem:[#allocation14 + $0x18] sm:$0xff]  ;;  %v3932_v13 = vld [vmem:[#allocation14 + $0x10] sm:$0xff] }
 0xbf5   : > { %v3923_v35 = vld [vmem:[#allocation12 + $0x8] sm:$0xff]  ;;  %v3922_v24 = vld [vmem:[#allocation12] sm:$0xff]  ;;  %v2989_v58 = vshll.u32 %v2987_v16, 16  ;;  %vm2994_vm8 = vmand %vm2992_vm6, %vm2993_vm7 }
 0xbf6   : > { %3064 = vmatpush.bf16.msra.mxu0 %v3928_v14  ;;  %v3931_v7 = vld [vmem:[#allocation14 + $0x8] sm:$0xff]  ;;  %v3930_v38 = vld [vmem:[#allocation14] sm:$0xff]  ;;  %v3012_v21 = vld [vmem:[%s5592_s17] sm:$0x1] }
 0xbf7   : > { %3146 = vmatpush.bf16.msra.mxu1 %v3936_v15  ;;  %v2995_v25 = vsel %vm2994_vm8, %v2973_v41, %v2989_v58  ;;  %v3013_v29 = vunpack.c.l.bf16 %v3012_v21  ;;  %v3094_v36 = vld [vmem:[%s5593_s28] sm:$0x1] }
 0xbf8   : > { %v3095_v55 = vunpack.c.l.bf16 %v3094_v36 }
 0xbf9   : > { %v3014_v30 = vperm.slane %v3013_v29, 0 }
 0xbfa   : > { %3065 = vmatpush.bf16.msra.mxu0 %v3927_v8  ;;  %v3096_v41 = vperm.slane %v3095_v55, 0 }
 0xbfb   : > { %3147 = vmatpush.bf16.msra.mxu1 %v3935_v61 }
 0xbfe   : > { %3066 = vmatpush.bf16.msra.mxu0 %v3926_v28 }
 0xbff   : > { %3148 = vmatpush.bf16.msra.mxu1 %v3934_v10 }
 0xc02   : > { %3067 = vmatpush.bf16.msra.mxu0 %v3925_v51 }
 0xc03   : > { %3149 = vmatpush.bf16.msra.mxu1 %v3933_v17 }
 0xc06   : > { %3068 = vmatpush.bf16.msra.mxu0 %v3924_v20 }
 0xc07   : > { %3150 = vmatpush.bf16.msra.mxu1 %v3932_v13 }
 0xc0a   : > { %3069 = vmatpush.bf16.msra.mxu0 %v3923_v35 }
 0xc0b   : > { %3151 = vmatpush.bf16.msra.mxu1 %v3931_v7 }
 0xc0e   : > { %3070 = vmatpush.bf16.msra.mxu0 %v3922_v24 }
 0xc0f   : > { %3152 = vmatpush.bf16.msra.mxu1 %v3930_v38 }
 0xc11   : > { %3071 = vmatmul.bf16.vlgmr.msra.gmra.mxu0 %v2995_v25 }
 0xc8e   : > { %v3072_v31 = vpop.f32.mrf.mxu0 }
 0xc8f   : > { %v3073_v32 = vadd.f32 %v3072_v31, %v3014_v30 }
 0xc91   : > { %v3076_v11 = vmax.f32 %v3073_v32, 0.0 }
 0xc93   : > { %v3077_v33 = vpack.c.bf16 %v3076_v11, %v3076_v11 }
 0xc95   : > { %3153 = vmatmul.bf16.vlgmr.msra.gmra.mxu1 %v3077_v33 }
 0xc96   : > { %v3074_v34 = vpop.f32.mrf.mxu0 }
 0xd12   : > { %v3154_v56 = vpop.f32.mrf.mxu1 }
 0xd13   : > { %v3155_v43 = vadd.f32 %v3154_v56, %v3096_v41 }
 0xd15   : > { %v3158_v44 = vpack.c.bf16 %v3155_v43, %v3155_v43 }
 0xd17   : > { %3159 = vst [vmem:[#allocation15] sm:$0x1] %v3158_v44 }
 0xd1a   : > { %v3156_v48 = vpop.f32.mrf.mxu1 }
 0xd1b PF: > { %p4034_p4 = scmp.eq.s32.totalorder %s4677_s6, 1  ;;  %s4532_s25 = smov [#allocation15]  }
 0xd1c   : > { %s3166_s5 = sshll.u32 %s4532_s25, 4  ;;  %s5594_s13 = sld [smem:[#allocation45_spill]]  ;;  %s3167_s5 = int_to_ptr.vmem [resolvable:$true] %s3166_s5 }
 0xd22   : > { %s3168_s2 = sshll.u32 %s5594_s13, 4  ;;  %s3169_s2 = int_to_ptr.hbm [resolvable:$true] %s3168_s2 }
 0xd23   : > { %4001 = dma.vmem_to_hbm [thread:$0]  (%p4034_p4), %s3167_s5, 16, %s3169_s2, [#allocation5]  }
 0xd24   : > { %4497 = dma.done.wait (%p4034_p4), [#allocation5], 16  }
 0xd25   : > { %4499 = vsyncadd (%p4034_p4), [#allocation5], 4294967280 }
 0xd26 PF: > { %s5595_s28 = sld [smem:[#allocation22_spill]]  ;;  %s5598_s5 = smov %s4506_s26 }
 0xd27   : > { %s5596_s21 = sld [smem:[#allocation21_spill]] }
 0xd28   : > { %s5597_s27 = sld [smem:[#allocation23_spill]] }
 0xd2c   : > { %p40_p5 = scmp.ge.s32.totalorder %s5595_s28, 4  }
 0xd2d   : > { %s5599_s26 = smov %s5596_s21 }
 0xd2e   :  { %42 = sbr.rel (!%p40_p5) target bundleno = 31 (0x1f), region = 233 }
 0xd33   :  { %3182 = vsyncpa [#allocation4], 1 }
 0xd34   :  { %3184 = vsyncpa [#allocation4 + $0x1], 1 }
 0xd35   :  { %3185 = vsyncpa [#allocation7], 1 }
 0xd36   :  { %3187 = vsyncpa [#allocation7 + $0x1], 1 }
 0xd37   :  { %3188 = vsyncpa [#allocation10], 1 }
 0xd38   :  { %3190 = vsyncpa [#allocation10 + $0x1], 1 }
 0xd39   :  { %3191 = vsyncpa [#allocation13], 1 }
 0xd3a   :  { %3192 = vsyncpa [#allocation5], 1 }
 0xd3b   :  { %3194 = vsyncpa [#allocation5 + $0x1], 1 }

</bundles_post_ra>
